<compile_context>
chip_gen: v7x
topology: tpu7x:2x2x1
jax: 0.10.0
libtpu: 0.0.40
codegen_flags: <defaults>
</compile_context>

<pallas_src>
import numpy as np

import jax
import jax.numpy as jnp
from jax import lax
from jax.experimental import pallas as pl
from jax.experimental.pallas import tpu as pltpu


# Order of the pre-packed weight/structural-matrix operands of the kernel.
_W_NAMES = (
    "g_d0", "s_d0", "b_d0", "ca_d0",        # encoder 0
    "g_d1", "s_d1", "b_d1", "ca_d1",        # encoder 1
    "g_nk", "s_nk", "b_nk", "ca_nk",        # bottleneck
    "g_u0a", "g_u0b", "s_u0", "b_u0", "ca_u0",   # decoder 0 (cat[x1, xn])
    "g_fa", "g_fb", "s_f", "b_f",            # fused final: side0(xu)+up1(cat[x0,xu])
    "ls2", "lb2", "ls4", "lb4",              # per-sample lane sum / broadcast mats
)


# ------------------------------ in-kernel ops --------------------------------

def _mm(a, b):
    """MXU matmul, bf16 operands, f32 accumulation (same numerics as default
    single-pass precision; halves operand footprint)."""
    return jnp.dot(a.astype(jnp.bfloat16), b.astype(jnp.bfloat16),
                   preferred_element_type=jnp.float32)


def _conv_layer(parts, s_ref, b_ref):
    """One conv / transposed-conv layer:  out = sum_kx (sum_p G_p,kx @ A_p) @ S_kx + b.

    parts: list of (A, g_ref) with A:(Cin*Hin, B*Win) and g_ref:(3, M, Cin*Hin)
    (a channel-split of a concatenated input).  s_ref: (3, B*Win, B*Wout).
    Returns (M, B*Wout) = (Cout*Hout, B*Wout), f32.
    """
    acc = None
    for kx in range(3):
        t = None
        for a_act, g_ref in parts:
            u = _mm(g_ref[kx], a_act)
            t = u if t is None else t + u
        v = _mm(t, s_ref[kx])
        acc = v if acc is None else acc + v
    return acc + b_ref[...]


def _inorm_prelu(y, ca_ref, ls_ref, lb_ref, alpha):
    """InstanceNorm2d(affine=False, eps=1e-5) + PReLU (single slope), 'NDA'
    order with dropout=0.  y: (C*H, B*W).  Per-sample/per-channel statistics
    via tiny 0/1 reduction / broadcast matmuls; two-pass variance."""
    ca, ls, lb = ca_ref[...], ls_ref[...], lb_ref[...]
    m = _mm(_mm(ca, _mm(y, ls)), lb)                  # channel-sample mean
    d = y - m
    var = _mm(_mm(ca, _mm(d * d, ls)), lb)            # E[(x - m)^2]
    yn = d * lax.rsqrt(var + 1e-5)
    return jnp.where(yn >= 0.0, yn, alpha * yn)


def _dsunet_kernel(alpha_ref, x_ref, *refs):
    """Whole DSUNet forward for one batch block; everything stays in VMEM."""
    w = dict(zip(_W_NAMES, refs))
    out_ref = refs[-1]

    x = x_ref[0]                                                    # (Cin*H, B*W)

    # encoder 0: Conv3x3(s=2,p=1)+bias -> IN -> PReLU
    y = _conv_layer([(x, w["g_d0"])], w["s_d0"], w["b_d0"])
    x0 = _inorm_prelu(y, w["ca_d0"], w["ls2"], w["lb2"], alpha_ref[0])   # (c0*H2, B*W2)

    # encoder 1
    y = _conv_layer([(x0, w["g_d1"])], w["s_d1"], w["b_d1"])
    x1 = _inorm_prelu(y, w["ca_d1"], w["ls4"], w["lb4"], alpha_ref[1])   # (c1*H4, B*W4)

    # bottleneck: Conv3x3(s=1,p=1)+bias -> IN -> PReLU
    y = _conv_layer([(x1, w["g_nk"])], w["s_nk"], w["b_nk"])
    xn = _inorm_prelu(y, w["ca_nk"], w["ls4"], w["lb4"], alpha_ref[2])   # (c2*H4, B*W4)

    # decoder 0: ConvTranspose3x3(s=2) on cat([x1, xn]) + bias -> IN -> PReLU
    y = _conv_layer([(x1, w["g_u0a"]), (xn, w["g_u0b"])], w["s_u0"], w["b_u0"])
    xu = _inorm_prelu(y, w["ca_u0"], w["ls2"], w["lb2"], alpha_ref[3])   # (c0*H2, B*W2)

    # fused final: side0(xu) + up1(cat([x0, xu]))  (weights pre-summed host-side
    # for the xu path, so the skip/side add is a single accumulated layer).
    out = _conv_layer([(x0, w["g_fa"]), (xu, w["g_fb"])], w["s_f"], w["b_f"])
    out_ref[0] = out.astype(out_ref.dtype)


# ------------------------------ host wrapper ---------------------------------

def dsunet_forward(x_nchw, kp):
    """x_nchw: (N, Cin, H, W) float32.  kp: kernel-layout parameters
    (prepare_params).  B (samples per grid step) is baked into kp."""
    N, cin, H, W = x_nchw.shape
    B = kp["ls2"].shape[1]                      # samples folded into the lane axis
    cout = kp["b_f"].shape[0] // H
    assert H % 4 == 0 and W % 4 == 0, "two stride-2 levels need H, W % 4 == 0"
    assert kp["g_d0"].shape[2] == cin * H, "params were prepared for another H/Cin"
    assert kp["ls2"].shape[0] == B * (W // 2), "params were prepared for another W"
    assert N % B == 0, "batch must be a multiple of the per-step batch block"
    nsteps = N // B

    # (N,C,H,W) -> (nsteps, C*H, B*W): rows = channel-major x row, lanes = sample-major x col.
    xb = (x_nchw.reshape(nsteps, B, cin, H, W)
                .transpose(0, 2, 3, 1, 4)
                .reshape(nsteps, cin * H, B * W))

    dense = [kp[k] for k in _W_NAMES]

    def whole(a):                               # whole array resident in VMEM
        return pl.BlockSpec(a.shape, lambda n, _nd=a.ndim: (0,) * _nd)

    out = pl.pallas_call(
        _dsunet_kernel,
        out_shape=jax.ShapeDtypeStruct((nsteps, cout * H, B * W), jnp.float32),
        grid=(nsteps,),
        in_specs=[pl.BlockSpec(memory_space=pltpu.MemorySpace.SMEM)]       # PReLU slopes
                 + [pl.BlockSpec((1, cin * H, B * W), lambda n: (n, 0, 0))]  # input block
                 + [whole(a) for a in dense],                               # weights/struct mats
        out_specs=pl.BlockSpec((1, cout * H, B * W), lambda n: (n, 0, 0)),
        compiler_params=pltpu.CompilerParams(
            dimension_semantics=("parallel",),          # >=2 steps -> both v7x TCs busy
            vmem_limit_bytes=32 * 1024 * 1024,          # explicit; resident set is tiny
        ),
    )(kp["alphas"], xb, *dense)

    return (out.reshape(nsteps, cout, H, B, W)
               .transpose(0, 3, 1, 2, 4)
               .reshape(N, cout, H, W))


# ---------------------- host-side structural matrices ------------------------

def _row_sel_conv(h_in, stride):
    """R[ky, a, i] = 1  iff  i == stride*a + ky - 1   (conv, padding 1)."""
    h_out = h_in // stride
    r = np.zeros((3, h_out, h_in), np.float32)
    for ky in range(3):
        for a in range(h_out):
            i = stride * a + ky - 1
            if 0 <= i < h_in:
                r[ky, a, i] = 1.0
    return r


def _col_sel_conv(w_in, stride):
    """S[kx, j, b] = 1  iff  j == stride*b + kx - 1   (conv, padding 1)."""
    w_out = w_in // stride
    s = np.zeros((3, w_in, w_out), np.float32)
    for kx in range(3):
        for b in range(w_out):
            j = stride * b + kx - 1
            if 0 <= j < w_in:
                s[kx, j, b] = 1.0
    return s


def _row_sel_tconv(h_in):
    """ConvTranspose(k=3,s=2,p=1,op=1): R[ky, y, i] = 1 iff 2i == y - ky + 1."""
    h_out = 2 * h_in
    r = np.zeros((3, h_out, h_in), np.float32)
    for ky in range(3):
        for y in range(h_out):
            num = y - ky + 1
            if num % 2 == 0 and 0 <= num // 2 < h_in:
                r[ky, y, num // 2] = 1.0
    return r


def _col_sel_tconv(w_in):
    """ConvTranspose(k=3,s=2,p=1,op=1): S[kx, j, x] = 1 iff 2j == x - kx + 1."""
    w_out = 2 * w_in
    s = np.zeros((3, w_in, w_out), np.float32)
    for kx in range(3):
        for xo in range(w_out):
            num = xo - kx + 1
            if num % 2 == 0 and 0 <= num // 2 < w_in:
                s[kx, num // 2, xo] = 1.0
    return s


# ------------------------------- parameters ----------------------------------

def init_params(key, in_ch, out_ch, channels):
    """Random parameters in the PyTorch layouts of the original module."""
    c0, c1, c2 = channels
    ks = jax.random.split(key, 12)

    def conv_w(k, co, ci):      # nn.Conv2d weight
        return 0.1 * jax.random.normal(k, (co, ci, 3, 3), jnp.float32)

    def tconv_w(k, ci, co):     # nn.ConvTranspose2d weight
        return 0.1 * jax.random.normal(k, (ci, co, 3, 3), jnp.float32)

    def bias(k, c):
        return 0.05 * jax.random.normal(k, (c,), jnp.float32)

    return {
        "down0": dict(w=conv_w(ks[0], c0, in_ch), b=bias(ks[1], c0), alpha=0.25),
        "down1": dict(w=conv_w(ks[2], c1, c0), b=bias(ks[3], c1), alpha=0.25),
        "neck":  dict(w=conv_w(ks[4], c2, c1), b=bias(ks[5], c2), alpha=0.25),
        "up0":   dict(w=tconv_w(ks[6], c1 + c2, c0), b=bias(ks[7], c0), alpha=0.25),
        "side0": dict(w=tconv_w(ks[8], c0, out_ch), b=bias(ks[9], out_ch)),
        "up1":   dict(w=tconv_w(ks[10], 2 * c0, out_ch), b=bias(ks[11], out_ch)),
    }


def prepare_params(p, channels, in_ch, out_ch, H, W, batch_block):
    """One-time host-side packing: fold conv / tconv weights with their row
    selection matrices (G, bf16), build kron'd column-selection (S), per-sample
    lane reduce/broadcast and channel-average matrices, row-expanded biases."""
    assert H % 4 == 0 and W % 4 == 0
    c0, c1, c2 = channels
    B = batch_block
    H2, W2, H4, W4 = H // 2, W // 2, H // 4, W // 4

    def npf(a):
        return np.asarray(jax.device_get(a), np.float32)

    def fold_conv(wc, h_in, stride):
        g = np.einsum("oiyx,yab->xoaib", npf(wc), _row_sel_conv(h_in, stride))
        _, o, a, i, b = g.shape
        return g.reshape(3, o * a, i * b)

    def fold_tconv(wt, h_in):
        g = np.einsum("ioyx,yab->xoaib", npf(wt), _row_sel_tconv(h_in))
        _, o, a, i, b = g.shape
        return g.reshape(3, o * a, i * b)

    def kron_cols(s3):           # (3, Win, Wout) -> (3, B*Win, B*Wout)
        eye = np.eye(B, dtype=np.float32)
        return np.stack([np.kron(eye, s3[k]) for k in range(3)])

    def bias_rows(b, h_out):
        return np.repeat(npf(b), h_out)[:, None]

    def chan_avg(c, h_out, w_out):
        return (np.kron(np.eye(c, dtype=np.float32),
                        np.ones((h_out, h_out), np.float32)) / float(h_out * w_out))

    def lane_sum(w_out):
        return np.kron(np.eye(B, dtype=np.float32), np.ones((w_out, 1), np.float32))

    bf = lambda a: jnp.asarray(a, jnp.bfloat16)    # matmul operands (0/1 & pow2 exact)
    f32 = lambda a: jnp.asarray(a, jnp.float32)    # biases / slopes stay f32

    wu0, wu1, ws0 = npf(p["up0"]["w"]), npf(p["up1"]["w"]), npf(p["side0"]["w"])
    ls2, ls4 = lane_sum(W2), lane_sum(W4)

    return {
        "alphas": f32(np.array([p["down0"]["alpha"], p["down1"]["alpha"],
                                p["neck"]["alpha"], p["up0"]["alpha"]], np.float32)),
        # encoder 0 (Cin -> c0, stride 2)
        "g_d0": bf(fold_conv(p["down0"]["w"], H, 2)),
        "s_d0": bf(kron_cols(_col_sel_conv(W, 2))),
        "b_d0": f32(bias_rows(p["down0"]["b"], H2)),
        "ca_d0": bf(chan_avg(c0, H2, W2)),
        # encoder 1 (c0 -> c1, stride 2)
        "g_d1": bf(fold_conv(p["down1"]["w"], H2, 2)),
        "s_d1": bf(kron_cols(_col_sel_conv(W2, 2))),
        "b_d1": f32(bias_rows(p["down1"]["b"], H4)),
        "ca_d1": bf(chan_avg(c1, H4, W4)),
        # bottleneck (c1 -> c2, stride 1)
        "g_nk": bf(fold_conv(p["neck"]["w"], H4, 1)),
        "s_nk": bf(kron_cols(_col_sel_conv(W4, 1))),
        "b_nk": f32(bias_rows(p["neck"]["b"], H4)),
        "ca_nk": bf(chan_avg(c2, H4, W4)),
        # decoder 0: tconv on cat([x1, xn])  (c1+c2 -> c0)
        "g_u0a": bf(fold_tconv(wu0[:c1], H4)),
        "g_u0b": bf(fold_tconv(wu0[c1:], H4)),
        "s_u0": bf(kron_cols(_col_sel_tconv(W4))),
        "b_u0": f32(bias_rows(p["up0"]["b"], H2)),
        "ca_u0": bf(chan_avg(c0, H2, W2)),
        # fused final layer: side0(xu) + up1(cat([x0, xu]))
        "g_fa": bf(fold_tconv(wu1[:c0], H2)),                       # x0 path
        "g_fb": bf(fold_tconv(wu1[c0:], H2) + fold_tconv(ws0, H2)),  # xu path (+side0)
        "s_f": bf(kron_cols(_col_sel_tconv(W2))),
        "b_f": f32(bias_rows(npf(p["side0"]["b"]) + npf(p["up1"]["b"]), H)),
        # per-sample lane reduce / broadcast matrices for InstanceNorm
        "ls2": bf(ls2), "lb2": bf(ls2.T),
        "ls4": bf(ls4), "lb4": bf(ls4.T),
    }


# ---------------------------- pure-JAX reference ------------------------------

def _reference_forward(x, p):
    """XLA reference of the same forward pass (for a tolerance check)."""
    dn = ("NCHW", "OIHW", "NCHW")

    def conv(h, w, b, s):
        y = lax.conv_general_dilated(h, w, (s, s), ((1, 1), (1, 1)),
                                     dimension_numbers=dn)
        return y + b.reshape(1, -1, 1, 1)

    def tconv(h, w, b):   # ConvTranspose2d(k=3, s=2, p=1, op=1)
        wf = jnp.transpose(w, (1, 0, 2, 3))[:, :, ::-1, ::-1]
        y = lax.conv_general_dilated(h, wf, (1, 1), ((1, 2), (1, 2)),
                                     lhs_dilation=(2, 2), dimension_numbers=dn)
        return y + b.reshape(1, -1, 1, 1)

    def inorm_prelu(h, alpha):
        m = h.mean(axis=(2, 3), keepdims=True)
        v = ((h - m) ** 2).mean(axis=(2, 3), keepdims=True)
        hn = (h - m) / jnp.sqrt(v + 1e-5)
        return jnp.where(hn >= 0, hn, alpha * hn)

    x0 = inorm_prelu(conv(x, p["down0"]["w"], p["down0"]["b"], 2), p["down0"]["alpha"])
    x1 = inorm_prelu(conv(x0, p["down1"]["w"], p["down1"]["b"], 2), p["down1"]["alpha"])
    xn = inorm_prelu(conv(x1, p["neck"]["w"], p["neck"]["b"], 1), p["neck"]["alpha"])
    xu = inorm_prelu(tconv(jnp.concatenate([x1, xn], 1), p["up0"]["w"], p["up0"]["b"]),
                     p["up0"]["alpha"])
    out = tconv(xu, p["side0"]["w"], p["side0"]["b"])
    return out + tconv(jnp.concatenate([x0, xu], 1), p["up1"]["w"], p["up1"]["b"])


# ----------------------------------- main -------------------------------------

if __name__ == "__main__":
    key = jax.random.PRNGKey(0)
    k_x, k_p = jax.random.split(key)

    N, C_IN, H, W = 8, 4, 16, 16
    CHANNELS, C_OUT = (8, 16, 32), 4
    BATCH_BLOCK = 4     # samples folded into the lane axis per grid step (grid = 2 steps)

    x = jax.random.normal(k_x, (N, C_IN, H, W), jnp.float32)
    params = init_params(k_p, C_IN, C_OUT, CHANNELS)
    kparams = prepare_params(params, CHANNELS, C_IN, C_OUT, H, W, BATCH_BLOCK)

    fwd = jax.jit(dsunet_forward)
    y = fwd(x, kparams)
    jax.block_until_ready(y)

    assert y.shape == (N, C_OUT, H, W), y.shape
    assert bool(jnp.all(jnp.isfinite(y)))

    # Correctness vs. a pure-JAX/XLA reference (loose tolerance: both paths use
    # single-pass bf16 MXU matmuls at default precision).
    y_ref = jax.jit(_reference_forward)(x, params)
    jax.block_until_ready(y_ref)
    max_err = float(jnp.max(jnp.abs(y - y_ref)))
    assert bool(jnp.allclose(y, y_ref, rtol=5e-2, atol=5e-2)), max_err

    print("KERNEL_OK")
</pallas_src>

<mosaic_0001>
module attributes {stable_mosaic.version = 11 : i64} {
  func.func @_dsunet_kernel(%arg0: i32, %arg1: memref<4xf32, #tpu.memory_space<smem>>, %arg2: memref<1x64x64xf32, #tpu.memory_space<vmem>>, %arg3: memref<3x64x64xbf16, #tpu.memory_space<vmem>>, %arg4: memref<3x64x32xbf16, #tpu.memory_space<vmem>>, %arg5: memref<64x1xf32, #tpu.memory_space<vmem>>, %arg6: memref<64x64xbf16, #tpu.memory_space<vmem>>, %arg7: memref<3x64x64xbf16, #tpu.memory_space<vmem>>, %arg8: memref<3x32x16xbf16, #tpu.memory_space<vmem>>, %arg9: memref<64x1xf32, #tpu.memory_space<vmem>>, %arg10: memref<64x64xbf16, #tpu.memory_space<vmem>>, %arg11: memref<3x128x64xbf16, #tpu.memory_space<vmem>>, %arg12: memref<3x16x16xbf16, #tpu.memory_space<vmem>>, %arg13: memref<128x1xf32, #tpu.memory_space<vmem>>, %arg14: memref<128x128xbf16, #tpu.memory_space<vmem>>, %arg15: memref<3x64x64xbf16, #tpu.memory_space<vmem>>, %arg16: memref<3x64x128xbf16, #tpu.memory_space<vmem>>, %arg17: memref<3x16x32xbf16, #tpu.memory_space<vmem>>, %arg18: memref<64x1xf32, #tpu.memory_space<vmem>>, %arg19: memref<64x64xbf16, #tpu.memory_space<vmem>>, %arg20: memref<3x64x64xbf16, #tpu.memory_space<vmem>>, %arg21: memref<3x64x64xbf16, #tpu.memory_space<vmem>>, %arg22: memref<3x32x64xbf16, #tpu.memory_space<vmem>>, %arg23: memref<64x1xf32, #tpu.memory_space<vmem>>, %arg24: memref<32x4xbf16, #tpu.memory_space<vmem>>, %arg25: memref<4x32xbf16, #tpu.memory_space<vmem>>, %arg26: memref<16x4xbf16, #tpu.memory_space<vmem>>, %arg27: memref<4x16xbf16, #tpu.memory_space<vmem>>, %arg28: memref<1x64x64xf32, #tpu.memory_space<vmem>>) attributes {dimension_semantics = [#tpu.dimension_semantics<parallel>], iteration_bounds = array<i64: 2>, scalar_prefetch = 0 : i64, scratch_operands = 0 : i64, tpu.core_type = #tpu.core_type<tc>, window_params = [{transform_indices = @transform_0, window_bounds = array<i64: 4>}, {transform_indices = @transform_1, window_bounds = array<i64: 1, 64, 64>}, {pipeline_mode = #tpu.pipeline_mode<synchronous>, transform_indices = @transform_2, window_bounds = array<i64: 3, 64, 64>}, {pipeline_mode = #tpu.pipeline_mode<synchronous>, transform_indices = @transform_3, window_bounds = array<i64: 3, 64, 32>}, {pipeline_mode = #tpu.pipeline_mode<synchronous>, transform_indices = @transform_4, window_bounds = array<i64: 64, 1>}, {pipeline_mode = #tpu.pipeline_mode<synchronous>, transform_indices = @transform_5, window_bounds = array<i64: 64, 64>}, {pipeline_mode = #tpu.pipeline_mode<synchronous>, transform_indices = @transform_6, window_bounds = array<i64: 3, 64, 64>}, {pipeline_mode = #tpu.pipeline_mode<synchronous>, transform_indices = @transform_7, window_bounds = array<i64: 3, 32, 16>}, {pipeline_mode = #tpu.pipeline_mode<synchronous>, transform_indices = @transform_8, window_bounds = array<i64: 64, 1>}, {pipeline_mode = #tpu.pipeline_mode<synchronous>, transform_indices = @transform_9, window_bounds = array<i64: 64, 64>}, {pipeline_mode = #tpu.pipeline_mode<synchronous>, transform_indices = @transform_10, window_bounds = array<i64: 3, 128, 64>}, {pipeline_mode = #tpu.pipeline_mode<synchronous>, transform_indices = @transform_11, window_bounds = array<i64: 3, 16, 16>}, {pipeline_mode = #tpu.pipeline_mode<synchronous>, transform_indices = @transform_12, window_bounds = array<i64: 128, 1>}, {pipeline_mode = #tpu.pipeline_mode<synchronous>, transform_indices = @transform_13, window_bounds = array<i64: 128, 128>}, {pipeline_mode = #tpu.pipeline_mode<synchronous>, transform_indices = @transform_14, window_bounds = array<i64: 3, 64, 64>}, {pipeline_mode = #tpu.pipeline_mode<synchronous>, transform_indices = @transform_15, window_bounds = array<i64: 3, 64, 128>}, {pipeline_mode = #tpu.pipeline_mode<synchronous>, transform_indices = @transform_16, window_bounds = array<i64: 3, 16, 32>}, {pipeline_mode = #tpu.pipeline_mode<synchronous>, transform_indices = @transform_17, window_bounds = array<i64: 64, 1>}, {pipeline_mode = #tpu.pipeline_mode<synchronous>, transform_indices = @transform_18, window_bounds = array<i64: 64, 64>}, {pipeline_mode = #tpu.pipeline_mode<synchronous>, transform_indices = @transform_19, window_bounds = array<i64: 3, 64, 64>}, {pipeline_mode = #tpu.pipeline_mode<synchronous>, transform_indices = @transform_20, window_bounds = array<i64: 3, 64, 64>}, {pipeline_mode = #tpu.pipeline_mode<synchronous>, transform_indices = @transform_21, window_bounds = array<i64: 3, 32, 64>}, {pipeline_mode = #tpu.pipeline_mode<synchronous>, transform_indices = @transform_22, window_bounds = array<i64: 64, 1>}, {pipeline_mode = #tpu.pipeline_mode<synchronous>, transform_indices = @transform_23, window_bounds = array<i64: 32, 4>}, {pipeline_mode = #tpu.pipeline_mode<synchronous>, transform_indices = @transform_24, window_bounds = array<i64: 4, 32>}, {pipeline_mode = #tpu.pipeline_mode<synchronous>, transform_indices = @transform_25, window_bounds = array<i64: 16, 4>}, {pipeline_mode = #tpu.pipeline_mode<synchronous>, transform_indices = @transform_26, window_bounds = array<i64: 4, 16>}, {transform_indices = @transform_27, window_bounds = array<i64: 1, 64, 64>}]} {
    %c0 = arith.constant 0 : index
    %c0_0 = arith.constant 0 : index
    %c0_1 = arith.constant 0 : index
    %0 = vector.load %arg2[%c0, %c0_0, %c0_1] : memref<1x64x64xf32, #tpu.memory_space<vmem>>, vector<1x64x64xf32>
    %1 = vector.shape_cast %0 : vector<1x64x64xf32> to vector<64x64xf32>
    %c0_2 = arith.constant 0 : index
    %c0_3 = arith.constant 0 : index
    %c0_4 = arith.constant 0 : index
    %2 = vector.load %arg3[%c0_2, %c0_3, %c0_4] : memref<3x64x64xbf16, #tpu.memory_space<vmem>>, vector<1x64x64xbf16>
    %3 = vector.shape_cast %2 : vector<1x64x64xbf16> to vector<64x64xbf16>
    %4 = arith.truncf %1 : vector<64x64xf32> to vector<64x64xbf16>
    %cst = arith.constant dense<0.000000e+00> : vector<64x64xf32>
    %5 = tpu.matmul %3, %4, %cst {dimension_numbers = #tpu.dot_dimension_numbers<[1], [0], [0], [1], [0, 0, 1, 1], [], []>} : vector<64x64xbf16>, vector<64x64xbf16>, vector<64x64xf32> -> vector<64x64xf32>
    %c0_5 = arith.constant 0 : index
    %c0_6 = arith.constant 0 : index
    %c0_7 = arith.constant 0 : index
    %6 = vector.load %arg4[%c0_5, %c0_6, %c0_7] : memref<3x64x32xbf16, #tpu.memory_space<vmem>>, vector<1x64x32xbf16>
    %7 = vector.shape_cast %6 : vector<1x64x32xbf16> to vector<64x32xbf16>
    %8 = arith.truncf %5 : vector<64x64xf32> to vector<64x64xbf16>
    %cst_8 = arith.constant dense<0.000000e+00> : vector<64x32xf32>
    %9 = tpu.matmul %8, %7, %cst_8 {dimension_numbers = #tpu.dot_dimension_numbers<[1], [0], [0], [1], [0, 0, 1, 1], [], []>} : vector<64x64xbf16>, vector<64x32xbf16>, vector<64x32xf32> -> vector<64x32xf32>
    %c1 = arith.constant 1 : index
    %c0_9 = arith.constant 0 : index
    %c0_10 = arith.constant 0 : index
    %10 = vector.load %arg3[%c1, %c0_9, %c0_10] : memref<3x64x64xbf16, #tpu.memory_space<vmem>>, vector<1x64x64xbf16>
    %11 = vector.shape_cast %10 : vector<1x64x64xbf16> to vector<64x64xbf16>
    %12 = arith.truncf %1 : vector<64x64xf32> to vector<64x64xbf16>
    %cst_11 = arith.constant dense<0.000000e+00> : vector<64x64xf32>
    %13 = tpu.matmul %11, %12, %cst_11 {dimension_numbers = #tpu.dot_dimension_numbers<[1], [0], [0], [1], [0, 0, 1, 1], [], []>} : vector<64x64xbf16>, vector<64x64xbf16>, vector<64x64xf32> -> vector<64x64xf32>
    %c1_12 = arith.constant 1 : index
    %c0_13 = arith.constant 0 : index
    %c0_14 = arith.constant 0 : index
    %14 = vector.load %arg4[%c1_12, %c0_13, %c0_14] : memref<3x64x32xbf16, #tpu.memory_space<vmem>>, vector<1x64x32xbf16>
    %15 = vector.shape_cast %14 : vector<1x64x32xbf16> to vector<64x32xbf16>
    %16 = arith.truncf %13 : vector<64x64xf32> to vector<64x64xbf16>
    %cst_15 = arith.constant dense<0.000000e+00> : vector<64x32xf32>
    %17 = tpu.matmul %16, %15, %cst_15 {dimension_numbers = #tpu.dot_dimension_numbers<[1], [0], [0], [1], [0, 0, 1, 1], [], []>} : vector<64x64xbf16>, vector<64x32xbf16>, vector<64x32xf32> -> vector<64x32xf32>
    %18 = arith.addf %9, %17 : vector<64x32xf32>
    %c2 = arith.constant 2 : index
    %c0_16 = arith.constant 0 : index
    %c0_17 = arith.constant 0 : index
    %19 = vector.load %arg3[%c2, %c0_16, %c0_17] : memref<3x64x64xbf16, #tpu.memory_space<vmem>>, vector<1x64x64xbf16>
    %20 = vector.shape_cast %19 : vector<1x64x64xbf16> to vector<64x64xbf16>
    %21 = arith.truncf %1 : vector<64x64xf32> to vector<64x64xbf16>
    %cst_18 = arith.constant dense<0.000000e+00> : vector<64x64xf32>
    %22 = tpu.matmul %20, %21, %cst_18 {dimension_numbers = #tpu.dot_dimension_numbers<[1], [0], [0], [1], [0, 0, 1, 1], [], []>} : vector<64x64xbf16>, vector<64x64xbf16>, vector<64x64xf32> -> vector<64x64xf32>
    %c2_19 = arith.constant 2 : index
    %c0_20 = arith.constant 0 : index
    %c0_21 = arith.constant 0 : index
    %23 = vector.load %arg4[%c2_19, %c0_20, %c0_21] : memref<3x64x32xbf16, #tpu.memory_space<vmem>>, vector<1x64x32xbf16>
    %24 = vector.shape_cast %23 : vector<1x64x32xbf16> to vector<64x32xbf16>
    %25 = arith.truncf %22 : vector<64x64xf32> to vector<64x64xbf16>
    %cst_22 = arith.constant dense<0.000000e+00> : vector<64x32xf32>
    %26 = tpu.matmul %25, %24, %cst_22 {dimension_numbers = #tpu.dot_dimension_numbers<[1], [0], [0], [1], [0, 0, 1, 1], [], []>} : vector<64x64xbf16>, vector<64x32xbf16>, vector<64x32xf32> -> vector<64x32xf32>
    %27 = arith.addf %18, %26 : vector<64x32xf32>
    %c0_23 = arith.constant 0 : index
    %c0_24 = arith.constant 0 : index
    %28 = vector.load %arg5[%c0_23, %c0_24] : memref<64x1xf32, #tpu.memory_space<vmem>>, vector<64x1xf32>
    %29 = vector.broadcast %28 : vector<64x1xf32> to vector<64x32xf32>
    %30 = arith.addf %27, %29 : vector<64x32xf32>
    %c0_25 = arith.constant 0 : index
    %31 = memref.load %arg1[%c0_25] : memref<4xf32, #tpu.memory_space<smem>>
    %c0_26 = arith.constant 0 : index
    %c0_27 = arith.constant 0 : index
    %32 = vector.load %arg6[%c0_26, %c0_27] : memref<64x64xbf16, #tpu.memory_space<vmem>>, vector<64x64xbf16>
    %c0_28 = arith.constant 0 : index
    %c0_29 = arith.constant 0 : index
    %33 = vector.load %arg24[%c0_28, %c0_29] : memref<32x4xbf16, #tpu.memory_space<vmem>>, vector<32x4xbf16>
    %c0_30 = arith.constant 0 : index
    %c0_31 = arith.constant 0 : index
    %34 = vector.load %arg25[%c0_30, %c0_31] : memref<4x32xbf16, #tpu.memory_space<vmem>>, vector<4x32xbf16>
    %35 = arith.truncf %30 : vector<64x32xf32> to vector<64x32xbf16>
    %cst_32 = arith.constant dense<0.000000e+00> : vector<64x4xf32>
    %36 = tpu.matmul %35, %33, %cst_32 {dimension_numbers = #tpu.dot_dimension_numbers<[1], [0], [0], [1], [0, 0, 1, 1], [], []>} : vector<64x32xbf16>, vector<32x4xbf16>, vector<64x4xf32> -> vector<64x4xf32>
    %37 = arith.truncf %36 : vector<64x4xf32> to vector<64x4xbf16>
    %cst_33 = arith.constant dense<0.000000e+00> : vector<64x4xf32>
    %38 = tpu.matmul %32, %37, %cst_33 {dimension_numbers = #tpu.dot_dimension_numbers<[1], [0], [0], [1], [0, 0, 1, 1], [], []>} : vector<64x64xbf16>, vector<64x4xbf16>, vector<64x4xf32> -> vector<64x4xf32>
    %39 = arith.truncf %38 : vector<64x4xf32> to vector<64x4xbf16>
    %cst_34 = arith.constant dense<0.000000e+00> : vector<64x32xf32>
    %40 = tpu.matmul %39, %34, %cst_34 {dimension_numbers = #tpu.dot_dimension_numbers<[1], [0], [0], [1], [0, 0, 1, 1], [], []>} : vector<64x4xbf16>, vector<4x32xbf16>, vector<64x32xf32> -> vector<64x32xf32>
    %41 = arith.subf %30, %40 : vector<64x32xf32>
    %42 = arith.mulf %41, %41 : vector<64x32xf32>
    %43 = arith.truncf %42 : vector<64x32xf32> to vector<64x32xbf16>
    %cst_35 = arith.constant dense<0.000000e+00> : vector<64x4xf32>
    %44 = tpu.matmul %43, %33, %cst_35 {dimension_numbers = #tpu.dot_dimension_numbers<[1], [0], [0], [1], [0, 0, 1, 1], [], []>} : vector<64x32xbf16>, vector<32x4xbf16>, vector<64x4xf32> -> vector<64x4xf32>
    %45 = arith.truncf %44 : vector<64x4xf32> to vector<64x4xbf16>
    %cst_36 = arith.constant dense<0.000000e+00> : vector<64x4xf32>
    %46 = tpu.matmul %32, %45, %cst_36 {dimension_numbers = #tpu.dot_dimension_numbers<[1], [0], [0], [1], [0, 0, 1, 1], [], []>} : vector<64x64xbf16>, vector<64x4xbf16>, vector<64x4xf32> -> vector<64x4xf32>
    %47 = arith.truncf %46 : vector<64x4xf32> to vector<64x4xbf16>
    %cst_37 = arith.constant dense<0.000000e+00> : vector<64x32xf32>
    %48 = tpu.matmul %47, %34, %cst_37 {dimension_numbers = #tpu.dot_dimension_numbers<[1], [0], [0], [1], [0, 0, 1, 1], [], []>} : vector<64x4xbf16>, vector<4x32xbf16>, vector<64x32xf32> -> vector<64x32xf32>
    %cst_38 = arith.constant 9.99999974E-6 : f32
    %49 = vector.broadcast %cst_38 : f32 to vector<64x32xf32>
    %50 = arith.addf %48, %49 : vector<64x32xf32>
    %51 = math.rsqrt %50 : vector<64x32xf32>
    %52 = arith.mulf %41, %51 : vector<64x32xf32>
    %cst_39 = arith.constant 0.000000e+00 : f32
    %53 = vector.broadcast %cst_39 : f32 to vector<64x32xf32>
    %54 = arith.cmpf oge, %52, %53 : vector<64x32xf32>
    %55 = vector.broadcast %31 : f32 to vector<64x32xf32>
    %56 = arith.mulf %55, %52 : vector<64x32xf32>
    %57 = arith.select %54, %52, %56 : vector<64x32xi1>, vector<64x32xf32>
    %c0_40 = arith.constant 0 : index
    %c0_41 = arith.constant 0 : index
    %c0_42 = arith.constant 0 : index
    %58 = vector.load %arg7[%c0_40, %c0_41, %c0_42] : memref<3x64x64xbf16, #tpu.memory_space<vmem>>, vector<1x64x64xbf16>
    %59 = vector.shape_cast %58 : vector<1x64x64xbf16> to vector<64x64xbf16>
    %60 = arith.truncf %57 : vector<64x32xf32> to vector<64x32xbf16>
    %cst_43 = arith.constant dense<0.000000e+00> : vector<64x32xf32>
    %61 = tpu.matmul %59, %60, %cst_43 {dimension_numbers = #tpu.dot_dimension_numbers<[1], [0], [0], [1], [0, 0, 1, 1], [], []>} : vector<64x64xbf16>, vector<64x32xbf16>, vector<64x32xf32> -> vector<64x32xf32>
    %c0_44 = arith.constant 0 : index
    %c0_45 = arith.constant 0 : index
    %c0_46 = arith.constant 0 : index
    %62 = vector.load %arg8[%c0_44, %c0_45, %c0_46] : memref<3x32x16xbf16, #tpu.memory_space<vmem>>, vector<1x32x16xbf16>
    %63 = vector.shape_cast %62 : vector<1x32x16xbf16> to vector<32x16xbf16>
    %64 = arith.truncf %61 : vector<64x32xf32> to vector<64x32xbf16>
    %cst_47 = arith.constant dense<0.000000e+00> : vector<64x16xf32>
    %65 = tpu.matmul %64, %63, %cst_47 {dimension_numbers = #tpu.dot_dimension_numbers<[1], [0], [0], [1], [0, 0, 1, 1], [], []>} : vector<64x32xbf16>, vector<32x16xbf16>, vector<64x16xf32> -> vector<64x16xf32>
    %c1_48 = arith.constant 1 : index
    %c0_49 = arith.constant 0 : index
    %c0_50 = arith.constant 0 : index
    %66 = vector.load %arg7[%c1_48, %c0_49, %c0_50] : memref<3x64x64xbf16, #tpu.memory_space<vmem>>, vector<1x64x64xbf16>
    %67 = vector.shape_cast %66 : vector<1x64x64xbf16> to vector<64x64xbf16>
    %68 = arith.truncf %57 : vector<64x32xf32> to vector<64x32xbf16>
    %cst_51 = arith.constant dense<0.000000e+00> : vector<64x32xf32>
    %69 = tpu.matmul %67, %68, %cst_51 {dimension_numbers = #tpu.dot_dimension_numbers<[1], [0], [0], [1], [0, 0, 1, 1], [], []>} : vector<64x64xbf16>, vector<64x32xbf16>, vector<64x32xf32> -> vector<64x32xf32>
    %c1_52 = arith.constant 1 : index
    %c0_53 = arith.constant 0 : index
    %c0_54 = arith.constant 0 : index
    %70 = vector.load %arg8[%c1_52, %c0_53, %c0_54] : memref<3x32x16xbf16, #tpu.memory_space<vmem>>, vector<1x32x16xbf16>
    %71 = vector.shape_cast %70 : vector<1x32x16xbf16> to vector<32x16xbf16>
    %72 = arith.truncf %69 : vector<64x32xf32> to vector<64x32xbf16>
    %cst_55 = arith.constant dense<0.000000e+00> : vector<64x16xf32>
    %73 = tpu.matmul %72, %71, %cst_55 {dimension_numbers = #tpu.dot_dimension_numbers<[1], [0], [0], [1], [0, 0, 1, 1], [], []>} : vector<64x32xbf16>, vector<32x16xbf16>, vector<64x16xf32> -> vector<64x16xf32>
    %74 = arith.addf %65, %73 : vector<64x16xf32>
    %c2_56 = arith.constant 2 : index
    %c0_57 = arith.constant 0 : index
    %c0_58 = arith.constant 0 : index
    %75 = vector.load %arg7[%c2_56, %c0_57, %c0_58] : memref<3x64x64xbf16, #tpu.memory_space<vmem>>, vector<1x64x64xbf16>
    %76 = vector.shape_cast %75 : vector<1x64x64xbf16> to vector<64x64xbf16>
    %77 = arith.truncf %57 : vector<64x32xf32> to vector<64x32xbf16>
    %cst_59 = arith.constant dense<0.000000e+00> : vector<64x32xf32>
    %78 = tpu.matmul %76, %77, %cst_59 {dimension_numbers = #tpu.dot_dimension_numbers<[1], [0], [0], [1], [0, 0, 1, 1], [], []>} : vector<64x64xbf16>, vector<64x32xbf16>, vector<64x32xf32> -> vector<64x32xf32>
    %c2_60 = arith.constant 2 : index
    %c0_61 = arith.constant 0 : index
    %c0_62 = arith.constant 0 : index
    %79 = vector.load %arg8[%c2_60, %c0_61, %c0_62] : memref<3x32x16xbf16, #tpu.memory_space<vmem>>, vector<1x32x16xbf16>
    %80 = vector.shape_cast %79 : vector<1x32x16xbf16> to vector<32x16xbf16>
    %81 = arith.truncf %78 : vector<64x32xf32> to vector<64x32xbf16>
    %cst_63 = arith.constant dense<0.000000e+00> : vector<64x16xf32>
    %82 = tpu.matmul %81, %80, %cst_63 {dimension_numbers = #tpu.dot_dimension_numbers<[1], [0], [0], [1], [0, 0, 1, 1], [], []>} : vector<64x32xbf16>, vector<32x16xbf16>, vector<64x16xf32> -> vector<64x16xf32>
    %83 = arith.addf %74, %82 : vector<64x16xf32>
    %c0_64 = arith.constant 0 : index
    %c0_65 = arith.constant 0 : index
    %84 = vector.load %arg9[%c0_64, %c0_65] : memref<64x1xf32, #tpu.memory_space<vmem>>, vector<64x1xf32>
    %85 = vector.broadcast %84 : vector<64x1xf32> to vector<64x16xf32>
    %86 = arith.addf %83, %85 : vector<64x16xf32>
    %c1_66 = arith.constant 1 : index
    %87 = memref.load %arg1[%c1_66] : memref<4xf32, #tpu.memory_space<smem>>
    %c0_67 = arith.constant 0 : index
    %c0_68 = arith.constant 0 : index
    %88 = vector.load %arg10[%c0_67, %c0_68] : memref<64x64xbf16, #tpu.memory_space<vmem>>, vector<64x64xbf16>
    %c0_69 = arith.constant 0 : index
    %c0_70 = arith.constant 0 : index
    %89 = vector.load %arg26[%c0_69, %c0_70] : memref<16x4xbf16, #tpu.memory_space<vmem>>, vector<16x4xbf16>
    %c0_71 = arith.constant 0 : index
    %c0_72 = arith.constant 0 : index
    %90 = vector.load %arg27[%c0_71, %c0_72] : memref<4x16xbf16, #tpu.memory_space<vmem>>, vector<4x16xbf16>
    %91 = arith.truncf %86 : vector<64x16xf32> to vector<64x16xbf16>
    %cst_73 = arith.constant dense<0.000000e+00> : vector<64x4xf32>
    %92 = tpu.matmul %91, %89, %cst_73 {dimension_numbers = #tpu.dot_dimension_numbers<[1], [0], [0], [1], [0, 0, 1, 1], [], []>} : vector<64x16xbf16>, vector<16x4xbf16>, vector<64x4xf32> -> vector<64x4xf32>
    %93 = arith.truncf %92 : vector<64x4xf32> to vector<64x4xbf16>
    %cst_74 = arith.constant dense<0.000000e+00> : vector<64x4xf32>
    %94 = tpu.matmul %88, %93, %cst_74 {dimension_numbers = #tpu.dot_dimension_numbers<[1], [0], [0], [1], [0, 0, 1, 1], [], []>} : vector<64x64xbf16>, vector<64x4xbf16>, vector<64x4xf32> -> vector<64x4xf32>
    %95 = arith.truncf %94 : vector<64x4xf32> to vector<64x4xbf16>
    %cst_75 = arith.constant dense<0.000000e+00> : vector<64x16xf32>
    %96 = tpu.matmul %95, %90, %cst_75 {dimension_numbers = #tpu.dot_dimension_numbers<[1], [0], [0], [1], [0, 0, 1, 1], [], []>} : vector<64x4xbf16>, vector<4x16xbf16>, vector<64x16xf32> -> vector<64x16xf32>
    %97 = arith.subf %86, %96 : vector<64x16xf32>
    %98 = arith.mulf %97, %97 : vector<64x16xf32>
    %99 = arith.truncf %98 : vector<64x16xf32> to vector<64x16xbf16>
    %cst_76 = arith.constant dense<0.000000e+00> : vector<64x4xf32>
    %100 = tpu.matmul %99, %89, %cst_76 {dimension_numbers = #tpu.dot_dimension_numbers<[1], [0], [0], [1], [0, 0, 1, 1], [], []>} : vector<64x16xbf16>, vector<16x4xbf16>, vector<64x4xf32> -> vector<64x4xf32>
    %101 = arith.truncf %100 : vector<64x4xf32> to vector<64x4xbf16>
    %cst_77 = arith.constant dense<0.000000e+00> : vector<64x4xf32>
    %102 = tpu.matmul %88, %101, %cst_77 {dimension_numbers = #tpu.dot_dimension_numbers<[1], [0], [0], [1], [0, 0, 1, 1], [], []>} : vector<64x64xbf16>, vector<64x4xbf16>, vector<64x4xf32> -> vector<64x4xf32>
    %103 = arith.truncf %102 : vector<64x4xf32> to vector<64x4xbf16>
    %cst_78 = arith.constant dense<0.000000e+00> : vector<64x16xf32>
    %104 = tpu.matmul %103, %90, %cst_78 {dimension_numbers = #tpu.dot_dimension_numbers<[1], [0], [0], [1], [0, 0, 1, 1], [], []>} : vector<64x4xbf16>, vector<4x16xbf16>, vector<64x16xf32> -> vector<64x16xf32>
    %cst_79 = arith.constant 9.99999974E-6 : f32
    %105 = vector.broadcast %cst_79 : f32 to vector<64x16xf32>
    %106 = arith.addf %104, %105 : vector<64x16xf32>
    %107 = math.rsqrt %106 : vector<64x16xf32>
    %108 = arith.mulf %97, %107 : vector<64x16xf32>
    %cst_80 = arith.constant 0.000000e+00 : f32
    %109 = vector.broadcast %cst_80 : f32 to vector<64x16xf32>
    %110 = arith.cmpf oge, %108, %109 : vector<64x16xf32>
    %111 = vector.broadcast %87 : f32 to vector<64x16xf32>
    %112 = arith.mulf %111, %108 : vector<64x16xf32>
    %113 = arith.select %110, %108, %112 : vector<64x16xi1>, vector<64x16xf32>
    %c0_81 = arith.constant 0 : index
    %c0_82 = arith.constant 0 : index
    %c0_83 = arith.constant 0 : index
    %114 = vector.load %arg11[%c0_81, %c0_82, %c0_83] : memref<3x128x64xbf16, #tpu.memory_space<vmem>>, vector<1x128x64xbf16>
    %115 = vector.shape_cast %114 : vector<1x128x64xbf16> to vector<128x64xbf16>
    %116 = arith.truncf %113 : vector<64x16xf32> to vector<64x16xbf16>
    %cst_84 = arith.constant dense<0.000000e+00> : vector<128x16xf32>
    %117 = tpu.matmul %115, %116, %cst_84 {dimension_numbers = #tpu.dot_dimension_numbers<[1], [0], [0], [1], [0, 0, 1, 1], [], []>} : vector<128x64xbf16>, vector<64x16xbf16>, vector<128x16xf32> -> vector<128x16xf32>
    %c0_85 = arith.constant 0 : index
    %c0_86 = arith.constant 0 : index
    %c0_87 = arith.constant 0 : index
    %118 = vector.load %arg12[%c0_85, %c0_86, %c0_87] : memref<3x16x16xbf16, #tpu.memory_space<vmem>>, vector<1x16x16xbf16>
    %119 = vector.shape_cast %118 : vector<1x16x16xbf16> to vector<16x16xbf16>
    %120 = arith.truncf %117 : vector<128x16xf32> to vector<128x16xbf16>
    %cst_88 = arith.constant dense<0.000000e+00> : vector<128x16xf32>
    %121 = tpu.matmul %120, %119, %cst_88 {dimension_numbers = #tpu.dot_dimension_numbers<[1], [0], [0], [1], [0, 0, 1, 1], [], []>} : vector<128x16xbf16>, vector<16x16xbf16>, vector<128x16xf32> -> vector<128x16xf32>
    %c1_89 = arith.constant 1 : index
    %c0_90 = arith.constant 0 : index
    %c0_91 = arith.constant 0 : index
    %122 = vector.load %arg11[%c1_89, %c0_90, %c0_91] : memref<3x128x64xbf16, #tpu.memory_space<vmem>>, vector<1x128x64xbf16>
    %123 = vector.shape_cast %122 : vector<1x128x64xbf16> to vector<128x64xbf16>
    %124 = arith.truncf %113 : vector<64x16xf32> to vector<64x16xbf16>
    %cst_92 = arith.constant dense<0.000000e+00> : vector<128x16xf32>
    %125 = tpu.matmul %123, %124, %cst_92 {dimension_numbers = #tpu.dot_dimension_numbers<[1], [0], [0], [1], [0, 0, 1, 1], [], []>} : vector<128x64xbf16>, vector<64x16xbf16>, vector<128x16xf32> -> vector<128x16xf32>
    %c1_93 = arith.constant 1 : index
    %c0_94 = arith.constant 0 : index
    %c0_95 = arith.constant 0 : index
    %126 = vector.load %arg12[%c1_93, %c0_94, %c0_95] : memref<3x16x16xbf16, #tpu.memory_space<vmem>>, vector<1x16x16xbf16>
    %127 = vector.shape_cast %126 : vector<1x16x16xbf16> to vector<16x16xbf16>
    %128 = arith.truncf %125 : vector<128x16xf32> to vector<128x16xbf16>
    %cst_96 = arith.constant dense<0.000000e+00> : vector<128x16xf32>
    %129 = tpu.matmul %128, %127, %cst_96 {dimension_numbers = #tpu.dot_dimension_numbers<[1], [0], [0], [1], [0, 0, 1, 1], [], []>} : vector<128x16xbf16>, vector<16x16xbf16>, vector<128x16xf32> -> vector<128x16xf32>
    %130 = arith.addf %121, %129 : vector<128x16xf32>
    %c2_97 = arith.constant 2 : index
    %c0_98 = arith.constant 0 : index
    %c0_99 = arith.constant 0 : index
    %131 = vector.load %arg11[%c2_97, %c0_98, %c0_99] : memref<3x128x64xbf16, #tpu.memory_space<vmem>>, vector<1x128x64xbf16>
    %132 = vector.shape_cast %131 : vector<1x128x64xbf16> to vector<128x64xbf16>
    %133 = arith.truncf %113 : vector<64x16xf32> to vector<64x16xbf16>
    %cst_100 = arith.constant dense<0.000000e+00> : vector<128x16xf32>
    %134 = tpu.matmul %132, %133, %cst_100 {dimension_numbers = #tpu.dot_dimension_numbers<[1], [0], [0], [1], [0, 0, 1, 1], [], []>} : vector<128x64xbf16>, vector<64x16xbf16>, vector<128x16xf32> -> vector<128x16xf32>
    %c2_101 = arith.constant 2 : index
    %c0_102 = arith.constant 0 : index
    %c0_103 = arith.constant 0 : index
    %135 = vector.load %arg12[%c2_101, %c0_102, %c0_103] : memref<3x16x16xbf16, #tpu.memory_space<vmem>>, vector<1x16x16xbf16>
    %136 = vector.shape_cast %135 : vector<1x16x16xbf16> to vector<16x16xbf16>
    %137 = arith.truncf %134 : vector<128x16xf32> to vector<128x16xbf16>
    %cst_104 = arith.constant dense<0.000000e+00> : vector<128x16xf32>
    %138 = tpu.matmul %137, %136, %cst_104 {dimension_numbers = #tpu.dot_dimension_numbers<[1], [0], [0], [1], [0, 0, 1, 1], [], []>} : vector<128x16xbf16>, vector<16x16xbf16>, vector<128x16xf32> -> vector<128x16xf32>
    %139 = arith.addf %130, %138 : vector<128x16xf32>
    %c0_105 = arith.constant 0 : index
    %c0_106 = arith.constant 0 : index
    %140 = vector.load %arg13[%c0_105, %c0_106] : memref<128x1xf32, #tpu.memory_space<vmem>>, vector<128x1xf32>
    %141 = vector.broadcast %140 : vector<128x1xf32> to vector<128x16xf32>
    %142 = arith.addf %139, %141 : vector<128x16xf32>
    %c2_107 = arith.constant 2 : index
    %143 = memref.load %arg1[%c2_107] : memref<4xf32, #tpu.memory_space<smem>>
    %c0_108 = arith.constant 0 : index
    %c0_109 = arith.constant 0 : index
    %144 = vector.load %arg14[%c0_108, %c0_109] : memref<128x128xbf16, #tpu.memory_space<vmem>>, vector<128x128xbf16>
    %c0_110 = arith.constant 0 : index
    %c0_111 = arith.constant 0 : index
    %145 = vector.load %arg26[%c0_110, %c0_111] : memref<16x4xbf16, #tpu.memory_space<vmem>>, vector<16x4xbf16>
    %c0_112 = arith.constant 0 : index
    %c0_113 = arith.constant 0 : index
    %146 = vector.load %arg27[%c0_112, %c0_113] : memref<4x16xbf16, #tpu.memory_space<vmem>>, vector<4x16xbf16>
    %147 = arith.truncf %142 : vector<128x16xf32> to vector<128x16xbf16>
    %cst_114 = arith.constant dense<0.000000e+00> : vector<128x4xf32>
    %148 = tpu.matmul %147, %145, %cst_114 {dimension_numbers = #tpu.dot_dimension_numbers<[1], [0], [0], [1], [0, 0, 1, 1], [], []>} : vector<128x16xbf16>, vector<16x4xbf16>, vector<128x4xf32> -> vector<128x4xf32>
    %149 = arith.truncf %148 : vector<128x4xf32> to vector<128x4xbf16>
    %cst_115 = arith.constant dense<0.000000e+00> : vector<128x4xf32>
    %150 = tpu.matmul %144, %149, %cst_115 {dimension_numbers = #tpu.dot_dimension_numbers<[1], [0], [0], [1], [0, 0, 1, 1], [], []>} : vector<128x128xbf16>, vector<128x4xbf16>, vector<128x4xf32> -> vector<128x4xf32>
    %151 = arith.truncf %150 : vector<128x4xf32> to vector<128x4xbf16>
    %cst_116 = arith.constant dense<0.000000e+00> : vector<128x16xf32>
    %152 = tpu.matmul %151, %146, %cst_116 {dimension_numbers = #tpu.dot_dimension_numbers<[1], [0], [0], [1], [0, 0, 1, 1], [], []>} : vector<128x4xbf16>, vector<4x16xbf16>, vector<128x16xf32> -> vector<128x16xf32>
    %153 = arith.subf %142, %152 : vector<128x16xf32>
    %154 = arith.mulf %153, %153 : vector<128x16xf32>
    %155 = arith.truncf %154 : vector<128x16xf32> to vector<128x16xbf16>
    %cst_117 = arith.constant dense<0.000000e+00> : vector<128x4xf32>
    %156 = tpu.matmul %155, %145, %cst_117 {dimension_numbers = #tpu.dot_dimension_numbers<[1], [0], [0], [1], [0, 0, 1, 1], [], []>} : vector<128x16xbf16>, vector<16x4xbf16>, vector<128x4xf32> -> vector<128x4xf32>
    %157 = arith.truncf %156 : vector<128x4xf32> to vector<128x4xbf16>
    %cst_118 = arith.constant dense<0.000000e+00> : vector<128x4xf32>
    %158 = tpu.matmul %144, %157, %cst_118 {dimension_numbers = #tpu.dot_dimension_numbers<[1], [0], [0], [1], [0, 0, 1, 1], [], []>} : vector<128x128xbf16>, vector<128x4xbf16>, vector<128x4xf32> -> vector<128x4xf32>
    %159 = arith.truncf %158 : vector<128x4xf32> to vector<128x4xbf16>
    %cst_119 = arith.constant dense<0.000000e+00> : vector<128x16xf32>
    %160 = tpu.matmul %159, %146, %cst_119 {dimension_numbers = #tpu.dot_dimension_numbers<[1], [0], [0], [1], [0, 0, 1, 1], [], []>} : vector<128x4xbf16>, vector<4x16xbf16>, vector<128x16xf32> -> vector<128x16xf32>
    %cst_120 = arith.constant 9.99999974E-6 : f32
    %161 = vector.broadcast %cst_120 : f32 to vector<128x16xf32>
    %162 = arith.addf %160, %161 : vector<128x16xf32>
    %163 = math.rsqrt %162 : vector<128x16xf32>
    %164 = arith.mulf %153, %163 : vector<128x16xf32>
    %cst_121 = arith.constant 0.000000e+00 : f32
    %165 = vector.broadcast %cst_121 : f32 to vector<128x16xf32>
    %166 = arith.cmpf oge, %164, %165 : vector<128x16xf32>
    %167 = vector.broadcast %143 : f32 to vector<128x16xf32>
    %168 = arith.mulf %167, %164 : vector<128x16xf32>
    %169 = arith.select %166, %164, %168 : vector<128x16xi1>, vector<128x16xf32>
    %c0_122 = arith.constant 0 : index
    %c0_123 = arith.constant 0 : index
    %c0_124 = arith.constant 0 : index
    %170 = vector.load %arg15[%c0_122, %c0_123, %c0_124] : memref<3x64x64xbf16, #tpu.memory_space<vmem>>, vector<1x64x64xbf16>
    %171 = vector.shape_cast %170 : vector<1x64x64xbf16> to vector<64x64xbf16>
    %172 = arith.truncf %113 : vector<64x16xf32> to vector<64x16xbf16>
    %cst_125 = arith.constant dense<0.000000e+00> : vector<64x16xf32>
    %173 = tpu.matmul %171, %172, %cst_125 {dimension_numbers = #tpu.dot_dimension_numbers<[1], [0], [0], [1], [0, 0, 1, 1], [], []>} : vector<64x64xbf16>, vector<64x16xbf16>, vector<64x16xf32> -> vector<64x16xf32>
    %c0_126 = arith.constant 0 : index
    %c0_127 = arith.constant 0 : index
    %c0_128 = arith.constant 0 : index
    %174 = vector.load %arg16[%c0_126, %c0_127, %c0_128] : memref<3x64x128xbf16, #tpu.memory_space<vmem>>, vector<1x64x128xbf16>
    %175 = vector.shape_cast %174 : vector<1x64x128xbf16> to vector<64x128xbf16>
    %176 = arith.truncf %169 : vector<128x16xf32> to vector<128x16xbf16>
    %cst_129 = arith.constant dense<0.000000e+00> : vector<64x16xf32>
    %177 = tpu.matmul %175, %176, %cst_129 {dimension_numbers = #tpu.dot_dimension_numbers<[1], [0], [0], [1], [0, 0, 1, 1], [], []>} : vector<64x128xbf16>, vector<128x16xbf16>, vector<64x16xf32> -> vector<64x16xf32>
    %178 = arith.addf %173, %177 : vector<64x16xf32>
    %c0_130 = arith.constant 0 : index
    %c0_131 = arith.constant 0 : index
    %c0_132 = arith.constant 0 : index
    %179 = vector.load %arg17[%c0_130, %c0_131, %c0_132] : memref<3x16x32xbf16, #tpu.memory_space<vmem>>, vector<1x16x32xbf16>
    %180 = vector.shape_cast %179 : vector<1x16x32xbf16> to vector<16x32xbf16>
    %181 = arith.truncf %178 : vector<64x16xf32> to vector<64x16xbf16>
    %cst_133 = arith.constant dense<0.000000e+00> : vector<64x32xf32>
    %182 = tpu.matmul %181, %180, %cst_133 {dimension_numbers = #tpu.dot_dimension_numbers<[1], [0], [0], [1], [0, 0, 1, 1], [], []>} : vector<64x16xbf16>, vector<16x32xbf16>, vector<64x32xf32> -> vector<64x32xf32>
    %c1_134 = arith.constant 1 : index
    %c0_135 = arith.constant 0 : index
    %c0_136 = arith.constant 0 : index
    %183 = vector.load %arg15[%c1_134, %c0_135, %c0_136] : memref<3x64x64xbf16, #tpu.memory_space<vmem>>, vector<1x64x64xbf16>
    %184 = vector.shape_cast %183 : vector<1x64x64xbf16> to vector<64x64xbf16>
    %185 = arith.truncf %113 : vector<64x16xf32> to vector<64x16xbf16>
    %cst_137 = arith.constant dense<0.000000e+00> : vector<64x16xf32>
    %186 = tpu.matmul %184, %185, %cst_137 {dimension_numbers = #tpu.dot_dimension_numbers<[1], [0], [0], [1], [0, 0, 1, 1], [], []>} : vector<64x64xbf16>, vector<64x16xbf16>, vector<64x16xf32> -> vector<64x16xf32>
    %c1_138 = arith.constant 1 : index
    %c0_139 = arith.constant 0 : index
    %c0_140 = arith.constant 0 : index
    %187 = vector.load %arg16[%c1_138, %c0_139, %c0_140] : memref<3x64x128xbf16, #tpu.memory_space<vmem>>, vector<1x64x128xbf16>
    %188 = vector.shape_cast %187 : vector<1x64x128xbf16> to vector<64x128xbf16>
    %189 = arith.truncf %169 : vector<128x16xf32> to vector<128x16xbf16>
    %cst_141 = arith.constant dense<0.000000e+00> : vector<64x16xf32>
    %190 = tpu.matmul %188, %189, %cst_141 {dimension_numbers = #tpu.dot_dimension_numbers<[1], [0], [0], [1], [0, 0, 1, 1], [], []>} : vector<64x128xbf16>, vector<128x16xbf16>, vector<64x16xf32> -> vector<64x16xf32>
    %191 = arith.addf %186, %190 : vector<64x16xf32>
    %c1_142 = arith.constant 1 : index
    %c0_143 = arith.constant 0 : index
    %c0_144 = arith.constant 0 : index
    %192 = vector.load %arg17[%c1_142, %c0_143, %c0_144] : memref<3x16x32xbf16, #tpu.memory_space<vmem>>, vector<1x16x32xbf16>
    %193 = vector.shape_cast %192 : vector<1x16x32xbf16> to vector<16x32xbf16>
    %194 = arith.truncf %191 : vector<64x16xf32> to vector<64x16xbf16>
    %cst_145 = arith.constant dense<0.000000e+00> : vector<64x32xf32>
    %195 = tpu.matmul %194, %193, %cst_145 {dimension_numbers = #tpu.dot_dimension_numbers<[1], [0], [0], [1], [0, 0, 1, 1], [], []>} : vector<64x16xbf16>, vector<16x32xbf16>, vector<64x32xf32> -> vector<64x32xf32>
    %196 = arith.addf %182, %195 : vector<64x32xf32>
    %c2_146 = arith.constant 2 : index
    %c0_147 = arith.constant 0 : index
    %c0_148 = arith.constant 0 : index
    %197 = vector.load %arg15[%c2_146, %c0_147, %c0_148] : memref<3x64x64xbf16, #tpu.memory_space<vmem>>, vector<1x64x64xbf16>
    %198 = vector.shape_cast %197 : vector<1x64x64xbf16> to vector<64x64xbf16>
    %199 = arith.truncf %113 : vector<64x16xf32> to vector<64x16xbf16>
    %cst_149 = arith.constant dense<0.000000e+00> : vector<64x16xf32>
    %200 = tpu.matmul %198, %199, %cst_149 {dimension_numbers = #tpu.dot_dimension_numbers<[1], [0], [0], [1], [0, 0, 1, 1], [], []>} : vector<64x64xbf16>, vector<64x16xbf16>, vector<64x16xf32> -> vector<64x16xf32>
    %c2_150 = arith.constant 2 : index
    %c0_151 = arith.constant 0 : index
    %c0_152 = arith.constant 0 : index
    %201 = vector.load %arg16[%c2_150, %c0_151, %c0_152] : memref<3x64x128xbf16, #tpu.memory_space<vmem>>, vector<1x64x128xbf16>
    %202 = vector.shape_cast %201 : vector<1x64x128xbf16> to vector<64x128xbf16>
    %203 = arith.truncf %169 : vector<128x16xf32> to vector<128x16xbf16>
    %cst_153 = arith.constant dense<0.000000e+00> : vector<64x16xf32>
    %204 = tpu.matmul %202, %203, %cst_153 {dimension_numbers = #tpu.dot_dimension_numbers<[1], [0], [0], [1], [0, 0, 1, 1], [], []>} : vector<64x128xbf16>, vector<128x16xbf16>, vector<64x16xf32> -> vector<64x16xf32>
    %205 = arith.addf %200, %204 : vector<64x16xf32>
    %c2_154 = arith.constant 2 : index
    %c0_155 = arith.constant 0 : index
    %c0_156 = arith.constant 0 : index
    %206 = vector.load %arg17[%c2_154, %c0_155, %c0_156] : memref<3x16x32xbf16, #tpu.memory_space<vmem>>, vector<1x16x32xbf16>
    %207 = vector.shape_cast %206 : vector<1x16x32xbf16> to vector<16x32xbf16>
    %208 = arith.truncf %205 : vector<64x16xf32> to vector<64x16xbf16>
    %cst_157 = arith.constant dense<0.000000e+00> : vector<64x32xf32>
    %209 = tpu.matmul %208, %207, %cst_157 {dimension_numbers = #tpu.dot_dimension_numbers<[1], [0], [0], [1], [0, 0, 1, 1], [], []>} : vector<64x16xbf16>, vector<16x32xbf16>, vector<64x32xf32> -> vector<64x32xf32>
    %210 = arith.addf %196, %209 : vector<64x32xf32>
    %c0_158 = arith.constant 0 : index
    %c0_159 = arith.constant 0 : index
    %211 = vector.load %arg18[%c0_158, %c0_159] : memref<64x1xf32, #tpu.memory_space<vmem>>, vector<64x1xf32>
    %212 = vector.broadcast %211 : vector<64x1xf32> to vector<64x32xf32>
    %213 = arith.addf %210, %212 : vector<64x32xf32>
    %c3 = arith.constant 3 : index
    %214 = memref.load %arg1[%c3] : memref<4xf32, #tpu.memory_space<smem>>
    %c0_160 = arith.constant 0 : index
    %c0_161 = arith.constant 0 : index
    %215 = vector.load %arg19[%c0_160, %c0_161] : memref<64x64xbf16, #tpu.memory_space<vmem>>, vector<64x64xbf16>
    %c0_162 = arith.constant 0 : index
    %c0_163 = arith.constant 0 : index
    %216 = vector.load %arg24[%c0_162, %c0_163] : memref<32x4xbf16, #tpu.memory_space<vmem>>, vector<32x4xbf16>
    %c0_164 = arith.constant 0 : index
    %c0_165 = arith.constant 0 : index
    %217 = vector.load %arg25[%c0_164, %c0_165] : memref<4x32xbf16, #tpu.memory_space<vmem>>, vector<4x32xbf16>
    %218 = arith.truncf %213 : vector<64x32xf32> to vector<64x32xbf16>
    %cst_166 = arith.constant dense<0.000000e+00> : vector<64x4xf32>
    %219 = tpu.matmul %218, %216, %cst_166 {dimension_numbers = #tpu.dot_dimension_numbers<[1], [0], [0], [1], [0, 0, 1, 1], [], []>} : vector<64x32xbf16>, vector<32x4xbf16>, vector<64x4xf32> -> vector<64x4xf32>
    %220 = arith.truncf %219 : vector<64x4xf32> to vector<64x4xbf16>
    %cst_167 = arith.constant dense<0.000000e+00> : vector<64x4xf32>
    %221 = tpu.matmul %215, %220, %cst_167 {dimension_numbers = #tpu.dot_dimension_numbers<[1], [0], [0], [1], [0, 0, 1, 1], [], []>} : vector<64x64xbf16>, vector<64x4xbf16>, vector<64x4xf32> -> vector<64x4xf32>
    %222 = arith.truncf %221 : vector<64x4xf32> to vector<64x4xbf16>
    %cst_168 = arith.constant dense<0.000000e+00> : vector<64x32xf32>
    %223 = tpu.matmul %222, %217, %cst_168 {dimension_numbers = #tpu.dot_dimension_numbers<[1], [0], [0], [1], [0, 0, 1, 1], [], []>} : vector<64x4xbf16>, vector<4x32xbf16>, vector<64x32xf32> -> vector<64x32xf32>
    %224 = arith.subf %213, %223 : vector<64x32xf32>
    %225 = arith.mulf %224, %224 : vector<64x32xf32>
    %226 = arith.truncf %225 : vector<64x32xf32> to vector<64x32xbf16>
    %cst_169 = arith.constant dense<0.000000e+00> : vector<64x4xf32>
    %227 = tpu.matmul %226, %216, %cst_169 {dimension_numbers = #tpu.dot_dimension_numbers<[1], [0], [0], [1], [0, 0, 1, 1], [], []>} : vector<64x32xbf16>, vector<32x4xbf16>, vector<64x4xf32> -> vector<64x4xf32>
    %228 = arith.truncf %227 : vector<64x4xf32> to vector<64x4xbf16>
    %cst_170 = arith.constant dense<0.000000e+00> : vector<64x4xf32>
    %229 = tpu.matmul %215, %228, %cst_170 {dimension_numbers = #tpu.dot_dimension_numbers<[1], [0], [0], [1], [0, 0, 1, 1], [], []>} : vector<64x64xbf16>, vector<64x4xbf16>, vector<64x4xf32> -> vector<64x4xf32>
    %230 = arith.truncf %229 : vector<64x4xf32> to vector<64x4xbf16>
    %cst_171 = arith.constant dense<0.000000e+00> : vector<64x32xf32>
    %231 = tpu.matmul %230, %217, %cst_171 {dimension_numbers = #tpu.dot_dimension_numbers<[1], [0], [0], [1], [0, 0, 1, 1], [], []>} : vector<64x4xbf16>, vector<4x32xbf16>, vector<64x32xf32> -> vector<64x32xf32>
    %cst_172 = arith.constant 9.99999974E-6 : f32
    %232 = vector.broadcast %cst_172 : f32 to vector<64x32xf32>
    %233 = arith.addf %231, %232 : vector<64x32xf32>
    %234 = math.rsqrt %233 : vector<64x32xf32>
    %235 = arith.mulf %224, %234 : vector<64x32xf32>
    %cst_173 = arith.constant 0.000000e+00 : f32
    %236 = vector.broadcast %cst_173 : f32 to vector<64x32xf32>
    %237 = arith.cmpf oge, %235, %236 : vector<64x32xf32>
    %238 = vector.broadcast %214 : f32 to vector<64x32xf32>
    %239 = arith.mulf %238, %235 : vector<64x32xf32>
    %240 = arith.select %237, %235, %239 : vector<64x32xi1>, vector<64x32xf32>
    %c0_174 = arith.constant 0 : index
    %c0_175 = arith.constant 0 : index
    %c0_176 = arith.constant 0 : index
    %241 = vector.load %arg20[%c0_174, %c0_175, %c0_176] : memref<3x64x64xbf16, #tpu.memory_space<vmem>>, vector<1x64x64xbf16>
    %242 = vector.shape_cast %241 : vector<1x64x64xbf16> to vector<64x64xbf16>
    %243 = arith.truncf %57 : vector<64x32xf32> to vector<64x32xbf16>
    %cst_177 = arith.constant dense<0.000000e+00> : vector<64x32xf32>
    %244 = tpu.matmul %242, %243, %cst_177 {dimension_numbers = #tpu.dot_dimension_numbers<[1], [0], [0], [1], [0, 0, 1, 1], [], []>} : vector<64x64xbf16>, vector<64x32xbf16>, vector<64x32xf32> -> vector<64x32xf32>
    %c0_178 = arith.constant 0 : index
    %c0_179 = arith.constant 0 : index
    %c0_180 = arith.constant 0 : index
    %245 = vector.load %arg21[%c0_178, %c0_179, %c0_180] : memref<3x64x64xbf16, #tpu.memory_space<vmem>>, vector<1x64x64xbf16>
    %246 = vector.shape_cast %245 : vector<1x64x64xbf16> to vector<64x64xbf16>
    %247 = arith.truncf %240 : vector<64x32xf32> to vector<64x32xbf16>
    %cst_181 = arith.constant dense<0.000000e+00> : vector<64x32xf32>
    %248 = tpu.matmul %246, %247, %cst_181 {dimension_numbers = #tpu.dot_dimension_numbers<[1], [0], [0], [1], [0, 0, 1, 1], [], []>} : vector<64x64xbf16>, vector<64x32xbf16>, vector<64x32xf32> -> vector<64x32xf32>
    %249 = arith.addf %244, %248 : vector<64x32xf32>
    %c0_182 = arith.constant 0 : index
    %c0_183 = arith.constant 0 : index
    %c0_184 = arith.constant 0 : index
    %250 = vector.load %arg22[%c0_182, %c0_183, %c0_184] : memref<3x32x64xbf16, #tpu.memory_space<vmem>>, vector<1x32x64xbf16>
    %251 = vector.shape_cast %250 : vector<1x32x64xbf16> to vector<32x64xbf16>
    %252 = arith.truncf %249 : vector<64x32xf32> to vector<64x32xbf16>
    %cst_185 = arith.constant dense<0.000000e+00> : vector<64x64xf32>
    %253 = tpu.matmul %252, %251, %cst_185 {dimension_numbers = #tpu.dot_dimension_numbers<[1], [0], [0], [1], [0, 0, 1, 1], [], []>} : vector<64x32xbf16>, vector<32x64xbf16>, vector<64x64xf32> -> vector<64x64xf32>
    %c1_186 = arith.constant 1 : index
    %c0_187 = arith.constant 0 : index
    %c0_188 = arith.constant 0 : index
    %254 = vector.load %arg20[%c1_186, %c0_187, %c0_188] : memref<3x64x64xbf16, #tpu.memory_space<vmem>>, vector<1x64x64xbf16>
    %255 = vector.shape_cast %254 : vector<1x64x64xbf16> to vector<64x64xbf16>
    %256 = arith.truncf %57 : vector<64x32xf32> to vector<64x32xbf16>
    %cst_189 = arith.constant dense<0.000000e+00> : vector<64x32xf32>
    %257 = tpu.matmul %255, %256, %cst_189 {dimension_numbers = #tpu.dot_dimension_numbers<[1], [0], [0], [1], [0, 0, 1, 1], [], []>} : vector<64x64xbf16>, vector<64x32xbf16>, vector<64x32xf32> -> vector<64x32xf32>
    %c1_190 = arith.constant 1 : index
    %c0_191 = arith.constant 0 : index
    %c0_192 = arith.constant 0 : index
    %258 = vector.load %arg21[%c1_190, %c0_191, %c0_192] : memref<3x64x64xbf16, #tpu.memory_space<vmem>>, vector<1x64x64xbf16>
    %259 = vector.shape_cast %258 : vector<1x64x64xbf16> to vector<64x64xbf16>
    %260 = arith.truncf %240 : vector<64x32xf32> to vector<64x32xbf16>
    %cst_193 = arith.constant dense<0.000000e+00> : vector<64x32xf32>
    %261 = tpu.matmul %259, %260, %cst_193 {dimension_numbers = #tpu.dot_dimension_numbers<[1], [0], [0], [1], [0, 0, 1, 1], [], []>} : vector<64x64xbf16>, vector<64x32xbf16>, vector<64x32xf32> -> vector<64x32xf32>
    %262 = arith.addf %257, %261 : vector<64x32xf32>
    %c1_194 = arith.constant 1 : index
    %c0_195 = arith.constant 0 : index
    %c0_196 = arith.constant 0 : index
    %263 = vector.load %arg22[%c1_194, %c0_195, %c0_196] : memref<3x32x64xbf16, #tpu.memory_space<vmem>>, vector<1x32x64xbf16>
    %264 = vector.shape_cast %263 : vector<1x32x64xbf16> to vector<32x64xbf16>
    %265 = arith.truncf %262 : vector<64x32xf32> to vector<64x32xbf16>
    %cst_197 = arith.constant dense<0.000000e+00> : vector<64x64xf32>
    %266 = tpu.matmul %265, %264, %cst_197 {dimension_numbers = #tpu.dot_dimension_numbers<[1], [0], [0], [1], [0, 0, 1, 1], [], []>} : vector<64x32xbf16>, vector<32x64xbf16>, vector<64x64xf32> -> vector<64x64xf32>
    %267 = arith.addf %253, %266 : vector<64x64xf32>
    %c2_198 = arith.constant 2 : index
    %c0_199 = arith.constant 0 : index
    %c0_200 = arith.constant 0 : index
    %268 = vector.load %arg20[%c2_198, %c0_199, %c0_200] : memref<3x64x64xbf16, #tpu.memory_space<vmem>>, vector<1x64x64xbf16>
    %269 = vector.shape_cast %268 : vector<1x64x64xbf16> to vector<64x64xbf16>
    %270 = arith.truncf %57 : vector<64x32xf32> to vector<64x32xbf16>
    %cst_201 = arith.constant dense<0.000000e+00> : vector<64x32xf32>
    %271 = tpu.matmul %269, %270, %cst_201 {dimension_numbers = #tpu.dot_dimension_numbers<[1], [0], [0], [1], [0, 0, 1, 1], [], []>} : vector<64x64xbf16>, vector<64x32xbf16>, vector<64x32xf32> -> vector<64x32xf32>
    %c2_202 = arith.constant 2 : index
    %c0_203 = arith.constant 0 : index
    %c0_204 = arith.constant 0 : index
    %272 = vector.load %arg21[%c2_202, %c0_203, %c0_204] : memref<3x64x64xbf16, #tpu.memory_space<vmem>>, vector<1x64x64xbf16>
    %273 = vector.shape_cast %272 : vector<1x64x64xbf16> to vector<64x64xbf16>
    %274 = arith.truncf %240 : vector<64x32xf32> to vector<64x32xbf16>
    %cst_205 = arith.constant dense<0.000000e+00> : vector<64x32xf32>
    %275 = tpu.matmul %273, %274, %cst_205 {dimension_numbers = #tpu.dot_dimension_numbers<[1], [0], [0], [1], [0, 0, 1, 1], [], []>} : vector<64x64xbf16>, vector<64x32xbf16>, vector<64x32xf32> -> vector<64x32xf32>
    %276 = arith.addf %271, %275 : vector<64x32xf32>
    %c2_206 = arith.constant 2 : index
    %c0_207 = arith.constant 0 : index
    %c0_208 = arith.constant 0 : index
    %277 = vector.load %arg22[%c2_206, %c0_207, %c0_208] : memref<3x32x64xbf16, #tpu.memory_space<vmem>>, vector<1x32x64xbf16>
    %278 = vector.shape_cast %277 : vector<1x32x64xbf16> to vector<32x64xbf16>
    %279 = arith.truncf %276 : vector<64x32xf32> to vector<64x32xbf16>
    %cst_209 = arith.constant dense<0.000000e+00> : vector<64x64xf32>
    %280 = tpu.matmul %279, %278, %cst_209 {dimension_numbers = #tpu.dot_dimension_numbers<[1], [0], [0], [1], [0, 0, 1, 1], [], []>} : vector<64x32xbf16>, vector<32x64xbf16>, vector<64x64xf32> -> vector<64x64xf32>
    %281 = arith.addf %267, %280 : vector<64x64xf32>
    %c0_210 = arith.constant 0 : index
    %c0_211 = arith.constant 0 : index
    %282 = vector.load %arg23[%c0_210, %c0_211] : memref<64x1xf32, #tpu.memory_space<vmem>>, vector<64x1xf32>
    %283 = vector.broadcast %282 : vector<64x1xf32> to vector<64x64xf32>
    %284 = arith.addf %281, %283 : vector<64x64xf32>
    %c0_212 = arith.constant 0 : index
    %c0_213 = arith.constant 0 : index
    %c0_214 = arith.constant 0 : index
    %285 = vector.load %arg28[%c0_212, %c0_213, %c0_214] : memref<1x64x64xf32, #tpu.memory_space<vmem>>, vector<1x64x64xf32>
    %286 = vector.shape_cast %285 : vector<1x64x64xf32> to vector<64x64xf32>
    %287 = vector.shape_cast %284 : vector<64x64xf32> to vector<1x64x64xf32>
    tpu.vector_store %arg28[%c0_212, %c0_213, %c0_214], %287 {strides = array<i32>} : memref<1x64x64xf32, #tpu.memory_space<vmem>>, vector<1x64x64xf32>,
    return
  }
  func.func @transform_0(%arg0: i32) -> i32 {
    %c0_i32 = arith.constant 0 : i32
    %c0_i32_0 = arith.constant 0 : i32
    return %c0_i32 : i32
  }
  func.func @transform_1(%arg0: i32) -> (i32, i32, i32) {
    %c0_i32 = arith.constant 0 : i32
    %c0_i32_0 = arith.constant 0 : i32
    %c0_i32_1 = arith.constant 0 : i32
    return %arg0, %c0_i32, %c0_i32_0 : i32, i32, i32
  }
  func.func @transform_2(%arg0: i32) -> (i32, i32, i32) {
    %c0_i32 = arith.constant 0 : i32
    %c0_i32_0 = arith.constant 0 : i32
    %c0_i32_1 = arith.constant 0 : i32
    %c0_i32_2 = arith.constant 0 : i32
    return %c0_i32, %c0_i32_0, %c0_i32_1 : i32, i32, i32
  }
  func.func @transform_3(%arg0: i32) -> (i32, i32, i32) {
    %c0_i32 = arith.constant 0 : i32
    %c0_i32_0 = arith.constant 0 : i32
    %c0_i32_1 = arith.constant 0 : i32
    %c0_i32_2 = arith.constant 0 : i32
    return %c0_i32, %c0_i32_0, %c0_i32_1 : i32, i32, i32
  }
  func.func @transform_4(%arg0: i32) -> (i32, i32) {
    %c0_i32 = arith.constant 0 : i32
    %c0_i32_0 = arith.constant 0 : i32
    %c0_i32_1 = arith.constant 0 : i32
    return %c0_i32, %c0_i32_0 : i32, i32
  }
  func.func @transform_5(%arg0: i32) -> (i32, i32) {
    %c0_i32 = arith.constant 0 : i32
    %c0_i32_0 = arith.constant 0 : i32
    %c0_i32_1 = arith.constant 0 : i32
    return %c0_i32, %c0_i32_0 : i32, i32
  }
  func.func @transform_6(%arg0: i32) -> (i32, i32, i32) {
    %c0_i32 = arith.constant 0 : i32
    %c0_i32_0 = arith.constant 0 : i32
    %c0_i32_1 = arith.constant 0 : i32
    %c0_i32_2 = arith.constant 0 : i32
    return %c0_i32, %c0_i32_0, %c0_i32_1 : i32, i32, i32
  }
  func.func @transform_7(%arg0: i32) -> (i32, i32, i32) {
    %c0_i32 = arith.constant 0 : i32
    %c0_i32_0 = arith.constant 0 : i32
    %c0_i32_1 = arith.constant 0 : i32
    %c0_i32_2 = arith.constant 0 : i32
    return %c0_i32, %c0_i32_0, %c0_i32_1 : i32, i32, i32
  }
  func.func @transform_8(%arg0: i32) -> (i32, i32) {
    %c0_i32 = arith.constant 0 : i32
    %c0_i32_0 = arith.constant 0 : i32
    %c0_i32_1 = arith.constant 0 : i32
    return %c0_i32, %c0_i32_0 : i32, i32
  }
  func.func @transform_9(%arg0: i32) -> (i32, i32) {
    %c0_i32 = arith.constant 0 : i32
    %c0_i32_0 = arith.constant 0 : i32
    %c0_i32_1 = arith.constant 0 : i32
    return %c0_i32, %c0_i32_0 : i32, i32
  }
  func.func @transform_10(%arg0: i32) -> (i32, i32, i32) {
    %c0_i32 = arith.constant 0 : i32
    %c0_i32_0 = arith.constant 0 : i32
    %c0_i32_1 = arith.constant 0 : i32
    %c0_i32_2 = arith.constant 0 : i32
    return %c0_i32, %c0_i32_0, %c0_i32_1 : i32, i32, i32
  }
  func.func @transform_11(%arg0: i32) -> (i32, i32, i32) {
    %c0_i32 = arith.constant 0 : i32
    %c0_i32_0 = arith.constant 0 : i32
    %c0_i32_1 = arith.constant 0 : i32
    %c0_i32_2 = arith.constant 0 : i32
    return %c0_i32, %c0_i32_0, %c0_i32_1 : i32, i32, i32
  }
  func.func @transform_12(%arg0: i32) -> (i32, i32) {
    %c0_i32 = arith.constant 0 : i32
    %c0_i32_0 = arith.constant 0 : i32
    %c0_i32_1 = arith.constant 0 : i32
    return %c0_i32, %c0_i32_0 : i32, i32
  }
  func.func @transform_13(%arg0: i32) -> (i32, i32) {
    %c0_i32 = arith.constant 0 : i32
    %c0_i32_0 = arith.constant 0 : i32
    %c0_i32_1 = arith.constant 0 : i32
    return %c0_i32, %c0_i32_0 : i32, i32
  }
  func.func @transform_14(%arg0: i32) -> (i32, i32, i32) {
    %c0_i32 = arith.constant 0 : i32
    %c0_i32_0 = arith.constant 0 : i32
    %c0_i32_1 = arith.constant 0 : i32
    %c0_i32_2 = arith.constant 0 : i32
    return %c0_i32, %c0_i32_0, %c0_i32_1 : i32, i32, i32
  }
  func.func @transform_15(%arg0: i32) -> (i32, i32, i32) {
    %c0_i32 = arith.constant 0 : i32
    %c0_i32_0 = arith.constant 0 : i32
    %c0_i32_1 = arith.constant 0 : i32
    %c0_i32_2 = arith.constant 0 : i32
    return %c0_i32, %c0_i32_0, %c0_i32_1 : i32, i32, i32
  }
  func.func @transform_16(%arg0: i32) -> (i32, i32, i32) {
    %c0_i32 = arith.constant 0 : i32
    %c0_i32_0 = arith.constant 0 : i32
    %c0_i32_1 = arith.constant 0 : i32
    %c0_i32_2 = arith.constant 0 : i32
    return %c0_i32, %c0_i32_0, %c0_i32_1 : i32, i32, i32
  }
  func.func @transform_17(%arg0: i32) -> (i32, i32) {
    %c0_i32 = arith.constant 0 : i32
    %c0_i32_0 = arith.constant 0 : i32
    %c0_i32_1 = arith.constant 0 : i32
    return %c0_i32, %c0_i32_0 : i32, i32
  }
  func.func @transform_18(%arg0: i32) -> (i32, i32) {
    %c0_i32 = arith.constant 0 : i32
    %c0_i32_0 = arith.constant 0 : i32
    %c0_i32_1 = arith.constant 0 : i32
    return %c0_i32, %c0_i32_0 : i32, i32
  }
  func.func @transform_19(%arg0: i32) -> (i32, i32, i32) {
    %c0_i32 = arith.constant 0 : i32
    %c0_i32_0 = arith.constant 0 : i32
    %c0_i32_1 = arith.constant 0 : i32
    %c0_i32_2 = arith.constant 0 : i32
    return %c0_i32, %c0_i32_0, %c0_i32_1 : i32, i32, i32
  }
  func.func @transform_20(%arg0: i32) -> (i32, i32, i32) {
    %c0_i32 = arith.constant 0 : i32
    %c0_i32_0 = arith.constant 0 : i32
    %c0_i32_1 = arith.constant 0 : i32
    %c0_i32_2 = arith.constant 0 : i32
    return %c0_i32, %c0_i32_0, %c0_i32_1 : i32, i32, i32
  }
  func.func @transform_21(%arg0: i32) -> (i32, i32, i32) {
    %c0_i32 = arith.constant 0 : i32
    %c0_i32_0 = arith.constant 0 : i32
    %c0_i32_1 = arith.constant 0 : i32
    %c0_i32_2 = arith.constant 0 : i32
    return %c0_i32, %c0_i32_0, %c0_i32_1 : i32, i32, i32
  }
  func.func @transform_22(%arg0: i32) -> (i32, i32) {
    %c0_i32 = arith.constant 0 : i32
    %c0_i32_0 = arith.constant 0 : i32
    %c0_i32_1 = arith.constant 0 : i32
    return %c0_i32, %c0_i32_0 : i32, i32
  }
  func.func @transform_23(%arg0: i32) -> (i32, i32) {
    %c0_i32 = arith.constant 0 : i32
    %c0_i32_0 = arith.constant 0 : i32
    %c0_i32_1 = arith.constant 0 : i32
    return %c0_i32, %c0_i32_0 : i32, i32
  }
  func.func @transform_24(%arg0: i32) -> (i32, i32) {
    %c0_i32 = arith.constant 0 : i32
    %c0_i32_0 = arith.constant 0 : i32
    %c0_i32_1 = arith.constant 0 : i32
    return %c0_i32, %c0_i32_0 : i32, i32
  }
  func.func @transform_25(%arg0: i32) -> (i32, i32) {
    %c0_i32 = arith.constant 0 : i32
    %c0_i32_0 = arith.constant 0 : i32
    %c0_i32_1 = arith.constant 0 : i32
    return %c0_i32, %c0_i32_0 : i32, i32
  }
  func.func @transform_26(%arg0: i32) -> (i32, i32) {
    %c0_i32 = arith.constant 0 : i32
    %c0_i32_0 = arith.constant 0 : i32
    %c0_i32_1 = arith.constant 0 : i32
    return %c0_i32, %c0_i32_0 : i32, i32
  }
  func.func @transform_27(%arg0: i32) -> (i32, i32, i32) {
    %c0_i32 = arith.constant 0 : i32
    %c0_i32_0 = arith.constant 0 : i32
    %c0_i32_1 = arith.constant 0 : i32
    return %arg0, %c0_i32, %c0_i32_0 : i32, i32, i32
  }
}

</mosaic_0001>

<bundles_post_ra>
// kernel: dsunet_forward.1
= control target key start
LH: loop header
LB: loop body
LE: loop exit
PB: predicated region body
PF: predicated region fallthrough
CT: control target
= control target key end

     0   :  { %s12234_s0 = inlined_call_operand.vmem [shape: f32[4], index: 0, kind: input, shape index: {}]   ;;  %s12235_s1 = inlined_call_operand.vmem [shape: f32[2,64,64], index: 1, kind: input, shape index: {}]   ;;  %s12236_s2 = inlined_call_operand.vmem [shape: bf16[3,64,64], index: 2, kind: input, shape index: {}]   ;;  %s12237_s3 = inlined_call_operand.vmem [shape: bf16[3,64,32], index: 3, kind: input, shape index: {}]   ;;  %s12238_s4 = inlined_call_operand.vmem [shape: f32[64,1], index: 4, kind: input, shape index: {}]   ;;  %s12239_s5 = inlined_call_operand.vmem [shape: bf16[64,64], index: 5, kind: input, shape index: {}]   ;;  %s12240_s6 = inlined_call_operand.vmem [shape: bf16[3,64,64], index: 6, kind: input, shape index: {}]   ;;  %s12241_s7 = inlined_call_operand.vmem [shape: bf16[3,32,16], index: 7, kind: input, shape index: {}]   ;;  %s12242_s8 = inlined_call_operand.vmem [shape: f32[64,1], index: 8, kind: input, shape index: {}]   ;;  %s12243_s9 = inlined_call_operand.vmem [shape: bf16[64,64], index: 9, kind: input, shape index: {}]   ;;  %s12244_s10 = inlined_call_operand.vmem [shape: bf16[3,128,64], index: 10, kind: input, shape index: {}]   ;;  %s12245_s11 = inlined_call_operand.vmem [shape: bf16[3,16,16], index: 11, kind: input, shape index: {}]   ;;  %s12246_s12 = inlined_call_operand.vmem [shape: f32[128,1], index: 12, kind: input, shape index: {}]   ;;  %s12247_s13 = inlined_call_operand.vmem [shape: bf16[128,128], index: 13, kind: input, shape index: {}]   ;;  %s12248_s14 = inlined_call_operand.vmem [shape: bf16[3,64,64], index: 14, kind: input, shape index: {}]   ;;  %s12249_s15 = inlined_call_operand.vmem [shape: bf16[3,64,128], index: 15, kind: input, shape index: {}]   ;;  %s12250_s16 = inlined_call_operand.vmem [shape: bf16[3,16,32], index: 16, kind: input, shape index: {}]   ;;  %s12251_s17 = inlined_call_operand.vmem [shape: f32[64,1], index: 17, kind: input, shape index: {}]   ;;  %s12252_s18 = inlined_call_operand.vmem [shape: bf16[64,64], index: 18, kind: input, shape index: {}]   ;;  %s12253_s19 = inlined_call_operand.vmem [shape: bf16[3,64,64], index: 19, kind: input, shape index: {}]   ;;  %s12254_s20 = inlined_call_operand.vmem [shape: bf16[3,64,64], index: 20, kind: input, shape index: {}]   ;;  %s12255_s21 = inlined_call_operand.vmem [shape: bf16[3,32,64], index: 21, kind: input, shape index: {}]   ;;  %s12256_s22 = inlined_call_operand.vmem [shape: f32[64,1], index: 22, kind: input, shape index: {}]   ;;  %s12257_s23 = inlined_call_operand.vmem [shape: bf16[32,4], index: 23, kind: input, shape index: {}]   ;;  %s12258_s24 = inlined_call_operand.vmem [shape: bf16[4,32], index: 24, kind: input, shape index: {}]   ;;  %s12259_s25 = inlined_call_operand.vmem [shape: bf16[16,4], index: 25, kind: input, shape index: {}]   ;;  %s12260_s26 = inlined_call_operand.vmem [shape: bf16[4,16], index: 26, kind: input, shape index: {}]   ;;  %s12261_s27 = inlined_call_operand.vmem [shape: f32[2,64,64], index: 27, kind: output, shape index: {}]  }
   0x1   :  { %12278 = sst [smem:[#allocation5_spill]] %s12234_s0 }
   0x2   :  { %12279 = sst [smem:[#allocation6_spill]] %s12235_s1 }
   0x3   :  { %12280 = sst [smem:[#allocation7_spill]] %s12236_s2 }
   0x4   :  { %12281 = sst [smem:[#allocation8_spill]] %s12237_s3 }
   0x5   :  { %12282 = sst [smem:[#allocation9_spill]] %s12238_s4 }
   0x6   :  { %12283 = sst [smem:[#allocation10_spill]] %s12239_s5 }
   0x7   :  { %12284 = sst [smem:[#allocation11_spill]] %s12240_s6 }
   0x8   :  { %12285 = sst [smem:[#allocation12_spill]] %s12241_s7 }
   0x9   :  { %12286 = sst [smem:[#allocation13_spill]] %s12242_s8 }
   0xa   :  { %12287 = sst [smem:[#allocation14_spill]] %s12243_s9 }
   0xb   :  { %12288 = sst [smem:[#allocation15_spill]] %s12244_s10 }
   0xc   :  { %12289 = sst [smem:[#allocation16_spill]] %s12245_s11 }
   0xd   :  { %32 = vsyncpa [#allocation3], 0  ;;  %s10567_s7 = smov 0  }
   0xe LB: > { %s7966_s4 = sadd.s32 4294967295, %s10423_s7   ;;  %p7968_p0 = scmp.ge.s32.totalorder %s10423_s7, 1  ;;  %s10423_s7 = sphi %s10567_s7, %s38_s7  }
   0xf   : > { %p641_p1 = scmp.lt.s32.totalorder %s10423_s7, 3  ;;  %s12290_s9 = sld [smem:[#allocation5_spill]] }
  0x10   : > { %p10151_p3 = scmp.eq.s32.totalorder %s7966_s4, 0 }
  0x11   : > { %p10578_p2 = pnand %p7968_p0, %p641_p1 }
  0x13   : > { %p10147_p4 = pneg %p10578_p2 }
  0x15   : > { %s654_s5 = sshll.u32 %s12290_s9, 4  ;;  %p10148_p5 = pnand %p10151_p3, %p10147_p4  ;;  %s655_s5 = int_to_ptr.vmem [resolvable:$true] %s654_s5 }
  0x16   : > { %s10398_s0 = scalar_lea.vmem %s655_s5, 16  ;;  %p10406_p10 = scmp.lt.s32.totalorder %s655_s5, %s655_s5 }
  0x17   : > { %p10399_p6 = scmp.ne.s32.totalorder %s655_s5, %s10398_s0  ;;  %p10400_p7 = pneg %p10148_p5 }
  0x18   : > { %p10407_p11 = scmp.lt.s32.totalorder %s10398_s0, %s10398_s0 }
  0x19   : > { %p10401_p8 = pnand %p10400_p7, %p10399_p6 }
  0x1a   : > { %p10408_p12 = por %p10407_p11, %p10406_p10 }
  0x1b   : > { %p10402_p9 = pneg %p10401_p8 }
  0x1d   : > { %p10409_p13 = pnand %p10408_p12, %p10402_p9 }
  0x1f   : > { %10412 = shalt.err (!%p10409_p13)
}
  0x20   : > { %s10425_s10 = smov [#allocation2]   ;;  %750 = sbr.rel (%p10578_p2) target bundleno = 8053 (0x1f75), region = 128 }
  0x21   : > { %10150 = dma.vmem_to_smem (!%p10148_p5), %s655_s5, 16, %s10425_s10, [#allocation3]  }
  0x27   : > { %10418 = dma.done.wait (%p10151_p3), [#allocation3], 16  }
  0x28   : > { %10420 = vsyncadd (%p10151_p3), [#allocation3], 4294967280 }
  0x29   : > { %756 = sfence }
  0x2a   : > { %p823_p0 = scmp.lt.s32.totalorder %s7966_s4, 1  ;;  %vm874_vm0 = vcmask 523264   ;;  %s12292_s6 = sld [smem:[#allocation7_spill]]  ;;  %v10426_v34 = vmov 0   ;;  %v4369_v50 = vld [vmem:[%s12246_s12] sm:$0xff]  ;;  %v4370_v51 = vld [vmem:[%s12246_s12 + $0x8] sm:$0xff] }
  0x2b   : > { %s12293_s8 = sld [smem:[#allocation6_spill]]  ;;  %s12294_s10 = sld [smem:[#allocation8_spill]]  ;;  %10163 = vset.pattern.permute.xlu0 %v10426_v34  ;;  %10164 = vset.pattern.permute.xlu1 %v10426_v34  ;;  %v4371_v52 = vld [vmem:[%s12246_s12 + $0x10] sm:$0xff]  ;;  %v4372_v53 = vld [vmem:[%s12246_s12 + $0x18] sm:$0xff]  ;;  %v4373_v54 = vld [vmem:[%s12246_s12 + $0x20] sm:$0xff]  ;;  %vm1599_vm1 = vcmask 261120  }
  0x2c   : > { %s12305_s4 = smov (!%p823_p0, %s7966_s4), 1  ;;  %s12295_s28 = sld [smem:[#allocation9_spill]]  ;;  %v4374_v55 = vld [vmem:[%s12246_s12 + $0x28] sm:$0xff]  ;;  %v4375_v56 = vld [vmem:[%s12246_s12 + $0x30] sm:$0xff]  ;;  %v4376_v57 = vld [vmem:[%s12246_s12 + $0x38] sm:$0xff]  ;;  %vm1795_vm2 = vcmask 1041408  }
  0x2d   : > { %s12272_s11 = sshll.u32 %s12305_s4, 6  ;;  %v4377_v58 = vld [vmem:[%s12246_s12 + $0x40] sm:$0xff]  ;;  %v4378_v59 = vld [vmem:[%s12246_s12 + $0x48] sm:$0xff]  ;;  %v4379_v60 = vld [vmem:[%s12246_s12 + $0x50] sm:$0xff]  ;;  %vm1782_vm3 = vcmask 31744   ;;  %s1569_s29 = sld [smem:[#allocation2]] }
  0x2e   : > { %v4380_v61 = vld [vmem:[%s12246_s12 + $0x58] sm:$0xff]  ;;  %v4381_v62 = vld [vmem:[%s12246_s12 + $0x60] sm:$0xff]  ;;  %v4382_v63 = vld [vmem:[%s12246_s12 + $0x68] sm:$0xff]  ;;  %s12299_s3 = sld [smem:[#allocation12_spill]]  ;;  %vm2852_vm12 = vcmask 130048   ;;  %s12301_s1 = sld [smem:[#allocation15_spill]] }
  0x2f   : > { %s8153_s9 = sld [smem:[#allocation2 + $0x1]]  ;;  %s8294_s5 = sld [smem:[#allocation2 + $0x2]] }
  0x30   : > { %v10165_v0 = vld [vmem:[%s12292_s6 + $0x20] sm:$0xff]   ;;  %v10166_v15 = vld [vmem:[%s12292_s6 + $0x28] sm:$0xff]   ;;  %v10167_v17 = vld [vmem:[%s12292_s6 + $0x30] sm:$0xff]   ;;  %s8422_s2 = sld [smem:[#allocation2 + $0x3]] }
  0x31   : > { %9059 = vmatprep.mubr.msk.bf16.mxu1 %vm874_vm0, %v10165_v0  ;;  %s827_s30 = scalar_lea.vmem %s12293_s8, %s12272_s11  ;;  %v10169_v1 = vld [vmem:[%s12292_s6] sm:$0xff]   ;;  %v10170_v16 = vld [vmem:[%s12292_s6 + $0x8] sm:$0xff]   ;;  %v10173_v18 = vld [vmem:[%s12292_s6 + $0x10] sm:$0xff]   ;;  %s12298_s11 = sld [smem:[#allocation11_spill]] }
  0x32   : > { %v834_v2 = vld [vmem:[%s827_s30] sm:$0xff]  ;;  %v835_v3 = vld [vmem:[%s827_s30 + $0x8] sm:$0xff]  ;;  %v836_v4 = vld [vmem:[%s827_s30 + $0x10] sm:$0xff]  ;;  %9043 = vmatprep.mubr.msk.bf16.mxu0 %vm874_vm0, %v10169_v1  ;;  %s12303_s8 = sshll.u32 %s12305_s4, 6 }
  0x33   : > { %v850_v5 = vpack.c.bf16 %v835_v3, %v834_v2  ;;  %v837_v6 = vld [vmem:[%s827_s30 + $0x18] sm:$0xff]  ;;  %v838_v8 = vld [vmem:[%s827_s30 + $0x20] sm:$0xff]  ;;  %v839_v9 = vld [vmem:[%s827_s30 + $0x28] sm:$0xff]  ;;  %s832_s0 = scalar_lea.vmem %s12261_s27, %s12303_s8 }
  0x34   : > { %v851_v7 = vpack.c.bf16 %v837_v6, %v836_v4  ;;  %v852_v10 = vpack.c.bf16 %v839_v9, %v838_v8  ;;  %v840_v11 = vld [vmem:[%s827_s30 + $0x30] sm:$0xff]  ;;  %v841_v12 = vld [vmem:[%s827_s30 + $0x38] sm:$0xff]  ;;  %v10177_v14 = vld [vmem:[%s12294_s10 + $0x20] sm:$0xff]   ;;  %s12296_s30 = sld [smem:[#allocation13_spill]] }
  0x35   : > { %9051 = vmatprep.subr.bf16.mxu1 %v850_v5  ;;  %9035 = vmatprep.subr.bf16.mxu0 %v850_v5  ;;  %v853_v13 = vpack.c.bf16 %v841_v12, %v840_v11  ;;  %v10178_v19 = vld [vmem:[%s12294_s10 + $0x28] sm:$0xff]   ;;  %v10168_v20 = vld [vmem:[%s12292_s6 + $0x38] sm:$0xff]   ;;  %v10171_v22 = vld [vmem:[%s12292_s6 + $0x40] sm:$0xff]  }
  0x36   : > { %9052 = vmatpush3.bf16.msra.mxu1 %v850_v5  ;;  %9036 = vmatpush3.bf16.msra.mxu0 %v850_v5  ;;  %v10174_v21 = vld [vmem:[%s12292_s6 + $0x18] sm:$0xff]   ;;  %v10179_v23 = vld [vmem:[%s12294_s10 + $0x30] sm:$0xff]   ;;  %v10172_v24 = vld [vmem:[%s12292_s6 + $0x48] sm:$0xff]  }
  0x37   : > { %9053 = vmatprep.subr.bf16.mxu1 %v851_v7  ;;  %9037 = vmatprep.subr.bf16.mxu0 %v851_v7  ;;  %v10175_v25 = vld [vmem:[%s12292_s6 + $0x50] sm:$0xff]   ;;  %v10176_v26 = vld [vmem:[%s12292_s6 + $0x58] sm:$0xff]   ;;  %v10660_v28 = vld [vmem:[%s12294_s10] sm:$0xff]   ;;  %s12297_s6 = sld [smem:[#allocation10_spill]] }
  0x38   : > { %v10180_v27 = vld [vmem:[%s12294_s10 + $0x38] sm:$0xff]   ;;  %v10666_v29 = vld [vmem:[%s12294_s10 + $0x40] sm:$0xff]   ;;  %v10673_v30 = vld [vmem:[%s12294_s10 + $0x48] sm:$0xff]  }
  0x39   : > { %v10680_v31 = vld [vmem:[%s12294_s10 + $0x50] sm:$0xff]   ;;  %v10687_v32 = vld [vmem:[%s12294_s10 + $0x58] sm:$0xff]   ;;  %v1513_v33 = vld [vmem:[%s12295_s28] sm:$0xff] }
  0x3a   : > { %9054 = vmatpush3.bf16.msra.mxu1 %v851_v7  ;;  %9038 = vmatpush3.bf16.msra.mxu0 %v851_v7  ;;  %v1515_v35 = vld [vmem:[%s12295_s28 + $0x10] sm:$0xff]  ;;  %v1514_v36 = vld [vmem:[%s12295_s28 + $0x8] sm:$0xff]  ;;  %v1516_v37 = vld [vmem:[%s12295_s28 + $0x18] sm:$0xff] }
  0x3b   : > { %9055 = vmatprep.subr.bf16.mxu1 %v852_v10  ;;  %9039 = vmatprep.subr.bf16.mxu0 %v852_v10  ;;  %v1517_v38 = vld [vmem:[%s12295_s28 + $0x20] sm:$0xff]  ;;  %v1518_v39 = vld [vmem:[%s12295_s28 + $0x28] sm:$0xff]  ;;  %v1519_v40 = vld [vmem:[%s12295_s28 + $0x30] sm:$0xff] }
  0x3c   : > { %1523 = vperm.xlu0 %10163, %v1513_v33   ;;  %1533 = vperm.xlu1 %10164, %v1515_v35   ;;  %v1520_v41 = vld [vmem:[%s12295_s28 + $0x38] sm:$0xff]  ;;  %v2774_v42 = vld [vmem:[%s12296_s30] sm:$0xff]  ;;  %v2775_v43 = vld [vmem:[%s12296_s30 + $0x8] sm:$0xff] }
  0x3d   : > { %v2776_v44 = vld [vmem:[%s12296_s30 + $0x10] sm:$0xff]  ;;  %v2777_v45 = vld [vmem:[%s12296_s30 + $0x18] sm:$0xff]  ;;  %v2778_v46 = vld [vmem:[%s12296_s30 + $0x20] sm:$0xff] }
  0x3e   : > { %9056 = vmatpush3.bf16.msra.mxu1 %v852_v10  ;;  %9040 = vmatpush3.bf16.msra.mxu0 %v852_v10  ;;  %v2779_v47 = vld [vmem:[%s12296_s30 + $0x28] sm:$0xff]  ;;  %v2780_v48 = vld [vmem:[%s12296_s30 + $0x30] sm:$0xff]  ;;  %v2781_v49 = vld [vmem:[%s12296_s30 + $0x38] sm:$0xff] }
  0x3f   : > { %9057 = vmatprep.subr.bf16.mxu1 %v853_v13  ;;  %9041 = vmatprep.subr.bf16.mxu0 %v853_v13  ;;  %v4383_v0 = vld [vmem:[%s12246_s12 + $0x70] sm:$0xff]  ;;  %v4384_v1 = vld [vmem:[%s12246_s12 + $0x78] sm:$0xff]  ;;  %v6280_v2 = vld [vmem:[%s12251_s17] sm:$0xff] }
  0x40   : > { %1528 = vperm.xlu0 %10163, %v1514_v36   ;;  %1538 = vperm.xlu1 %10164, %v1516_v37   ;;  %v6281_v3 = vld [vmem:[%s12251_s17 + $0x8] sm:$0xff]  ;;  %v6282_v4 = vld [vmem:[%s12251_s17 + $0x10] sm:$0xff]  ;;  %v6284_v6 = vld [vmem:[%s12251_s17 + $0x20] sm:$0xff] }
  0x41   : > { %v6286_v8 = vld [vmem:[%s12251_s17 + $0x30] sm:$0xff]  ;;  %v6287_v9 = vld [vmem:[%s12251_s17 + $0x38] sm:$0xff]  ;;  %v7836_v11 = vld [vmem:[%s12256_s22 + $0x8] sm:$0xff] }
  0x42   : > { %9058 = vmatpush3.bf16.msra.mxu1 %v853_v13  ;;  %9042 = vmatpush3.bf16.msra.mxu0 %v853_v13  ;;  %v7837_v12 = vld [vmem:[%s12256_s22 + $0x10] sm:$0xff]  ;;  %v10182_v35 = vld [vmem:[%s12294_s10 + $0x8] sm:$0xff]  }
  0x43   : > { %9099 = vmatprep.subr.bf16.mxu1 %v850_v5  ;;  %9067 = vmatprep.subr.bf16.mxu0 %v10177_v14 }
  0x44   : > { %1543 = vperm.xlu0 %10163, %v1517_v38   ;;  %1548 = vperm.xlu1 %10164, %v1518_v39   ;;  %v10183_v39 = vld [vmem:[%s12294_s10 + $0x10] sm:$0xff]  }
  0x45   : > { %9060 = vmatmul.mubr.msk.bf16.vlgmr.msra.gmra.mrb[0].mxu1 %vm874_vm0, %v10166_v15  ;;  %9044 = vmatmul.mubr.msk.bf16.vlgmr.msra.gmra.mrb[0].mxu0 %vm874_vm0, %v10170_v16  ;;  %v7840_v15 = vld [vmem:[%s12256_s22 + $0x28] sm:$0xff]  ;;  %v7841_v16 = vld [vmem:[%s12256_s22 + $0x30] sm:$0xff] }
  0x46   : > { %9100 = vmatpush3.bf16.msra.mxu1 %v850_v5  ;;  %9063 = vmatprep.mubr.msk.bf16.mxu1 %vm874_vm0, %v10167_v17  ;;  %v6283_v5 = vld [vmem:[%s12251_s17 + $0x18] sm:$0xff] }
  0x47   : > { %9101 = vmatprep.subr.bf16.mxu1 %v851_v7  ;;  %9047 = vmatprep.mubr.msk.bf16.mxu0 %vm874_vm0, %v10173_v18  ;;  %v7842_v17 = vld [vmem:[%s12256_s22 + $0x38] sm:$0xff] }
  0x48   : > { %9068 = vmatpush3.bf16.msra.mxu0 %v10177_v14  ;;  %1553 = vperm.xlu0 %10163, %v1519_v40   ;;  %v7839_v14 = vld [vmem:[%s12256_s22 + $0x20] sm:$0xff] }
  0x49   : > { %9069 = vmatprep.subr.bf16.mxu0 %v10178_v19  ;;  %1558 = vperm.xlu1 %10164, %v1520_v41  }
  0x4a   : > { %9102 = vmatpush3.bf16.msra.mxu1 %v851_v7  ;;  %v6285_v7 = vld [vmem:[%s12251_s17 + $0x28] sm:$0xff] }
  0x4b   : > { %9103 = vmatprep.subr.bf16.mxu1 %v852_v10 }
  0x4c   : > { %9070 = vmatpush3.bf16.msra.mxu0 %v10178_v19  ;;  %2784 = vperm.xlu0 %10163, %v2774_v42  }
  0x4d   : > { %9064 = vmatmul.mubr.msk.bf16.gmra.mrb[4].mxu1 %vm874_vm0, %v10168_v20  ;;  %9048 = vmatmul.mubr.msk.bf16.gmra.mrb[4].mxu0 %vm874_vm0, %v10174_v21 }
  0x4e   : > { %9104 = vmatpush3.bf16.msra.mxu1 %v852_v10  ;;  %9107 = vmatprep.mubr.msk.bf16.mxu1 %vm874_vm0, %v10171_v22  ;;  %v7835_v10 = vld [vmem:[%s12256_s22] sm:$0xff] }
  0x4f   : > { %9105 = vmatprep.subr.bf16.mxu1 %v853_v13  ;;  %9071 = vmatprep.subr.bf16.mxu0 %v10179_v23 }
  0x50   : > { %9072 = vmatpush3.bf16.msra.mxu0 %v10179_v23  ;;  %2789 = vperm.xlu1 %10164, %v2775_v43  }
  0x51   : > { %9073 = vmatprep.subr.bf16.mxu0 %v10180_v27  ;;  %2794 = vperm.xlu0 %10163, %v2776_v44  }
  0x52   : > { %9106 = vmatpush3.bf16.msra.mxu1 %v853_v13  ;;  %v7838_v13 = vld [vmem:[%s12256_s22 + $0x18] sm:$0xff] }
  0x53   : > { %9983 = vmatprep.subr.bf16.mxu1 %v10666_v29 }
  0x54   : > { %9074 = vmatpush3.bf16.msra.mxu0 %v10180_v27  ;;  %2799 = vperm.xlu1 %10164, %v2777_v45  }
  0x55   : > { %9108 = vmatmul.mubr.msk.bf16.vlgmr.msra.gmra.mrb[8].mxu1 %vm874_vm0, %v10172_v24  ;;  %9083 = vmatprep.subr.bf16.mxu0 %v10660_v28 }
  0x56   : > { %9111 = vmatprep.mubr.msk.bf16.mxu1 %vm874_vm0, %v10175_v25  ;;  %9987 = vmatpush3.bf16.msra.mxu1 %v10666_v29 }
  0x57   : > { %9984 = vmatprep.subr.bf16.mxu1 %v10673_v30  ;;  %2804 = vperm.xlu0 %10163, %v2778_v46  }
  0x58   : > { %2809 = vperm.xlu1 %10164, %v2779_v47  }
  0x5a   : > { %9988 = vmatpush3.bf16.msra.mxu1 %v10673_v30 }
  0x5b   : > { %9985 = vmatprep.subr.bf16.mxu1 %v10680_v31  ;;  %2814 = vperm.xlu0 %10163, %v2780_v48  }
  0x5c   : > { %2819 = vperm.xlu1 %10164, %v2781_v49  }
  0x5d   : > { %9112 = vmatmul.mubr.msk.bf16.gmra.mrb[12].mxu1 %vm874_vm0, %v10176_v26 }
  0x5e   : > { %9989 = vmatpush3.bf16.msra.mxu1 %v10680_v31 }
  0x5f   : > { %9986 = vmatprep.subr.bf16.mxu1 %v10687_v32  ;;  %4387 = vperm.xlu0 %10163, %v4369_v50  }
  0x60   : > { %4392 = vperm.xlu1 %10164, %v4370_v51  }
  0x62   : > { %9990 = vmatpush3.bf16.msra.mxu1 %v10687_v32 }
  0x63   : > { %4397 = vperm.xlu0 %10163, %v4371_v52  }
  0x64   : > { %4402 = vperm.xlu1 %10164, %v4372_v53  }
  0x67   : > { %4407 = vperm.xlu0 %10163, %v4373_v54  }
  0x68   : > { %4412 = vperm.xlu1 %10164, %v4374_v55  }
  0x6b   : > { %4417 = vperm.xlu0 %10163, %v4375_v56  }
  0x6c   : > { %4422 = vperm.xlu1 %10164, %v4376_v57  }
  0x6f   : > { %4427 = vperm.xlu0 %10163, %v4377_v58  }
  0x70   : > { %4432 = vperm.xlu1 %10164, %v4378_v59  }
  0x73   : > { %4437 = vperm.xlu0 %10163, %v4379_v60  }
  0x74   : > { %4442 = vperm.xlu1 %10164, %v4380_v61  }
  0x77   : > { %4447 = vperm.xlu0 %10163, %v4381_v62  }
  0x78   : > { %4452 = vperm.xlu1 %10164, %v4382_v63  }
  0x7b   : > { %4457 = vperm.xlu0 %10163, %v4383_v0  }
  0x7c   : > { %4462 = vperm.xlu1 %10164, %v4384_v1  }
  0x7f   : > { %6290 = vperm.xlu0 %10163, %v6280_v2  }
  0x80   : > { %6295 = vperm.xlu1 %10164, %v6281_v3  }
  0x83   : > { %6300 = vperm.xlu0 %10163, %v6282_v4  }
  0x84   : > { %6305 = vperm.xlu1 %10164, %v6283_v5  }
  0x87   : > { %6310 = vperm.xlu0 %10163, %v6284_v6  }
  0x88   : > { %6315 = vperm.xlu1 %10164, %v6285_v7  }
  0x8b   : > { %6320 = vperm.xlu0 %10163, %v6286_v8  }
  0x8c   : > { %6325 = vperm.xlu1 %10164, %v6287_v9  }
  0x8f   : > { %7845 = vperm.xlu0 %10163, %v7835_v10  }
  0x90   : > { %7850 = vperm.xlu1 %10164, %v7836_v11  }
  0x93   : > { %7855 = vperm.xlu0 %10163, %v7837_v12  }
  0x94   : > { %7860 = vperm.xlu1 %10164, %v7838_v13  }
  0x97   : > { %7865 = vperm.xlu0 %10163, %v7839_v14  }
  0x98   : > { %7870 = vperm.xlu1 %10164, %v7840_v15  }
  0x9b   : > { %7875 = vperm.xlu0 %10163, %v7841_v16  }
  0x9c   : > { %7880 = vperm.xlu1 %10164, %v7842_v17  }
 0x118   : > { %v9061_v18 = vpop.f32.mrb[0].mxu1  ;;  %v9045_v19 = vpop.f32.mrb[0].mxu0 }
 0x119   : > { %v1039_v20 = vpop.f32.mrb[1].mxu1  ;;  %v921_v21 = vpop.f32.mrb[1].mxu0 }
 0x11a   : > { %v9062_v22 = vpop.f32.mrb[2].mxu1  ;;  %v9046_v23 = vpop.f32.mrb[2].mxu0 }
 0x11b   : > { %v1080_v24 = vpack.c.bf16 %v9062_v22, %v9061_v18  ;;  %v1042_v25 = vpop.f32.mrb[3].mxu1  ;;  %v961_v26 = vpack.c.bf16 %v9046_v23, %v9045_v19  ;;  %v924_v27 = vpop.f32.mrb[3].mxu0 }
 0x11c   : > { %v1079_v33 = vpack.c.bf16 %v1042_v25, %v1039_v20  ;;  %v960_v34 = vpack.c.bf16 %v924_v27, %v921_v21 }
 0x11e   : > { %9075 = vmatprep.mubr.msk.bf16.mxu0 %vm874_vm0, %v1079_v33 }
 0x11f   : > { %9076 = vmatmul.mubr.msk.bf16.vlgmr.msra.gmra.mrb[8].mxu0 %vm874_vm0, %v1080_v24 }
 0x120   : > { %v9065_v36 = vpop.f32.mrb[4].mxu1  ;;  %9084 = vmatpush3.bf16.msra.mxu0 %v10660_v28  ;;  %v9049_v37 = vpop.f32.mrb[4].mxu0  ;;  %v10185_v28 = vld [vmem:[%s12294_s10 + $0x18] sm:$0xff]  }
 0x121   : > { %v1055_v38 = vpop.f32.mrb[5].mxu1  ;;  %9085 = vmatprep.subr.bf16.mxu0 %v10182_v35  ;;  %v937_v40 = vpop.f32.mrb[5].mxu0 }
 0x122   : > { %v9066_v41 = vpop.f32.mrb[6].mxu1  ;;  %v9050_v42 = vpop.f32.mrb[6].mxu0 }
 0x123   : > { %v1082_v43 = vpack.c.bf16 %v9066_v41, %v9065_v36  ;;  %v1058_v44 = vpop.f32.mrb[7].mxu1  ;;  %v963_v45 = vpack.c.bf16 %v9050_v42, %v9049_v37  ;;  %v940_v46 = vpop.f32.mrb[7].mxu0  ;;  %v10191_v36 = vld [vmem:[%s12297_s6] sm:$0xff]  }
 0x124   : > { %v1081_v47 = vpack.c.bf16 %v1058_v44, %v1055_v38  ;;  %9086 = vmatpush3.bf16.msra.mxu0 %v10182_v35  ;;  %v962_v48 = vpack.c.bf16 %v940_v46, %v937_v40  ;;  %v1582_v37 = vld [vmem:[%s12258_s24] sm:$0x3] }
 0x125   : > { %9087 = vmatprep.subr.bf16.mxu0 %v10183_v39 }
 0x126   : > { %9079 = vmatprep.mubr.msk.bf16.mxu0 %vm874_vm0, %v1081_v47 }
 0x127   : > { %9080 = vmatmul.mubr.msk.bf16.gmra.mrb[12].mxu0 %vm874_vm0, %v1082_v43 }
 0x128   : > { %9088 = vmatpush3.bf16.msra.mxu0 %v10183_v39  ;;  %9091 = vmatprep.mubr.msk.bf16.mxu0 %vm874_vm0, %v960_v34  ;;  %v9109_v49 = vpop.f32.mrb[8].mxu1 }
 0x129   : > { %9089 = vmatprep.subr.bf16.mxu0 %v10185_v28  ;;  %v1360_v50 = vpop.f32.mrb[9].mxu1 }
 0x12a   : > { %v9110_v51 = vpop.f32.mrb[10].mxu1 }
 0x12b   : > { %v1401_v52 = vpack.c.bf16 %v9110_v51, %v9109_v49  ;;  %v1363_v53 = vpop.f32.mrb[11].mxu1  ;;  %v10918_v49 = vld [vmem:[%s12297_s6 + $0x8] sm:$0xff]   ;;  %v10935_v51 = vld [vmem:[%s12297_s6 + $0x18] sm:$0xff]  }
 0x12c   : > { %9090 = vmatpush3.bf16.msra.mxu0 %v10185_v28  ;;  %v1400_v54 = vpack.c.bf16 %v1363_v53, %v1360_v50  ;;  %v10923_v50 = vld [vmem:[%s12297_s6 + $0x10] sm:$0xff]   ;;  %s12300_s6 = sld [smem:[#allocation14_spill]] }
 0x12d   : > { %9115 = vmatprep.subr.bf16.mxu0 %v10666_v29 }
 0x12f   : > { %9092 = vmatmul.mubr.msk.bf16.vlgmr.msra.gmra.mrb[8].mxu0 %vm874_vm0, %v961_v26 }
 0x130   : > { %v9113_v55 = vpop.f32.mrb[12].mxu1  ;;  %9116 = vmatpush3.bf16.msra.mxu0 %v10666_v29  ;;  %9095 = vmatprep.mubr.msk.bf16.mxu0 %vm874_vm0, %v962_v48  ;;  %v10868_v29 = vld [vmem:[%s12257_s23] sm:$0xff]  }
 0x131   : > { %v1376_v56 = vpop.f32.mrb[13].mxu1  ;;  %9117 = vmatprep.subr.bf16.mxu0 %v10673_v30  ;;  %9131 = vmatprep.subr.bf16.mxu1 %v10868_v29 }
 0x132   : > { %v9114_v57 = vpop.f32.mrb[14].mxu1 }
 0x133   : > { %v1403_v58 = vpack.c.bf16 %v9114_v57, %v9113_v55  ;;  %v1379_v59 = vpop.f32.mrb[15].mxu1 }
 0x134   : > { %v1402_v60 = vpack.c.bf16 %v1379_v59, %v1376_v56  ;;  %9118 = vmatpush3.bf16.msra.mxu0 %v10673_v30  ;;  %v10875_v30 = vld [vmem:[%s12257_s23 + $0x8] sm:$0xff]  }
 0x135   : > { %9119 = vmatprep.subr.bf16.mxu0 %v10680_v31 }
 0x136   : > { %9127 = vmatprep.mubr.msk.bf16.mxu1 %vm874_vm0, %v1402_v60 }
 0x137   : > { %9096 = vmatmul.mubr.msk.bf16.gmra.mrb[12].mxu0 %vm874_vm0, %v963_v45  ;;  %9128 = vmatmul.mubr.msk.bf16.vlgmr.msra.gmra.mrb[16].mxu1 %vm874_vm0, %v1403_v58 }
 0x138   : > { %9120 = vmatpush3.bf16.msra.mxu0 %v10680_v31  ;;  %9123 = vmatprep.mubr.msk.bf16.mxu0 %vm874_vm0, %v1400_v54  ;;  %v1524_v31 = vpop.permute.xlu0 %1523 }
 0x139   : > { %9121 = vmatprep.subr.bf16.mxu0 %v10687_v32  ;;  %9132 = vmatpush3.bf16.msra.mxu1 %v10868_v29 }
 0x13a   : > { %9133 = vmatprep.subr.bf16.mxu1 %v10875_v30 }
 0x13c   : > { %9122 = vmatpush3.bf16.msra.mxu0 %v10687_v32  ;;  %v1534_v32 = vpop.permute.xlu1 %1533  ;;  %v1529_v10 = vpop.permute.xlu0 %1528 }
 0x13d   : > { %9134 = vmatpush3.bf16.msra.mxu1 %v10875_v30  ;;  %10135 = vmatprep.subr.msk.bf16.mxu0 %vm1795_vm2, %v1582_v37 }
 0x13f   : > { %9124 = vmatmul.mubr.msk.bf16.vlgmr.msra.gmra.mrb[8].mxu0 %vm874_vm0, %v1401_v52  ;;  %v10942_v52 = vsel %vm1795_vm2, %v1582_v37, 0 }
 0x140   : > { %v1539_v9 = vpop.permute.xlu1 %1538  ;;  %v1544_v20 = vpop.permute.xlu0 %1543  ;;  %9160 = vmatpush3.bf16.msra.mxu0 %v10942_v52 }
 0x144   : > { %v1549_v14 = vpop.permute.xlu1 %1548  ;;  %v1554_v33 = vpop.permute.xlu0 %1553 }
 0x148   : > { %v1559_v26 = vpop.permute.xlu1 %1558 }
 0x20a   : > { %v9097_v61 = vpop.f32.mrb[12].mxu0  ;;  %v9129_v62 = vpop.f32.mrb[16].mxu1 }
 0x20b   : > { %v9991_v63 = vadd.f32 %v9129_v62, %v9097_v61  ;;  %v1270_v0 = vpop.f32.mrb[13].mxu0  ;;  %v1490_v1 = vpop.f32.mrb[17].mxu1 }
 0x20c   : > { %v9992_v2 = vadd.f32 %v1490_v1, %v1270_v0  ;;  %v9098_v3 = vpop.f32.mrb[14].mxu0  ;;  %v9130_v4 = vpop.f32.mrb[18].mxu1 }
 0x20d   : > { %v9993_v5 = vadd.f32 %v9130_v4, %v9098_v3  ;;  %v1273_v6 = vpop.f32.mrb[15].mxu0  ;;  %v1493_v7 = vpop.f32.mrb[19].mxu1  ;;  %v10902_v34 = vadd.f32 %v9991_v63, %v1554_v33 }
 0x20e   : > { %v9994_v8 = vadd.f32 %v1493_v7, %v1273_v6  ;;  %v10889_v22 = vadd.f32 %v9992_v2, %v1544_v20 }
 0x20f   : > { %v10900_v27 = vadd.f32 %v9993_v5, %v1559_v26 }
 0x210   : > { %v10881_v17 = vadd.f32 %v9994_v8, %v1549_v14 }
 0x211   : > { %v1586_v35 = vpack.c.bf16 %v10900_v27, %v10902_v34 }
 0x212   : > { %v9125_v11 = vpop.f32.mrb[8].mxu0  ;;  %v1585_v25 = vpack.c.bf16 %v10881_v17, %v10889_v22 }
 0x213   : > { %v1474_v12 = vpop.f32.mrb[9].mxu0  ;;  %v10887_v21 = vadd.f32 %v9125_v11, %v1534_v32 }
 0x214   : > { %v9126_v13 = vpop.f32.mrb[10].mxu0  ;;  %v10883_v18 = vadd.f32 %v1524_v31, %v1474_v12 }
 0x215   : > { %v10879_v15 = vadd.f32 %v9126_v13, %v1539_v9  ;;  %v1477_v16 = vpop.f32.mrb[11].mxu0 }
 0x216   : > { %v10885_v19 = vadd.f32 %v1529_v10, %v1477_v16 }
 0x217   : > { %v1584_v24 = vpack.c.bf16 %v10879_v15, %v10887_v21 }
 0x218   : > { %v1583_v23 = vpack.c.bf16 %v10885_v19, %v10883_v18 }
 0x21a   : > { %9135 = vmatprep.mubr.msk.bf16.mxu1 %vm1599_vm1, %v1583_v23 }
 0x21b   : > { %9136 = vmatmul.mubr.msk.bf16.vlgmr.msra.gmra.mrb[20].mxu1 %vm1599_vm1, %v1584_v24 }
 0x21c   : > { %9139 = vmatprep.mubr.msk.bf16.mxu1 %vm1599_vm1, %v1585_v25 }
 0x223   : > { %9140 = vmatmul.mubr.msk.bf16.gmra.mrb[24].mxu1 %vm1599_vm1, %v1586_v35 }
 0x224   : > { %9151 = vmatprep.mubr.msk.bf16.mxu1 %vm874_vm0, %v10191_v36 }
 0x2ee   : > { %v9137_v38 = vpop.f32.mrb[20].mxu1 }
 0x2ef   : > { %v1646_v39 = vpop.f32.mrb[21].mxu1 }
 0x2f0   : > { %v9138_v40 = vpop.f32.mrb[22].mxu1 }
 0x2f1   : > { %v1678_v41 = vpack.c.bf16 %v9138_v40, %v9137_v38  ;;  %v1649_v42 = vpop.f32.mrb[23].mxu1 }
 0x2f2   : > { %v1677_v43 = vpack.c.bf16 %v1649_v42, %v1646_v39 }
 0x2f4   : > { %9143 = vmatprep.subr.bf16.mxu1 %v1677_v43 }
 0x2f5   : > { %9144 = vmatpush3.bf16.msra.mxu1 %v1677_v43 }
 0x2f6   : > { %v9141_v44 = vpop.f32.mrb[24].mxu1  ;;  %9145 = vmatprep.subr.bf16.mxu1 %v1678_v41 }
 0x2f7   : > { %v1662_v45 = vpop.f32.mrb[25].mxu1 }
 0x2f8   : > { %v9142_v46 = vpop.f32.mrb[26].mxu1 }
 0x2f9   : > { %v1680_v47 = vpack.c.bf16 %v9142_v46, %v9141_v44  ;;  %v1665_v48 = vpop.f32.mrb[27].mxu1  ;;  %9146 = vmatpush3.bf16.msra.mxu1 %v1678_v41 }
 0x2fa   : > { %v1679_v28 = vpack.c.bf16 %v1665_v48, %v1662_v45 }
 0x2fc   : > { %9147 = vmatprep.subr.bf16.mxu1 %v1679_v28 }
 0x2fd   : > { %9148 = vmatpush3.bf16.msra.mxu1 %v1679_v28 }
 0x2fe   : > { %9149 = vmatprep.subr.bf16.mxu1 %v1680_v47 }
 0x301   : > { %9150 = vmatpush3.bf16.msra.mxu1 %v1680_v47 }
 0x302   : > { %9169 = vmatprep.subr.bf16.mxu1 %v10868_v29 }
 0x304   : > { %9152 = vmatmul.mubr.msk.bf16.vlgmr.msra.gmra.mrb[28].mxu1 %vm874_vm0, %v10918_v49 }
 0x305   : > { %9155 = vmatprep.mubr.msk.bf16.mxu1 %vm874_vm0, %v10923_v50  ;;  %9170 = vmatpush3.bf16.msra.mxu1 %v10868_v29 }
 0x306   : > { %9171 = vmatprep.subr.bf16.mxu1 %v10875_v30 }
 0x309   : > { %9172 = vmatpush3.bf16.msra.mxu1 %v10875_v30 }
 0x30a   : > { %10136 = vmatprep.subr.msk.bf16.mxu1 %vm1795_vm2, %v1582_v37 }
 0x30c   : > { %9156 = vmatmul.mubr.msk.bf16.gmra.mrb[32].mxu1 %vm874_vm0, %v10935_v51 }
 0x3d7   : > { %v9153_v53 = vpop.f32.mrb[28].mxu1 }
 0x3d8   : > { %v1747_v54 = vpop.f32.mrb[29].mxu1 }
 0x3d9   : > { %v9154_v55 = vpop.f32.mrb[30].mxu1 }
 0x3da   : > { %v1779_v56 = vpack.c.bf16 %v9154_v55, %v9153_v53  ;;  %v1750_v57 = vpop.f32.mrb[31].mxu1 }
 0x3db   : > { %v1778_v58 = vpack.c.bf16 %v1750_v57, %v1747_v54 }
 0x3dd   : > { %9161 = vmatprep.mubr.msk.bf16.mxu0 %vm1782_vm3, %v1778_v58 }
 0x3de   : > { %9162 = vmatmul.mubr.msk.bf16.vlgmr.msra.gmra.mrb[16].mxu0 %vm1782_vm3, %v1779_v56 }
 0x3df   : > { %v9157_v59 = vpop.f32.mrb[32].mxu1 }
 0x3e0   : > { %v1763_v60 = vpop.f32.mrb[33].mxu1 }
 0x3e1   : > { %v9158_v29 = vpop.f32.mrb[34].mxu1 }
 0x3e2   : > { %v1781_v30 = vpack.c.bf16 %v9158_v29, %v9157_v59  ;;  %v1766_v31 = vpop.f32.mrb[35].mxu1 }
 0x3e3   : > { %v1780_v32 = vpack.c.bf16 %v1766_v31, %v1763_v60 }
 0x3e5   : > { %9165 = vmatprep.mubr.msk.bf16.mxu0 %vm1782_vm3, %v1780_v32 }
 0x3e6   : > { %9166 = vmatmul.mubr.msk.bf16.gmra.mrb[20].mxu0 %vm1782_vm3, %v1781_v30 }
 0x3e7   : > { %9189 = vmatprep.mubr.msk.bf16.mxu0 %vm874_vm0, %v10191_v36 }
 0x4b1   : > { %v9163_v61 = vpop.f32.mrb[16].mxu0 }
 0x4b2   : > { %v1833_v62 = vpop.f32.mrb[17].mxu0  ;;  %v10954_v1 = vsub.f32 %v10887_v21, %v9163_v61 }
 0x4b3   : > { %v10951_v63 = vsub.f32 %v10883_v18, %v1833_v62  ;;  %v9164_v0 = vpop.f32.mrb[18].mxu0 }
 0x4b4   : > { %v10957_v2 = vsub.f32 %v10879_v15, %v9164_v0  ;;  %v1836_v3 = vpop.f32.mrb[19].mxu0  ;;  %v1874_v8 = vmul.f32 %v10954_v1, %v10954_v1 }
 0x4b5   : > { %v10960_v4 = vsub.f32 %v10885_v19, %v1836_v3  ;;  %v1872_v6 = vmul.f32 %v10951_v63, %v10951_v63 }
 0x4b6   : > { %v1875_v5 = vmul.f32 %v10957_v2, %v10957_v2 }
 0x4b7   : > { %v1873_v7 = vmul.f32 %v10960_v4, %v10960_v4 }
 0x4b8   : > { %v1881_v11 = vpack.c.bf16 %v1875_v5, %v1874_v8 }
 0x4b9   : > { %v1880_v9 = vpack.c.bf16 %v1873_v7, %v1872_v6  ;;  %v9167_v10 = vpop.f32.mrb[20].mxu0 }
 0x4ba   : > { %v1849_v12 = vpop.f32.mrb[21].mxu0  ;;  %v10975_v15 = vsub.f32 %v10902_v34, %v9167_v10 }
 0x4bb   : > { %v10971_v13 = vsub.f32 %v10889_v22, %v1849_v12  ;;  %v9168_v14 = vpop.f32.mrb[22].mxu0  ;;  %9173 = vmatprep.mubr.msk.bf16.mxu1 %vm1599_vm1, %v1880_v9  ;;  %v2135_v9 = vstv %s1569_s29  ;;  %s12302_s29 = sld [smem:[#allocation16_spill]] }
 0x4bc   : > { %v10978_v16 = vsub.f32 %v10900_v27, %v9168_v14  ;;  %v1852_v18 = vpop.f32.mrb[23].mxu0  ;;  %9174 = vmatmul.mubr.msk.bf16.vlgmr.msra.gmra.mrb[36].mxu1 %vm1599_vm1, %v1881_v11  ;;  %v1878_v23 = vmul.f32 %v10975_v15, %v10975_v15 }
 0x4bd   : > { %v10982_v19 = vsub.f32 %v10881_v17, %v1852_v18  ;;  %9198 = vmatpush3.bf16.msra.mxu1 %v10942_v52  ;;  %v1876_v21 = vmul.f32 %v10971_v13, %v10971_v13 }
 0x4be   : > { %v1879_v20 = vmul.f32 %v10978_v16, %v10978_v16 }
 0x4bf   : > { %v1877_v22 = vmul.f32 %v10982_v19, %v10982_v19 }
 0x4c0   : > { %v1883_v25 = vpack.c.bf16 %v1879_v20, %v1878_v23 }
 0x4c1   : > { %v1882_v24 = vpack.c.bf16 %v1877_v22, %v1876_v21 }
 0x4c3   : > { %9177 = vmatprep.mubr.msk.bf16.mxu1 %vm1599_vm1, %v1882_v24 }
 0x4c4   : > { %9178 = vmatmul.mubr.msk.bf16.gmra.mrb[40].mxu1 %vm1599_vm1, %v1883_v25 }
 0x58f   : > { %v9175_v17 = vpop.f32.mrb[36].mxu1 }
 0x590   : > { %v1930_v26 = vpop.f32.mrb[37].mxu1 }
 0x591   : > { %v9176_v27 = vpop.f32.mrb[38].mxu1 }
 0x592   : > { %v1962_v33 = vpack.c.bf16 %v9176_v27, %v9175_v17  ;;  %v1933_v34 = vpop.f32.mrb[39].mxu1 }
 0x593   : > { %v1961_v35 = vpack.c.bf16 %v1933_v34, %v1930_v26 }
 0x595   : > { %9181 = vmatprep.subr.bf16.mxu0 %v1961_v35 }
 0x596   : > { %9182 = vmatpush3.bf16.msra.mxu0 %v1961_v35 }
 0x597   : > { %v9179_v36 = vpop.f32.mrb[40].mxu1  ;;  %9183 = vmatprep.subr.bf16.mxu0 %v1962_v33 }
 0x598   : > { %v1946_v37 = vpop.f32.mrb[41].mxu1 }
 0x599   : > { %v9180_v38 = vpop.f32.mrb[42].mxu1 }
 0x59a   : > { %v1964_v39 = vpack.c.bf16 %v9180_v38, %v9179_v36  ;;  %v1949_v40 = vpop.f32.mrb[43].mxu1  ;;  %9184 = vmatpush3.bf16.msra.mxu0 %v1962_v33 }
 0x59b   : > { %v1963_v41 = vpack.c.bf16 %v1949_v40, %v1946_v37 }
 0x59d   : > { %9185 = vmatprep.subr.bf16.mxu0 %v1963_v41 }
 0x59e   : > { %9186 = vmatpush3.bf16.msra.mxu0 %v1963_v41 }
 0x59f   : > { %9187 = vmatprep.subr.bf16.mxu0 %v1964_v39 }
 0x5a2   : > { %9188 = vmatpush3.bf16.msra.mxu0 %v1964_v39 }
 0x5a5   : > { %9190 = vmatmul.mubr.msk.bf16.vlgmr.msra.gmra.mrb[24].mxu0 %vm874_vm0, %v10918_v49 }
 0x5a6   : > { %9193 = vmatprep.mubr.msk.bf16.mxu0 %vm874_vm0, %v10923_v50  ;;  %v10195_v50 = vld [vmem:[%s12298_s11 + $0x20] sm:$0xff]  }
 0x5ad   : > { %9194 = vmatmul.mubr.msk.bf16.gmra.mrb[28].mxu0 %vm874_vm0, %v10935_v51  ;;  %v10199_v51 = vld [vmem:[%s12298_s11] sm:$0xff]  }
 0x5ae   : > { %9215 = vmatprep.mubr.msk.bf16.mxu0 %vm874_vm0, %v10199_v51  ;;  %v10204_v51 = vld [vmem:[%s12298_s11 + $0x48] sm:$0xff]  }
 0x678   : > { %v9191_v42 = vpop.f32.mrb[24].mxu0 }
 0x679   : > { %v1999_v43 = vpop.f32.mrb[25].mxu0 }
 0x67a   : > { %v9192_v44 = vpop.f32.mrb[26].mxu0 }
 0x67b   : > { %v2031_v45 = vpack.c.bf16 %v9192_v44, %v9191_v42  ;;  %v2002_v46 = vpop.f32.mrb[27].mxu0 }
 0x67c   : > { %v2030_v47 = vpack.c.bf16 %v2002_v46, %v1999_v43  ;;  %v10207_v46 = vld [vmem:[%s12299_s3 + $0x10] sm:$0xff]  }
 0x67e   : > { %9199 = vmatprep.mubr.msk.bf16.mxu1 %vm1782_vm3, %v2030_v47  ;;  %v10196_v47 = vld [vmem:[%s12298_s11 + $0x28] sm:$0xff]  }
 0x67f   : > { %9200 = vmatmul.mubr.msk.bf16.vlgmr.msra.gmra.mrb[44].mxu1 %vm1782_vm3, %v2031_v45 }
 0x680   : > { %v9195_v48 = vpop.f32.mrb[28].mxu0 }
 0x681   : > { %v2015_v28 = vpop.f32.mrb[29].mxu0 }
 0x682   : > { %v9196_v53 = vpop.f32.mrb[30].mxu0 }
 0x683   : > { %v2033_v49 = vpack.c.bf16 %v9196_v53, %v9195_v48  ;;  %v2018_v54 = vpop.f32.mrb[31].mxu0  ;;  %v10200_v48 = vld [vmem:[%s12298_s11 + $0x8] sm:$0xff]   ;;  %v10201_v53 = vld [vmem:[%s12298_s11 + $0x10] sm:$0xff]  }
 0x684   : > { %v2032_v55 = vpack.c.bf16 %v2018_v54, %v2015_v28  ;;  %v10197_v28 = vld [vmem:[%s12298_s11 + $0x30] sm:$0xff]   ;;  %v10198_v54 = vld [vmem:[%s12298_s11 + $0x38] sm:$0xff]  }
 0x686   : > { %9203 = vmatprep.mubr.msk.bf16.mxu1 %vm1782_vm3, %v2032_v55  ;;  %v10202_v55 = vld [vmem:[%s12298_s11 + $0x18] sm:$0xff]  }
 0x687   : > { %9204 = vmatmul.mubr.msk.bf16.gmra.mrb[48].mxu1 %vm1782_vm3, %v2033_v49  ;;  %v10208_v49 = vld [vmem:[%s12299_s3 + $0x18] sm:$0xff]  }
 0x688   : > { %9231 = vmatprep.mubr.msk.bf16.mxu1 %vm874_vm0, %v10195_v50  ;;  %v10203_v50 = vld [vmem:[%s12298_s11 + $0x40] sm:$0xff]  }
 0x752   : > { %v9201_v56 = vpop.f32.mrb[44].mxu1 }
 0x753   : > { %v2089_v57 = vadd.f32 1e-05, %v9201_v56  ;;  %v2080_v58 = vpop.f32.mrb[45].mxu1  ;;  %v10205_v56 = vld [vmem:[%s12298_s11 + $0x50] sm:$0xff]  }
 0x754   : > { %v2081_v59 = vadd.f32 1e-05, %v2080_v58  ;;  %v9202_v60 = vpop.f32.mrb[46].mxu1  ;;  %v10209_v58 = vld [vmem:[%s12299_s3] sm:$0xff]  }
 0x755   : > { %10314 = vrsqrt.f32 %v2089_v57  ;;  %v2092_v29 = vadd.f32 1e-05, %v9202_v60  ;;  %v2083_v30 = vpop.f32.mrb[47].mxu1  ;;  %v10206_v57 = vld [vmem:[%s12298_s11 + $0x58] sm:$0xff]  }
 0x756   : > { %10316 = vrsqrt.f32 %v2081_v59  ;;  %v2084_v31 = vadd.f32 1e-05, %v2083_v30  ;;  %v11105_v59 = vld [vmem:[%s12259_s25] sm:$0xff]  }
 0x757   : > { %10318 = vrsqrt.f32 %v2092_v29 }
 0x758   : > { %10320 = vrsqrt.f32 %v2084_v31 }
 0x75a   : > { %v9205_v32 = vpop.f32.mrb[48].mxu1 }
 0x75b   : > { %v2105_v61 = vadd.f32 1e-05, %v9205_v32  ;;  %v2096_v62 = vpop.f32.mrb[49].mxu1 }
 0x75c   : > { %v2097_v0 = vadd.f32 1e-05, %v2096_v62  ;;  %v9206_v3 = vpop.f32.mrb[50].mxu1 }
 0x75d   : > { %10322 = vrsqrt.f32 %v2105_v61  ;;  %v2108_v5 = vadd.f32 1e-05, %v9206_v3  ;;  %v2099_v6 = vpop.f32.mrb[51].mxu1 }
 0x75e   : > { %10324 = vrsqrt.f32 %v2097_v0  ;;  %v2100_v7 = vadd.f32 1e-05, %v2099_v6 }
 0x75f   : > { %v10315_v8 = vpop.eup %10314  ;;  %10326 = vrsqrt.f32 %v2108_v5 }
 0x760   : > { %v10317_v10 = vpop.eup %10316  ;;  %v2121_v11 = vmul.f32 %v10315_v8, %v10954_v1  ;;  %10328 = vrsqrt.f32 %v2100_v7  ;;  %v10210_v8 = vld [vmem:[%s12299_s3 + $0x8] sm:$0xff]  }
 0x761   : > { %v10319_v12 = vpop.eup %10318  ;;  %v2119_v14 = vmul.f32 %v10317_v10, %v10951_v63 }
 0x762   : > { %v10321_v18 = vpop.eup %10320  ;;  %v2138_v20 = vmul.f32 %v2135_v9, %v2121_v11  ;;  %v2122_v21 = vmul.f32 %v10319_v12, %v10957_v2  ;;  %vm2129_vm4 = vcmp.ge.f32.partialorder %v2121_v11, 0.0 }
 0x763   : > { %v2136_v22 = vmul.f32 %v2135_v9, %v2119_v14  ;;  %v2120_v23 = vmul.f32 %v10321_v18, %v10960_v4  ;;  %vm2127_vm5 = vcmp.ge.f32.partialorder %v2119_v14, 0.0 }
 0x764   : > { %vm2130_vm6 = vcmp.ge.f32.partialorder %v2122_v21, 0.0  ;;  %v2139_v24 = vmul.f32 %v2135_v9, %v2122_v21  ;;  %v2146_v17 = vsel %vm2129_vm4, %v2121_v11, %v2138_v20 }
 0x765   : > { %vm2128_vm7 = vcmp.ge.f32.partialorder %v2120_v23, 0.0  ;;  %v2137_v25 = vmul.f32 %v2135_v9, %v2120_v23  ;;  %v2144_v27 = vsel %vm2127_vm5, %v2119_v14, %v2136_v22  ;;  %v10211_v14 = vld [vmem:[%s12299_s3 + $0x20] sm:$0xff]  }
 0x766   : > { %v2147_v26 = vsel %vm2130_vm6, %v2122_v21, %v2139_v24 }
 0x767   : > { %v10323_v1 = vpop.eup %10322  ;;  %v11017_v33 = vpack.c.bf16 %v2147_v26, %v2146_v17  ;;  %v2145_v63 = vsel %vm2128_vm7, %v2120_v23, %v2137_v25 }
 0x768   : > { %v10325_v34 = vpop.eup %10324  ;;  %v11019_v35 = vpack.c.bf16 %v2145_v63, %v2144_v27  ;;  %v2125_v2 = vmul.f32 %v10323_v1, %v10975_v15 }
 0x769   : > { %v10327_v36 = vpop.eup %10326  ;;  %v2123_v4 = vmul.f32 %v10325_v34, %v10971_v13 }
 0x76a   : > { %v10329_v37 = vpop.eup %10328  ;;  %v2142_v38 = vmul.f32 %v2135_v9, %v2125_v2  ;;  %v2126_v39 = vmul.f32 %v10327_v36, %v10978_v16  ;;  %9207 = vmatprep.subr.bf16.mxu0 %v11019_v35  ;;  %9223 = vmatprep.subr.bf16.mxu1 %v11019_v35  ;;  %vm2133_vm8 = vcmp.ge.f32.partialorder %v2125_v2, 0.0  ;;  %v10212_v36 = vld [vmem:[%s12299_s3 + $0x28] sm:$0xff]  }
 0x76b   : > { %v2140_v40 = vmul.f32 %v2135_v9, %v2123_v4  ;;  %v2124_v41 = vmul.f32 %v10329_v37, %v10982_v19  ;;  %9208 = vmatpush3.bf16.msra.mxu0 %v11019_v35  ;;  %9224 = vmatpush3.bf16.msra.mxu1 %v11019_v35  ;;  %vm2131_vm9 = vcmp.ge.f32.partialorder %v2123_v4, 0.0 }
 0x76c   : > { %vm2134_vm10 = vcmp.ge.f32.partialorder %v2126_v39, 0.0  ;;  %v2143_v15 = vmul.f32 %v2135_v9, %v2126_v39  ;;  %9209 = vmatprep.subr.bf16.mxu0 %v11017_v33  ;;  %9225 = vmatprep.subr.bf16.mxu1 %v11017_v33  ;;  %v2150_v16 = vsel %vm2133_vm8, %v2125_v2, %v2142_v38 }
 0x76d   : > { %vm2132_vm11 = vcmp.ge.f32.partialorder %v2124_v41, 0.0  ;;  %v2141_v13 = vmul.f32 %v2135_v9, %v2124_v41  ;;  %v2148_v43 = vsel %vm2131_vm9, %v2123_v4, %v2140_v40 }
 0x76e   : > { %v2151_v42 = vsel %vm2134_vm10, %v2126_v39, %v2143_v15  ;;  %v2790_v15 = vpop.permute.xlu1 %2789 }
 0x76f   : > { %v11031_v44 = vpack.c.bf16 %v2151_v42, %v2150_v16  ;;  %v2149_v45 = vsel %vm2132_vm11, %v2124_v41, %v2141_v13  ;;  %9210 = vmatpush3.bf16.msra.mxu0 %v11017_v33  ;;  %9226 = vmatpush3.bf16.msra.mxu1 %v11017_v33  ;;  %v2785_v13 = vpop.permute.xlu0 %2784 }
 0x770   : > { %v11035_v19 = vpack.c.bf16 %v2149_v45, %v2148_v43 }
 0x772   : > { %9211 = vmatprep.subr.bf16.mxu0 %v11035_v19  ;;  %9227 = vmatprep.subr.bf16.mxu1 %v11035_v19  ;;  %v2800_v16 = vpop.permute.xlu1 %2799 }
 0x773   : > { %9212 = vmatpush3.bf16.msra.mxu0 %v11035_v19  ;;  %9228 = vmatpush3.bf16.msra.mxu1 %v11035_v19  ;;  %v2795_v42 = vpop.permute.xlu0 %2794 }
 0x774   : > { %9213 = vmatprep.subr.bf16.mxu0 %v11031_v44  ;;  %9229 = vmatprep.subr.bf16.mxu1 %v11031_v44 }
 0x777   : > { %9214 = vmatpush3.bf16.msra.mxu0 %v11031_v44  ;;  %9230 = vmatpush3.bf16.msra.mxu1 %v11031_v44 }
 0x778   : > { %9263 = vmatprep.subr.bf16.mxu1 %v11019_v35  ;;  %9239 = vmatprep.subr.bf16.mxu0 %v10207_v46 }
 0x77a   : > { %9232 = vmatmul.mubr.msk.bf16.vlgmr.msra.gmra.mrb[52].mxu1 %vm874_vm0, %v10196_v47  ;;  %9216 = vmatmul.mubr.msk.bf16.vlgmr.msra.gmra.mrb[32].mxu0 %vm874_vm0, %v10200_v48 }
 0x77b   : > { %9264 = vmatpush3.bf16.msra.mxu1 %v11019_v35  ;;  %9235 = vmatprep.mubr.msk.bf16.mxu1 %vm874_vm0, %v10197_v28  ;;  %v2810_v28 = vpop.permute.xlu1 %2809 }
 0x77c   : > { %9265 = vmatprep.subr.bf16.mxu1 %v11017_v33  ;;  %9219 = vmatprep.mubr.msk.bf16.mxu0 %vm874_vm0, %v10201_v53 }
 0x77d   : > { %9240 = vmatpush3.bf16.msra.mxu0 %v10207_v46 }
 0x77e   : > { %9241 = vmatprep.subr.bf16.mxu0 %v10208_v49 }
 0x77f   : > { %9266 = vmatpush3.bf16.msra.mxu1 %v11017_v33 }
 0x780   : > { %9267 = vmatprep.subr.bf16.mxu1 %v11035_v19 }
 0x781   : > { %9242 = vmatpush3.bf16.msra.mxu0 %v10208_v49 }
 0x782   : > { %9236 = vmatmul.mubr.msk.bf16.gmra.mrb[56].mxu1 %vm874_vm0, %v10198_v54  ;;  %9220 = vmatmul.mubr.msk.bf16.gmra.mrb[36].mxu0 %vm874_vm0, %v10202_v55  ;;  %v2805_v55 = vpop.permute.xlu0 %2804 }
 0x783   : > { %9268 = vmatpush3.bf16.msra.mxu1 %v11035_v19  ;;  %9271 = vmatprep.mubr.msk.bf16.mxu1 %vm874_vm0, %v10203_v50 }
 0x784   : > { %9269 = vmatprep.subr.bf16.mxu1 %v11031_v44  ;;  %9251 = vmatprep.subr.bf16.mxu0 %v10209_v58 }
 0x787   : > { %9270 = vmatpush3.bf16.msra.mxu1 %v11031_v44 }
 0x788   : > { %9291 = vmatprep.subr.bf16.mxu1 %v11105_v59 }
 0x78a   : > { %9272 = vmatmul.mubr.msk.bf16.vlgmr.msra.gmra.mrb[60].mxu1 %vm874_vm0, %v10204_v51 }
 0x78b   : > { %9275 = vmatprep.mubr.msk.bf16.mxu1 %vm874_vm0, %v10205_v56  ;;  %9292 = vmatpush3.bf16.msra.mxu1 %v11105_v59 }
 0x792   : > { %9276 = vmatmul.mubr.msk.bf16.gmra.mrb[64].mxu1 %vm874_vm0, %v10206_v57 }
 0x84d   : > { %v9233_v60 = vpop.f32.mrb[52].mxu1  ;;  %v9217_v29 = vpop.f32.mrb[32].mxu0 }
 0x84e   : > { %v2344_v30 = vpop.f32.mrb[53].mxu1  ;;  %v2230_v31 = vpop.f32.mrb[33].mxu0 }
 0x84f   : > { %v9234_v32 = vpop.f32.mrb[54].mxu1  ;;  %v9218_v61 = vpop.f32.mrb[34].mxu0 }
 0x850   : > { %v2381_v62 = vpack.c.bf16 %v9234_v32, %v9233_v60  ;;  %v2347_v0 = vpop.f32.mrb[55].mxu1  ;;  %v2266_v3 = vpack.c.bf16 %v9218_v61, %v9217_v29  ;;  %v2233_v5 = vpop.f32.mrb[35].mxu0 }
 0x851   : > { %v2380_v6 = vpack.c.bf16 %v2347_v0, %v2344_v30  ;;  %v2265_v7 = vpack.c.bf16 %v2233_v5, %v2230_v31  ;;  %v2815_v31 = vpop.permute.xlu0 %2814  ;;  %v10214_v5 = vld [vmem:[%s12300_s6] sm:$0xff]  }
 0x853   : > { %9243 = vmatprep.mubr.msk.bf16.mxu0 %vm1599_vm1, %v2380_v6  ;;  %v11165_v6 = vld [vmem:[%s12260_s26] sm:$0x3] }
 0x854   : > { %9244 = vmatmul.mubr.msk.bf16.vlgmr.msra.gmra.mrb[40].mxu0 %vm1599_vm1, %v2381_v62 }
 0x855   : > { %v9237_v9 = vpop.f32.mrb[56].mxu1  ;;  %9252 = vmatpush3.bf16.msra.mxu0 %v10209_v58  ;;  %v9221_v10 = vpop.f32.mrb[36].mxu0 }
 0x856   : > { %v2360_v11 = vpop.f32.mrb[57].mxu1  ;;  %9253 = vmatprep.subr.bf16.mxu0 %v10210_v8  ;;  %v2246_v12 = vpop.f32.mrb[37].mxu0 }
 0x857   : > { %v9238_v18 = vpop.f32.mrb[58].mxu1  ;;  %v9222_v20 = vpop.f32.mrb[38].mxu0 }
 0x858   : > { %v2383_v21 = vpack.c.bf16 %v9238_v18, %v9237_v9  ;;  %v2363_v22 = vpop.f32.mrb[59].mxu1  ;;  %v2268_v23 = vpack.c.bf16 %v9222_v20, %v9221_v10  ;;  %v2249_v24 = vpop.f32.mrb[39].mxu0 }
 0x859   : > { %v2382_v25 = vpack.c.bf16 %v2363_v22, %v2360_v11  ;;  %9254 = vmatpush3.bf16.msra.mxu0 %v10210_v8  ;;  %v2267_v17 = vpack.c.bf16 %v2249_v24, %v2246_v12  ;;  %v2820_v58 = vpop.permute.xlu1 %2819 }
 0x85a   : > { %9279 = vmatprep.subr.bf16.mxu0 %v10211_v14 }
 0x85b   : > { %9247 = vmatprep.mubr.msk.bf16.mxu0 %vm1599_vm1, %v2382_v25  ;;  %v11177_v25 = vld [vmem:[%s12300_s6 + $0x8] sm:$0xff]  }
 0x85c   : > { %9248 = vmatmul.mubr.msk.bf16.gmra.mrb[44].mxu0 %vm1599_vm1, %v2383_v21 }
 0x85d   : > { %9255 = vmatprep.mubr.msk.bf16.mxu0 %vm1599_vm1, %v2265_v7  ;;  %v9273_v26 = vpop.f32.mrb[60].mxu1  ;;  %v11171_v7 = vsel %vm1795_vm2, %v11165_v6, 0 }
 0x85e   : > { %v2637_v1 = vpop.f32.mrb[61].mxu1 }
 0x85f   : > { %v9274_v27 = vpop.f32.mrb[62].mxu1 }
 0x860   : > { %v2674_v63 = vpack.c.bf16 %v9274_v27, %v9273_v26  ;;  %v2640_v34 = vpop.f32.mrb[63].mxu1  ;;  %v11195_v26 = vld [vmem:[%s12300_s6 + $0x18] sm:$0xff]  }
 0x861   : > { %v2673_v2 = vpack.c.bf16 %v2640_v34, %v2637_v1 }
 0x864   : > { %9256 = vmatmul.mubr.msk.bf16.vlgmr.msra.gmra.mrb[40].mxu0 %vm1599_vm1, %v2266_v3 }
 0x865   : > { %9280 = vmatpush3.bf16.msra.mxu0 %v10211_v14  ;;  %9259 = vmatprep.mubr.msk.bf16.mxu0 %vm1599_vm1, %v2267_v17  ;;  %v9277_v4 = vpop.f32.mrb[64].mxu1  ;;  %v11182_v17 = vld [vmem:[%s12300_s6 + $0x10] sm:$0xff]  }
 0x866   : > { %9281 = vmatprep.subr.bf16.mxu0 %v10212_v36  ;;  %v2653_v37 = vpop.f32.mrb[65].mxu1 }
 0x867   : > { %v9278_v38 = vpop.f32.mrb[66].mxu1 }
 0x868   : > { %v2676_v39 = vpack.c.bf16 %v9278_v38, %v9277_v4  ;;  %v2656_v40 = vpop.f32.mrb[67].mxu1 }
 0x869   : > { %9282 = vmatpush3.bf16.msra.mxu0 %v10212_v36  ;;  %v2675_v41 = vpack.c.bf16 %v2656_v40, %v2653_v37 }
 0x86a   : > { %10137 = vmatprep.subr.msk.bf16.mxu0 %vm1795_vm2, %v11165_v6 }
 0x86c   : > { %9260 = vmatmul.mubr.msk.bf16.gmra.mrb[44].mxu0 %vm1599_vm1, %v2268_v23 }
 0x86d   : > { %9283 = vmatprep.mubr.msk.bf16.mxu0 %vm1599_vm1, %v2673_v2 }
 0x874   : > { %9284 = vmatmul.mubr.msk.bf16.vlgmr.msra.gmra.mrb[40].mxu0 %vm1599_vm1, %v2674_v63 }
 0x875   : > { %9287 = vmatprep.mubr.msk.bf16.mxu0 %vm1599_vm1, %v2675_v41  ;;  %9318 = vmatpush3.bf16.msra.mxu0 %v11171_v7 }
 0x87c   : > { %9288 = vmatmul.mubr.msk.bf16.gmra.mrb[44].mxu0 %vm1599_vm1, %v2676_v39 }
 0x947   : > { %v9285_v43 = vpop.f32.mrb[40].mxu0 }
 0x948   : > { %v2735_v45 = vpop.f32.mrb[41].mxu0  ;;  %v11136_v54 = vadd.f32 %v9285_v43, %v2795_v42 }
 0x949   : > { %v9286_v46 = vpop.f32.mrb[42].mxu0  ;;  %v11132_v53 = vadd.f32 %v2785_v13, %v2735_v45 }
 0x94a   : > { %v11130_v47 = vadd.f32 %v9286_v46, %v2800_v16  ;;  %v2738_v48 = vpop.f32.mrb[43].mxu0 }
 0x94b   : > { %v11134_v49 = vadd.f32 %v2790_v15, %v2738_v48 }
 0x94c   : > { %v2843_v51 = vpack.c.bf16 %v11130_v47, %v11136_v54 }
 0x94d   : > { %v2842_v50 = vpack.c.bf16 %v11134_v49, %v11132_v53 }
 0x94f   : > { %v9289_v56 = vpop.f32.mrb[44].mxu0  ;;  %9293 = vmatprep.mubr.msk.bf16.mxu1 %vm2852_vm12, %v2842_v50 }
 0x950   : > { %v2751_v57 = vpop.f32.mrb[45].mxu0  ;;  %9294 = vmatmul.mubr.msk.bf16.vlgmr.msra.gmra.mrb[68].mxu1 %vm2852_vm12, %v2843_v51  ;;  %v11150_v62 = vadd.f32 %v9289_v56, %v2815_v31 }
 0x951   : > { %v9290_v60 = vpop.f32.mrb[46].mxu0  ;;  %v11146_v32 = vadd.f32 %v2805_v55, %v2751_v57 }
 0x952   : > { %v11144_v29 = vadd.f32 %v9290_v60, %v2820_v58  ;;  %v2754_v30 = vpop.f32.mrb[47].mxu0 }
 0x953   : > { %v11148_v61 = vadd.f32 %v2810_v28, %v2754_v30 }
 0x954   : > { %v2845_v3 = vpack.c.bf16 %v11144_v29, %v11150_v62 }
 0x955   : > { %v2844_v0 = vpack.c.bf16 %v11148_v61, %v11146_v32 }
 0x957   : > { %9297 = vmatprep.mubr.msk.bf16.mxu1 %vm2852_vm12, %v2844_v0 }
 0x958   : > { %9298 = vmatmul.mubr.msk.bf16.gmra.mrb[72].mxu1 %vm2852_vm12, %v2845_v3 }
 0x959   : > { %9309 = vmatprep.mubr.msk.bf16.mxu1 %vm874_vm0, %v10214_v5 }
 0xa23   : > { %v9295_v8 = vpop.f32.mrb[68].mxu1 }
 0xa24   : > { %v2899_v9 = vpop.f32.mrb[69].mxu1 }
 0xa25   : > { %v9296_v10 = vpop.f32.mrb[70].mxu1 }
 0xa26   : > { %v2931_v11 = vpack.c.bf16 %v9296_v10, %v9295_v8  ;;  %v2902_v12 = vpop.f32.mrb[71].mxu1 }
 0xa27   : > { %v2930_v14 = vpack.c.bf16 %v2902_v12, %v2899_v9 }
 0xa29   : > { %9301 = vmatprep.subr.bf16.mxu1 %v2930_v14 }
 0xa2a   : > { %9302 = vmatpush3.bf16.msra.mxu1 %v2930_v14 }
 0xa2b   : > { %v9299_v18 = vpop.f32.mrb[72].mxu1  ;;  %9303 = vmatprep.subr.bf16.mxu1 %v2931_v11 }
 0xa2c   : > { %v2915_v20 = vpop.f32.mrb[73].mxu1 }
 0xa2d   : > { %v9300_v21 = vpop.f32.mrb[74].mxu1 }
 0xa2e   : > { %v2933_v22 = vpack.c.bf16 %v9300_v21, %v9299_v18  ;;  %v2918_v23 = vpop.f32.mrb[75].mxu1  ;;  %9304 = vmatpush3.bf16.msra.mxu1 %v2931_v11 }
 0xa2f   : > { %v2932_v24 = vpack.c.bf16 %v2918_v23, %v2915_v20 }
 0xa31   : > { %9305 = vmatprep.subr.bf16.mxu1 %v2932_v24 }
 0xa32   : > { %9306 = vmatpush3.bf16.msra.mxu1 %v2932_v24 }
 0xa33   : > { %9307 = vmatprep.subr.bf16.mxu1 %v2933_v22 }
 0xa36   : > { %9308 = vmatpush3.bf16.msra.mxu1 %v2933_v22 }
 0xa37   : > { %9327 = vmatprep.subr.bf16.mxu1 %v11105_v59 }
 0xa39   : > { %9310 = vmatmul.mubr.msk.bf16.vlgmr.msra.gmra.mrb[76].mxu1 %vm874_vm0, %v11177_v25 }
 0xa3a   : > { %9313 = vmatprep.mubr.msk.bf16.mxu1 %vm874_vm0, %v11182_v17  ;;  %9328 = vmatpush3.bf16.msra.mxu1 %v11105_v59 }
 0xa3b   : > { %10138 = vmatprep.subr.msk.bf16.mxu1 %vm1795_vm2, %v11165_v6 }
 0xa41   : > { %9314 = vmatmul.mubr.msk.bf16.gmra.mrb[80].mxu1 %vm874_vm0, %v11195_v26 }
 0xb0c   : > { %v9311_v1 = vpop.f32.mrb[76].mxu1 }
 0xb0d   : > { %v3000_v27 = vpop.f32.mrb[77].mxu1 }
 0xb0e   : > { %v9312_v63 = vpop.f32.mrb[78].mxu1 }
 0xb0f   : > { %v3032_v34 = vpack.c.bf16 %v9312_v63, %v9311_v1  ;;  %v3003_v2 = vpop.f32.mrb[79].mxu1 }
 0xb10   : > { %v3031_v36 = vpack.c.bf16 %v3003_v2, %v3000_v27 }
 0xb12   : > { %9319 = vmatprep.mubr.msk.bf16.mxu0 %vm1782_vm3, %v3031_v36 }
 0xb13   : > { %9320 = vmatmul.mubr.msk.bf16.vlgmr.msra.gmra.mrb[48].mxu0 %vm1782_vm3, %v3032_v34 }
 0xb14   : > { %v9315_v4 = vpop.f32.mrb[80].mxu1 }
 0xb15   : > { %v3016_v37 = vpop.f32.mrb[81].mxu1 }
 0xb16   : > { %v9316_v38 = vpop.f32.mrb[82].mxu1 }
 0xb17   : > { %v3034_v39 = vpack.c.bf16 %v9316_v38, %v9315_v4  ;;  %v3019_v40 = vpop.f32.mrb[83].mxu1 }
 0xb18   : > { %v3033_v41 = vpack.c.bf16 %v3019_v40, %v3016_v37 }
 0xb1a   : > { %9323 = vmatprep.mubr.msk.bf16.mxu0 %vm1782_vm3, %v3033_v41 }
 0xb1b   : > { %9324 = vmatmul.mubr.msk.bf16.gmra.mrb[52].mxu0 %vm1782_vm3, %v3034_v39 }
 0xb1c   : > { %9345 = vmatprep.mubr.msk.bf16.mxu0 %vm874_vm0, %v10214_v5 }
 0xbe6   : > { %v9321_v15 = vpop.f32.mrb[48].mxu0 }
 0xbe7   : > { %v3084_v13 = vpop.f32.mrb[49].mxu0  ;;  %v11208_v43 = vsub.f32 %v11136_v54, %v9321_v15 }
 0xbe8   : > { %v11205_v16 = vsub.f32 %v11132_v53, %v3084_v13  ;;  %v9322_v42 = vpop.f32.mrb[50].mxu0 }
 0xbe9   : > { %v11211_v45 = vsub.f32 %v11130_v47, %v9322_v42  ;;  %v3087_v46 = vpop.f32.mrb[51].mxu0  ;;  %v3125_v54 = vmul.f32 %v11208_v43, %v11208_v43 }
 0xbea   : > { %v11214_v48 = vsub.f32 %v11134_v49, %v3087_v46  ;;  %v3123_v55 = vmul.f32 %v11205_v16, %v11205_v16 }
 0xbeb   : > { %v3126_v28 = vmul.f32 %v11211_v45, %v11211_v45 }
 0xbec   : > { %v3124_v53 = vmul.f32 %v11214_v48, %v11214_v48 }
 0xbed   : > { %v3132_v47 = vpack.c.bf16 %v3126_v28, %v3125_v54 }
 0xbee   : > { %v3131_v50 = vpack.c.bf16 %v3124_v53, %v3123_v55  ;;  %v9325_v51 = vpop.f32.mrb[52].mxu0 }
 0xbef   : > { %v3100_v56 = vpop.f32.mrb[53].mxu0  ;;  %v11229_v58 = vsub.f32 %v11150_v62, %v9325_v51 }
 0xbf0   : > { %v11225_v57 = vsub.f32 %v11146_v32, %v3100_v56  ;;  %v9326_v49 = vpop.f32.mrb[54].mxu0  ;;  %9329 = vmatprep.mubr.msk.bf16.mxu1 %vm2852_vm12, %v3131_v50 }
 0xbf1   : > { %v11232_v60 = vsub.f32 %v11144_v29, %v9326_v49  ;;  %v3103_v30 = vpop.f32.mrb[55].mxu0  ;;  %9330 = vmatmul.mubr.msk.bf16.vlgmr.msra.gmra.mrb[84].mxu1 %vm2852_vm12, %v3132_v47  ;;  %v3129_v29 = vmul.f32 %v11229_v58, %v11229_v58 }
 0xbf2   : > { %v11236_v31 = vsub.f32 %v11148_v61, %v3103_v30  ;;  %9354 = vmatpush3.bf16.msra.mxu1 %v11171_v7  ;;  %v3127_v0 = vmul.f32 %v11225_v57, %v11225_v57 }
 0xbf3   : > { %v3130_v32 = vmul.f32 %v11232_v60, %v11232_v60 }
 0xbf4   : > { %v3128_v62 = vmul.f32 %v11236_v31, %v11236_v31 }
 0xbf5   : > { %v3134_v5 = vpack.c.bf16 %v3130_v32, %v3129_v29 }
 0xbf6   : > { %v3133_v3 = vpack.c.bf16 %v3128_v62, %v3127_v0  ;;  %v3386_v0 = vstv %s8153_s9 }
 0xbf8   : > { %9333 = vmatprep.mubr.msk.bf16.mxu1 %vm2852_vm12, %v3133_v3 }
 0xbf9   : > { %9334 = vmatmul.mubr.msk.bf16.gmra.mrb[88].mxu1 %vm2852_vm12, %v3134_v5 }
 0xcc4   : > { %v9331_v61 = vpop.f32.mrb[84].mxu1 }
 0xcc5   : > { %v3181_v8 = vpop.f32.mrb[85].mxu1 }
 0xcc6   : > { %v9332_v9 = vpop.f32.mrb[86].mxu1 }
 0xcc7   : > { %v3213_v10 = vpack.c.bf16 %v9332_v9, %v9331_v61  ;;  %v3184_v11 = vpop.f32.mrb[87].mxu1 }
 0xcc8   : > { %v3212_v12 = vpack.c.bf16 %v3184_v11, %v3181_v8 }
 0xcca   : > { %9337 = vmatprep.subr.bf16.mxu0 %v3212_v12 }
 0xccb   : > { %9338 = vmatpush3.bf16.msra.mxu0 %v3212_v12 }
 0xccc   : > { %v9335_v14 = vpop.f32.mrb[88].mxu1  ;;  %9339 = vmatprep.subr.bf16.mxu0 %v3213_v10 }
 0xccd   : > { %v3197_v18 = vpop.f32.mrb[89].mxu1 }
 0xcce   : > { %v9336_v20 = vpop.f32.mrb[90].mxu1 }
 0xccf   : > { %v3215_v21 = vpack.c.bf16 %v9336_v20, %v9335_v14  ;;  %v3200_v22 = vpop.f32.mrb[91].mxu1  ;;  %9340 = vmatpush3.bf16.msra.mxu0 %v3213_v10 }
 0xcd0   : > { %v3214_v23 = vpack.c.bf16 %v3200_v22, %v3197_v18 }
 0xcd2   : > { %9341 = vmatprep.subr.bf16.mxu0 %v3214_v23 }
 0xcd3   : > { %9342 = vmatpush3.bf16.msra.mxu0 %v3214_v23 }
 0xcd4   : > { %9343 = vmatprep.subr.bf16.mxu0 %v3215_v21 }
 0xcd7   : > { %9344 = vmatpush3.bf16.msra.mxu0 %v3215_v21 }
 0xcda   : > { %9346 = vmatmul.mubr.msk.bf16.vlgmr.msra.gmra.mrb[56].mxu0 %vm874_vm0, %v11177_v25 }
 0xcdb   : > { %9349 = vmatprep.mubr.msk.bf16.mxu0 %vm874_vm0, %v11182_v17  ;;  %v10218_v17 = vld [vmem:[%s12301_s1 + $0x40] sm:$0xff]  }
 0xce2   : > { %9350 = vmatmul.mubr.msk.bf16.gmra.mrb[60].mxu0 %vm874_vm0, %v11195_v26  ;;  %v10226_v26 = vld [vmem:[%s12301_s1] sm:$0xff]  }
 0xce3   : > { %9371 = vmatprep.mubr.msk.bf16.mxu0 %vm874_vm0, %v10226_v26  ;;  %v10227_v26 = vld [vmem:[%s12301_s1 + $0x8] sm:$0xff]  }
 0xdad   : > { %v9347_v24 = vpop.f32.mrb[56].mxu0 }
 0xdae   : > { %v3250_v1 = vpop.f32.mrb[57].mxu0 }
 0xdaf   : > { %v9348_v27 = vpop.f32.mrb[58].mxu0 }
 0xdb0   : > { %v3282_v63 = vpack.c.bf16 %v9348_v27, %v9347_v24  ;;  %v3253_v34 = vpop.f32.mrb[59].mxu0 }
 0xdb1   : > { %v3281_v2 = vpack.c.bf16 %v3253_v34, %v3250_v1 }
 0xdb3   : > { %9355 = vmatprep.mubr.msk.bf16.mxu1 %vm1782_vm3, %v3281_v2 }
 0xdb4   : > { %9356 = vmatmul.mubr.msk.bf16.vlgmr.msra.gmra.mrb[92].mxu1 %vm1782_vm3, %v3282_v63 }
 0xdb5   : > { %v9351_v36 = vpop.f32.mrb[60].mxu0 }
 0xdb6   : > { %v3266_v4 = vpop.f32.mrb[61].mxu0 }
 0xdb7   : > { %v9352_v37 = vpop.f32.mrb[62].mxu0 }
 0xdb8   : > { %v3284_v25 = vpack.c.bf16 %v9352_v37, %v9351_v36  ;;  %v3269_v38 = vpop.f32.mrb[63].mxu0 }
 0xdb9   : > { %v3283_v39 = vpack.c.bf16 %v3269_v38, %v3266_v4 }
 0xdbb   : > { %9359 = vmatprep.mubr.msk.bf16.mxu1 %vm1782_vm3, %v3283_v39  ;;  %v10242_v39 = vld [vmem:[%s12302_s29 + $0x8] sm:$0xff]  }
 0xdbc   : > { %9360 = vmatmul.mubr.msk.bf16.gmra.mrb[96].mxu1 %vm1782_vm3, %v3284_v25 }
 0xdbd   : > { %9395 = vmatprep.mubr.msk.bf16.mxu1 %vm874_vm0, %v10218_v17  ;;  %v10219_v17 = vld [vmem:[%s12301_s1 + $0x48] sm:$0xff]  }
 0xe87   : > { %v9357_v40 = vpop.f32.mrb[92].mxu1 }
 0xe88   : > { %v3340_v41 = vadd.f32 1e-05, %v9357_v40  ;;  %v3331_v15 = vpop.f32.mrb[93].mxu1  ;;  %v10220_v40 = vld [vmem:[%s12301_s1 + $0x50] sm:$0xff]  }
 0xe89   : > { %v3332_v13 = vadd.f32 1e-05, %v3331_v15  ;;  %v9358_v42 = vpop.f32.mrb[94].mxu1  ;;  %v10221_v15 = vld [vmem:[%s12301_s1 + $0x58] sm:$0xff]  }
 0xe8a   : > { %10330 = vrsqrt.f32 %v3340_v41  ;;  %v3343_v46 = vadd.f32 1e-05, %v9358_v42  ;;  %v3334_v28 = vpop.f32.mrb[95].mxu1  ;;  %v10228_v41 = vld [vmem:[%s12301_s1 + $0x10] sm:$0xff]   ;;  %v10222_v42 = vld [vmem:[%s12301_s1 + $0x60] sm:$0xff]  }
 0xe8b   : > { %10332 = vrsqrt.f32 %v3332_v13  ;;  %v3335_v55 = vadd.f32 1e-05, %v3334_v28  ;;  %v10229_v13 = vld [vmem:[%s12301_s1 + $0x18] sm:$0xff]   ;;  %v10223_v28 = vld [vmem:[%s12301_s1 + $0x68] sm:$0xff]  }
 0xe8c   : > { %10334 = vrsqrt.f32 %v3343_v46  ;;  %v10230_v46 = vld [vmem:[%s12301_s1 + $0x20] sm:$0xff]  }
 0xe8d   : > { %10336 = vrsqrt.f32 %v3335_v55  ;;  %v10231_v55 = vld [vmem:[%s12301_s1 + $0x28] sm:$0xff]  }
 0xe8f   : > { %v9361_v53 = vpop.f32.mrb[96].mxu1 }
 0xe90   : > { %v3356_v54 = vadd.f32 1e-05, %v9361_v53  ;;  %v3347_v50 = vpop.f32.mrb[97].mxu1  ;;  %v10224_v53 = vld [vmem:[%s12301_s1 + $0x70] sm:$0xff]  }
 0xe91   : > { %v3348_v51 = vadd.f32 1e-05, %v3347_v50  ;;  %v9362_v47 = vpop.f32.mrb[98].mxu1  ;;  %v10225_v50 = vld [vmem:[%s12301_s1 + $0x78] sm:$0xff]  }
 0xe92   : > { %10338 = vrsqrt.f32 %v3356_v54  ;;  %v3359_v56 = vadd.f32 1e-05, %v9362_v47  ;;  %v3350_v49 = vpop.f32.mrb[99].mxu1  ;;  %v10232_v54 = vld [vmem:[%s12301_s1 + $0x30] sm:$0xff]   ;;  %v10234_v47 = vld [vmem:[%s12301_s1 + $0x80] sm:$0xff]  }
 0xe93   : > { %10340 = vrsqrt.f32 %v3348_v51  ;;  %v3351_v30 = vadd.f32 1e-05, %v3350_v49  ;;  %v10233_v51 = vld [vmem:[%s12301_s1 + $0x38] sm:$0xff]   ;;  %v10236_v49 = vld [vmem:[%s12301_s1 + $0x90] sm:$0xff]  }
 0xe94   : > { %v10331_v32 = vpop.eup %10330  ;;  %10342 = vrsqrt.f32 %v3359_v56  ;;  %v10235_v56 = vld [vmem:[%s12301_s1 + $0x88] sm:$0xff]  }
 0xe95   : > { %v10333_v62 = vpop.eup %10332  ;;  %v3372_v29 = vmul.f32 %v10331_v32, %v11208_v43  ;;  %10344 = vrsqrt.f32 %v3351_v30  ;;  %v10237_v30 = vld [vmem:[%s12301_s1 + $0x98] sm:$0xff]   ;;  %v10238_v32 = vld [vmem:[%s12301_s1 + $0xa0] sm:$0xff]  }
 0xe96   : > { %v10335_v3 = vpop.eup %10334  ;;  %v3370_v5 = vmul.f32 %v10333_v62, %v11205_v16  ;;  %v10241_v62 = vld [vmem:[%s12301_s1 + $0xb8] sm:$0xff]  }
 0xe97   : > { %v10337_v61 = vpop.eup %10336  ;;  %v3389_v8 = vmul.f32 %v3386_v0, %v3372_v29  ;;  %v3373_v9 = vmul.f32 %v10335_v3, %v11211_v45  ;;  %vm3380_vm13 = vcmp.ge.f32.partialorder %v3372_v29, 0.0 }
 0xe98   : > { %v3387_v10 = vmul.f32 %v3386_v0, %v3370_v5  ;;  %v3371_v11 = vmul.f32 %v10337_v61, %v11214_v48  ;;  %vm3378_vm14 = vcmp.ge.f32.partialorder %v3370_v5, 0.0 }
 0xe99   : > { %vm3381_vm15 = vcmp.ge.f32.partialorder %v3373_v9, 0.0  ;;  %v3390_v12 = vmul.f32 %v3386_v0, %v3373_v9  ;;  %v3397_v18 = vsel %vm3380_vm13, %v3372_v29, %v3389_v8  ;;  %v10243_v29 = vld [vmem:[%s12302_s29] sm:$0xff]  }
 0xe9a   : > { %vm3379_vm4 = vcmp.ge.f32.partialorder %v3371_v11, 0.0  ;;  %v3388_v14 = vmul.f32 %v3386_v0, %v3371_v11  ;;  %v3395_v21 = vsel %vm3378_vm14, %v3370_v5, %v3387_v10 }
 0xe9b   : > { %v3398_v20 = vsel %vm3381_vm15, %v3373_v9, %v3390_v12 }
 0xe9c   : > { %v10339_v43 = vpop.eup %10338  ;;  %v11271_v22 = vpack.c.bf16 %v3398_v20, %v3397_v18  ;;  %v3396_v16 = vsel %vm3379_vm4, %v3371_v11, %v3388_v14 }
 0xe9d   : > { %v10341_v23 = vpop.eup %10340  ;;  %v11273_v24 = vpack.c.bf16 %v3396_v16, %v3395_v21  ;;  %v3376_v45 = vmul.f32 %v10339_v43, %v11229_v58  ;;  %v10244_v21 = vld [vmem:[%s12302_s29 + $0x10] sm:$0xff]  }
 0xe9e   : > { %v10343_v1 = vpop.eup %10342  ;;  %v3374_v48 = vmul.f32 %v10341_v23, %v11225_v57 }
 0xe9f   : > { %v10345_v27 = vpop.eup %10344  ;;  %v3393_v63 = vmul.f32 %v3386_v0, %v3376_v45  ;;  %v3377_v34 = vmul.f32 %v10343_v1, %v11232_v60  ;;  %9363 = vmatprep.subr.bf16.mxu0 %v11273_v24  ;;  %9387 = vmatprep.subr.bf16.mxu1 %v11273_v24  ;;  %vm3384_vm5 = vcmp.ge.f32.partialorder %v3376_v45, 0.0 }
 0xea0   : > { %v3391_v2 = vmul.f32 %v3386_v0, %v3374_v48  ;;  %v3375_v36 = vmul.f32 %v10345_v27, %v11236_v31  ;;  %9364 = vmatpush3.bf16.msra.mxu0 %v11273_v24  ;;  %9388 = vmatpush3.bf16.msra.mxu1 %v11273_v24  ;;  %vm3382_vm6 = vcmp.ge.f32.partialorder %v3374_v48, 0.0 }
 0xea1   : > { %vm3385_vm7 = vcmp.ge.f32.partialorder %v3377_v34, 0.0  ;;  %v3394_v58 = vmul.f32 %v3386_v0, %v3377_v34  ;;  %9365 = vmatprep.subr.bf16.mxu0 %v11271_v22  ;;  %9389 = vmatprep.subr.bf16.mxu1 %v11271_v22  ;;  %v3401_v60 = vsel %vm3384_vm5, %v3376_v45, %v3393_v63 }
 0xea2   : > { %vm3383_vm8 = vcmp.ge.f32.partialorder %v3375_v36, 0.0  ;;  %v3392_v57 = vmul.f32 %v3386_v0, %v3375_v36  ;;  %v3399_v37 = vsel %vm3382_vm6, %v3374_v48, %v3391_v2  ;;  %v10239_v0 = vld [vmem:[%s12301_s1 + $0xa8] sm:$0xff]  }
 0xea3   : > { %v3402_v4 = vsel %vm3385_vm7, %v3377_v34, %v3394_v58 }
 0xea4   : > { %v11285_v25 = vpack.c.bf16 %v3402_v4, %v3401_v60  ;;  %v3400_v38 = vsel %vm3383_vm8, %v3375_v36, %v3392_v57  ;;  %9366 = vmatpush3.bf16.msra.mxu0 %v11271_v22  ;;  %9390 = vmatpush3.bf16.msra.mxu1 %v11271_v22 }
 0xea5   : > { %v11289_v31 = vpack.c.bf16 %v3400_v38, %v3399_v37 }
 0xea7   : > { %9367 = vmatprep.subr.bf16.mxu0 %v11289_v31  ;;  %9391 = vmatprep.subr.bf16.mxu1 %v11289_v31 }
 0xea8   : > { %9368 = vmatpush3.bf16.msra.mxu0 %v11289_v31  ;;  %9392 = vmatpush3.bf16.msra.mxu1 %v11289_v31 }
 0xea9   : > { %9369 = vmatprep.subr.bf16.mxu0 %v11285_v25  ;;  %9393 = vmatprep.subr.bf16.mxu1 %v11285_v25 }
 0xeac   : > { %9370 = vmatpush3.bf16.msra.mxu0 %v11285_v25  ;;  %9394 = vmatpush3.bf16.msra.mxu1 %v11285_v25 }
 0xead   : > { %9447 = vmatprep.subr.bf16.mxu1 %v11273_v24  ;;  %9411 = vmatprep.subr.bf16.mxu0 %v10242_v39 }
 0xeaf   : > { %9396 = vmatmul.mubr.msk.bf16.vlgmr.msra.gmra.mrb[100].mxu1 %vm874_vm0, %v10219_v17  ;;  %9372 = vmatmul.mubr.msk.bf16.vlgmr.msra.gmra.mrb[64].mxu0 %vm874_vm0, %v10227_v26 }
 0xeb0   : > { %9448 = vmatpush3.bf16.msra.mxu1 %v11273_v24  ;;  %9399 = vmatprep.mubr.msk.bf16.mxu1 %vm874_vm0, %v10220_v40 }
 0xeb1   : > { %9449 = vmatprep.subr.bf16.mxu1 %v11271_v22  ;;  %9375 = vmatprep.mubr.msk.bf16.mxu0 %vm874_vm0, %v10228_v41 }
 0xeb2   : > { %9412 = vmatpush3.bf16.msra.mxu0 %v10242_v39 }
 0xeb3   : > { %9429 = vmatprep.subr.bf16.mxu0 %v10243_v29 }
 0xeb4   : > { %9450 = vmatpush3.bf16.msra.mxu1 %v11271_v22 }
 0xeb5   : > { %9451 = vmatprep.subr.bf16.mxu1 %v11289_v31 }
 0xeb7   : > { %9400 = vmatmul.mubr.msk.bf16.gmra.mrb[104].mxu1 %vm874_vm0, %v10221_v15  ;;  %9376 = vmatmul.mubr.msk.bf16.gmra.mrb[68].mxu0 %vm874_vm0, %v10229_v13 }
 0xeb8   : > { %9452 = vmatpush3.bf16.msra.mxu1 %v11289_v31  ;;  %9403 = vmatprep.mubr.msk.bf16.mxu1 %vm874_vm0, %v10222_v42 }
 0xeb9   : > { %9453 = vmatprep.subr.bf16.mxu1 %v11285_v25  ;;  %9379 = vmatprep.mubr.msk.bf16.mxu0 %vm874_vm0, %v10230_v46 }
 0xebc   : > { %9454 = vmatpush3.bf16.msra.mxu1 %v11285_v25 }
 0xebd   : > { %9489 = vmatprep.subr.bf16.mxu1 %v11105_v59 }
 0xebf   : > { %9404 = vmatmul.mubr.msk.bf16.gmra.mrb[108].mxu1 %vm874_vm0, %v10223_v28  ;;  %9380 = vmatmul.mubr.msk.bf16.gmra.mrb[72].mxu0 %vm874_vm0, %v10231_v55 }
 0xec0   : > { %9407 = vmatprep.mubr.msk.bf16.mxu1 %vm874_vm0, %v10224_v53  ;;  %9383 = vmatprep.mubr.msk.bf16.mxu0 %vm874_vm0, %v10232_v54 }
 0xec7   : > { %9408 = vmatmul.mubr.msk.bf16.gmra.mrb[112].mxu1 %vm874_vm0, %v10225_v50  ;;  %9384 = vmatmul.mubr.msk.bf16.gmra.mrb[76].mxu0 %vm874_vm0, %v10233_v51 }
 0xec8   : > { %9455 = vmatprep.mubr.msk.bf16.mxu1 %vm874_vm0, %v10234_v47 }
 0xecf   : > { %9456 = vmatmul.mubr.msk.bf16.vlgmr.msra.gmra.mrb[116].mxu1 %vm874_vm0, %v10235_v56 }
 0xed0   : > { %9459 = vmatprep.mubr.msk.bf16.mxu1 %vm874_vm0, %v10236_v49  ;;  %9490 = vmatpush3.bf16.msra.mxu1 %v11105_v59  ;;  %v10240_v59 = vld [vmem:[%s12301_s1 + $0xb0] sm:$0xff]  }
 0xed7   : > { %9460 = vmatmul.mubr.msk.bf16.gmra.mrb[120].mxu1 %vm874_vm0, %v10237_v30 }
 0xed8   : > { %9463 = vmatprep.mubr.msk.bf16.mxu1 %vm874_vm0, %v10238_v32 }
 0xedf   : > { %9464 = vmatmul.mubr.msk.bf16.gmra.mrb[124].mxu1 %vm874_vm0, %v10239_v0 }
 0xee0   : > { %9467 = vmatprep.mubr.msk.bf16.mxu1 %vm874_vm0, %v10240_v59 }
 0xee7   : > { %9468 = vmatmul.mubr.msk.bf16.gmra.mrb[128].mxu1 %vm874_vm0, %v10241_v62 }
 0xf82   : > { %v9397_v3 = vpop.f32.mrb[100].mxu1  ;;  %v11403_v5 = vpop.f32.mrb[64].mxu0 }
 0xf83   : > { %v3709_v61 = vpop.f32.mrb[101].mxu1  ;;  %v3521_v8 = vpop.f32.mrb[65].mxu0 }
 0xf84   : > { %v9398_v9 = vpop.f32.mrb[102].mxu1  ;;  %v9374_v10 = vpop.f32.mrb[66].mxu0 }
 0xf85   : > { %v3776_v11 = vpack.c.bf16 %v9398_v9, %v9397_v3  ;;  %v3712_v12 = vpop.f32.mrb[103].mxu1  ;;  %v3587_v14 = vpack.c.bf16 %v9374_v10, %v11403_v5  ;;  %v3524_v18 = vpop.f32.mrb[67].mxu0 }
 0xf86   : > { %v3775_v20 = vpack.c.bf16 %v3712_v12, %v3709_v61  ;;  %v3586_v43 = vpack.c.bf16 %v3524_v18, %v3521_v8 }
 0xf88   : > { %9413 = vmatprep.mubr.msk.bf16.mxu0 %vm2852_vm12, %v3775_v20 }
 0xf89   : > { %9414 = vmatmul.mubr.msk.bf16.vlgmr.msra.gmra.mrb[80].mxu0 %vm2852_vm12, %v3776_v11 }
 0xf8a   : > { %v9401_v16 = vpop.f32.mrb[104].mxu1  ;;  %9430 = vmatpush3.bf16.msra.mxu0 %v10243_v29  ;;  %v9377_v23 = vpop.f32.mrb[68].mxu0 }
 0xf8b   : > { %v3725_v45 = vpop.f32.mrb[105].mxu1  ;;  %v3537_v1 = vpop.f32.mrb[69].mxu0  ;;  %9471 = vmatprep.subr.bf16.mxu0 %v10244_v21 }
 0xf8c   : > { %v9402_v48 = vpop.f32.mrb[106].mxu1  ;;  %v9378_v27 = vpop.f32.mrb[70].mxu0 }
 0xf8d   : > { %v3778_v63 = vpack.c.bf16 %v9402_v48, %v9401_v16  ;;  %v3728_v34 = vpop.f32.mrb[107].mxu1  ;;  %v3589_v2 = vpack.c.bf16 %v9378_v27, %v9377_v23  ;;  %v3540_v36 = vpop.f32.mrb[71].mxu0 }
 0xf8e   : > { %v3777_v58 = vpack.c.bf16 %v3728_v34, %v3725_v45  ;;  %v3588_v57 = vpack.c.bf16 %v3540_v36, %v3537_v1  ;;  %v4393_v34 = vpop.permute.xlu1 %4392 }
 0xf90   : > { %9417 = vmatprep.mubr.msk.bf16.mxu0 %vm2852_vm12, %v3777_v58 }
 0xf91   : > { %9418 = vmatmul.mubr.msk.bf16.gmra.mrb[84].mxu0 %vm2852_vm12, %v3778_v63 }
 0xf92   : > { %v9405_v60 = vpop.f32.mrb[108].mxu1  ;;  %v9381_v4 = vpop.f32.mrb[72].mxu0 }
 0xf93   : > { %v3741_v37 = vpop.f32.mrb[109].mxu1  ;;  %v3553_v38 = vpop.f32.mrb[73].mxu0 }
 0xf94   : > { %v9406_v39 = vpop.f32.mrb[110].mxu1  ;;  %v9382_v17 = vpop.f32.mrb[74].mxu0 }
 0xf95   : > { %v3780_v26 = vpack.c.bf16 %v9406_v39, %v9405_v60  ;;  %v3744_v40 = vpop.f32.mrb[111].mxu1  ;;  %v3591_v41 = vpack.c.bf16 %v9382_v17, %v9381_v4  ;;  %v3556_v15 = vpop.f32.mrb[75].mxu0 }
 0xf96   : > { %v3779_v13 = vpack.c.bf16 %v3744_v40, %v3741_v37  ;;  %v3590_v42 = vpack.c.bf16 %v3556_v15, %v3553_v38  ;;  %v4403_v36 = vpop.permute.xlu1 %4402 }
 0xf98   : > { %9421 = vmatprep.mubr.msk.bf16.mxu0 %vm2852_vm12, %v3779_v13 }
 0xf99   : > { %9422 = vmatmul.mubr.msk.bf16.gmra.mrb[88].mxu0 %vm2852_vm12, %v3780_v26 }
 0xf9a   : > { %v9409_v46 = vpop.f32.mrb[112].mxu1  ;;  %v9385_v28 = vpop.f32.mrb[76].mxu0 }
 0xf9b   : > { %v3757_v55 = vpop.f32.mrb[113].mxu1  ;;  %v3569_v53 = vpop.f32.mrb[77].mxu0 }
 0xf9c   : > { %v9410_v54 = vpop.f32.mrb[114].mxu1  ;;  %v9386_v50 = vpop.f32.mrb[78].mxu0 }
 0xf9d   : > { %v3782_v51 = vpack.c.bf16 %v9410_v54, %v9409_v46  ;;  %v3760_v47 = vpop.f32.mrb[115].mxu1  ;;  %v3593_v56 = vpack.c.bf16 %v9386_v50, %v9385_v28  ;;  %v3572_v49 = vpop.f32.mrb[79].mxu0 }
 0xf9e   : > { %v3781_v30 = vpack.c.bf16 %v3760_v47, %v3757_v55  ;;  %v3592_v32 = vpack.c.bf16 %v3572_v49, %v3569_v53 }
 0xfa0   : > { %9425 = vmatprep.mubr.msk.bf16.mxu0 %vm2852_vm12, %v3781_v30 }
 0xfa1   : > { %9426 = vmatmul.mubr.msk.bf16.gmra.mrb[92].mxu0 %vm2852_vm12, %v3782_v51 }
 0xfa2   : > { %9431 = vmatprep.mubr.msk.bf16.mxu0 %vm2852_vm12, %v3586_v43  ;;  %v9457_v0 = vpop.f32.mrb[116].mxu1 }
 0xfa3   : > { %v4152_v59 = vpop.f32.mrb[117].mxu1 }
 0xfa4   : > { %v9458_v62 = vpop.f32.mrb[118].mxu1 }
 0xfa5   : > { %v4219_v29 = vpack.c.bf16 %v9458_v62, %v9457_v0  ;;  %v4155_v3 = vpop.f32.mrb[119].mxu1 }
 0xfa6   : > { %v4218_v5 = vpack.c.bf16 %v4155_v3, %v4152_v59 }
 0xfa9   : > { %9432 = vmatmul.mubr.msk.bf16.vlgmr.msra.gmra.mrb[80].mxu0 %vm2852_vm12, %v3587_v14 }
 0xfaa   : > { %9472 = vmatpush3.bf16.msra.mxu0 %v10244_v21  ;;  %9435 = vmatprep.mubr.msk.bf16.mxu0 %vm2852_vm12, %v3588_v57  ;;  %v9461_v61 = vpop.f32.mrb[120].mxu1  ;;  %v4413_v57 = vpop.permute.xlu1 %4412 }
 0xfab   : > { %v4168_v8 = vpop.f32.mrb[121].mxu1  ;;  %10139 = vmatprep.subr.msk.bf16.mxu0 %vm1795_vm2, %v11165_v6 }
 0xfac   : > { %v9462_v9 = vpop.f32.mrb[122].mxu1 }
 0xfad   : > { %v4221_v10 = vpack.c.bf16 %v9462_v9, %v9461_v61  ;;  %v4171_v11 = vpop.f32.mrb[123].mxu1 }
 0xfae   : > { %v4220_v12 = vpack.c.bf16 %v4171_v11, %v4168_v8  ;;  %v4423_v38 = vpop.permute.xlu1 %4422 }
 0xfb1   : > { %9436 = vmatmul.mubr.msk.bf16.gmra.mrb[84].mxu0 %vm2852_vm12, %v3589_v2  ;;  %v4388_v2 = vpop.permute.xlu0 %4387 }
 0xfb2   : > { %9439 = vmatprep.mubr.msk.bf16.mxu0 %vm2852_vm12, %v3590_v42  ;;  %v9465_v18 = vpop.f32.mrb[124].mxu1  ;;  %v4433_v28 = vpop.permute.xlu1 %4432 }
 0xfb3   : > { %v4184_v20 = vpop.f32.mrb[125].mxu1 }
 0xfb4   : > { %v9466_v43 = vpop.f32.mrb[126].mxu1 }
 0xfb5   : > { %v4223_v14 = vpack.c.bf16 %v9466_v43, %v9465_v18  ;;  %v4187_v21 = vpop.f32.mrb[127].mxu1  ;;  %v4398_v58 = vpop.permute.xlu0 %4397 }
 0xfb6   : > { %v4222_v16 = vpack.c.bf16 %v4187_v21, %v4184_v20 }
 0xfb9   : > { %9440 = vmatmul.mubr.msk.bf16.gmra.mrb[88].mxu0 %vm2852_vm12, %v3591_v41  ;;  %v4408_v60 = vpop.permute.xlu0 %4407 }
 0xfba   : > { %9443 = vmatprep.mubr.msk.bf16.mxu0 %vm2852_vm12, %v3592_v32  ;;  %v9469_v23 = vpop.f32.mrb[128].mxu1  ;;  %v4443_v32 = vpop.permute.xlu1 %4442 }
 0xfbb   : > { %v4200_v45 = vpop.f32.mrb[129].mxu1 }
 0xfbc   : > { %v9470_v1 = vpop.f32.mrb[130].mxu1 }
 0xfbd   : > { %v4225_v48 = vpack.c.bf16 %v9470_v1, %v9469_v23  ;;  %v4203_v27 = vpop.f32.mrb[131].mxu1  ;;  %v4418_v40 = vpop.permute.xlu0 %4417 }
 0xfbe   : > { %v4224_v63 = vpack.c.bf16 %v4203_v27, %v4200_v45  ;;  %v4453_v9 = vpop.permute.xlu1 %4452 }
 0xfc1   : > { %9444 = vmatmul.mubr.msk.bf16.gmra.mrb[92].mxu0 %vm2852_vm12, %v3593_v56  ;;  %v4428_v54 = vpop.permute.xlu0 %4427 }
 0xfc2   : > { %9473 = vmatprep.mubr.msk.bf16.mxu0 %vm2852_vm12, %v4218_v5 }
 0xfc5   : > { %v4438_v62 = vpop.permute.xlu0 %4437 }
 0xfc9   : > { %9474 = vmatmul.mubr.msk.bf16.vlgmr.msra.gmra.mrb[80].mxu0 %vm2852_vm12, %v4219_v29  ;;  %v4448_v18 = vpop.permute.xlu0 %4447 }
 0xfca   : > { %9477 = vmatprep.mubr.msk.bf16.mxu0 %vm2852_vm12, %v4220_v12  ;;  %9540 = vmatpush3.bf16.msra.mxu0 %v11171_v7 }
 0xfd1   : > { %9478 = vmatmul.mubr.msk.bf16.gmra.mrb[84].mxu0 %vm2852_vm12, %v4221_v10 }
 0xfd2   : > { %9481 = vmatprep.mubr.msk.bf16.mxu0 %vm2852_vm12, %v4222_v16  ;;  %v4463_v16 = vpop.permute.xlu1 %4462 }
 0xfd9   : > { %9482 = vmatmul.mubr.msk.bf16.gmra.mrb[88].mxu0 %vm2852_vm12, %v4223_v14 }
 0xfda   : > { %9485 = vmatprep.mubr.msk.bf16.mxu0 %vm2852_vm12, %v4224_v63 }
 0xfe1   : > { %9486 = vmatmul.mubr.msk.bf16.gmra.mrb[92].mxu0 %vm2852_vm12, %v4225_v48  ;;  %v4458_v48 = vpop.permute.xlu0 %4457 }
0x109c   : > { %v9475_v4 = vpop.f32.mrb[80].mxu0 }
0x109d   : > { %v4290_v37 = vpop.f32.mrb[81].mxu0  ;;  %v11442_v13 = vadd.f32 %v9475_v4, %v4398_v58  ;;  %v11495_v58 = vld [vmem:[%s12247_s13] sm:$0xff]  }
0x109e   : > { %v9476_v39 = vpop.f32.mrb[82].mxu0  ;;  %v11438_v41 = vadd.f32 %v4388_v2, %v4290_v37 }
0x109f   : > { %v11436_v17 = vadd.f32 %v9476_v39, %v4403_v36  ;;  %v4293_v26 = vpop.f32.mrb[83].mxu0 }
0x10a0   : > { %v11440_v15 = vadd.f32 %v4393_v34, %v4293_v26 }
0x10a1   : > { %v4499_v46 = vpack.c.bf16 %v11436_v17, %v11442_v13 }
0x10a2   : > { %v4498_v42 = vpack.c.bf16 %v11440_v15, %v11438_v41 }
0x10a4   : > { %v9479_v55 = vpop.f32.mrb[84].mxu0  ;;  %9491 = vmatprep.mubr.msk.bf16.mxu1 %vm2852_vm12, %v4498_v42 }
0x10a5   : > { %v4306_v53 = vpop.f32.mrb[85].mxu0  ;;  %9492 = vmatmul.mubr.msk.bf16.vlgmr.msra.gmra.mrb[132].mxu1 %vm2852_vm12, %v4499_v46  ;;  %v11456_v30 = vadd.f32 %v9479_v55, %v4418_v40 }
0x10a6   : > { %v9480_v50 = vpop.f32.mrb[86].mxu0  ;;  %v11452_v56 = vadd.f32 %v4408_v60, %v4306_v53 }
0x10a7   : > { %v11450_v51 = vadd.f32 %v9480_v50, %v4423_v38  ;;  %v4309_v47 = vpop.f32.mrb[87].mxu0 }
0x10a8   : > { %v11454_v49 = vadd.f32 %v4413_v57, %v4309_v47 }
0x10a9   : > { %v4501_v59 = vpack.c.bf16 %v11450_v51, %v11456_v30 }
0x10aa   : > { %v4500_v0 = vpack.c.bf16 %v11454_v49, %v11452_v56 }
0x10ac   : > { %v9483_v29 = vpop.f32.mrb[88].mxu0  ;;  %9495 = vmatprep.mubr.msk.bf16.mxu1 %vm2852_vm12, %v4500_v0 }
0x10ad   : > { %v4322_v3 = vpop.f32.mrb[89].mxu0  ;;  %9496 = vmatmul.mubr.msk.bf16.gmra.mrb[136].mxu1 %vm2852_vm12, %v4501_v59  ;;  %v11470_v12 = vadd.f32 %v9483_v29, %v4438_v62 }
0x10ae   : > { %v9484_v5 = vpop.f32.mrb[90].mxu0  ;;  %v11466_v10 = vadd.f32 %v4428_v54, %v4322_v3 }
0x10af   : > { %v11464_v61 = vadd.f32 %v9484_v5, %v4443_v32  ;;  %v4325_v8 = vpop.f32.mrb[91].mxu0 }
0x10b0   : > { %v11468_v11 = vadd.f32 %v4433_v28, %v4325_v8 }
0x10b1   : > { %v4503_v43 = vpack.c.bf16 %v11464_v61, %v11470_v12 }
0x10b2   : > { %v4502_v20 = vpack.c.bf16 %v11468_v11, %v11466_v10 }
0x10b4   : > { %v9487_v14 = vpop.f32.mrb[92].mxu0  ;;  %9499 = vmatprep.mubr.msk.bf16.mxu1 %vm2852_vm12, %v4502_v20  ;;  %v10394_v20 = vld [vmem:[%s12259_s25] sm:$0xff]  }
0x10b5   : > { %v4338_v21 = vpop.f32.mrb[93].mxu0  ;;  %9500 = vmatmul.mubr.msk.bf16.gmra.mrb[140].mxu1 %vm2852_vm12, %v4503_v43  ;;  %v11484_v34 = vadd.f32 %v9487_v14, %v4458_v48  ;;  %v11518_v43 = vld [vmem:[%s12247_s13 + $0x18] sm:$0xff]   ;;  %v11523_v14 = vld [vmem:[%s12247_s13 + $0x20] sm:$0xff]  }
0x10b6   : > { %v9488_v23 = vpop.f32.mrb[94].mxu0  ;;  %v11480_v27 = vadd.f32 %v4448_v18, %v4338_v21  ;;  %v11506_v18 = vld [vmem:[%s12247_s13 + $0x10] sm:$0xff]   ;;  %v11530_v21 = vld [vmem:[%s12247_s13 + $0x28] sm:$0xff]  }
0x10b7   : > { %v11478_v45 = vadd.f32 %v9488_v23, %v4463_v16  ;;  %v4341_v1 = vpop.f32.mrb[95].mxu0  ;;  %v11542_v16 = vld [vmem:[%s12247_s13 + $0x38] sm:$0xff]  }
0x10b8   : > { %v11482_v63 = vadd.f32 %v4453_v9, %v4341_v1  ;;  %v11501_v9 = vld [vmem:[%s12247_s13 + $0x8] sm:$0xff]  }
0x10b9   : > { %v4505_v36 = vpack.c.bf16 %v11478_v45, %v11484_v34 }
0x10ba   : > { %v4504_v2 = vpack.c.bf16 %v11482_v63, %v11480_v27 }
0x10bc   : > { %9503 = vmatprep.mubr.msk.bf16.mxu1 %vm2852_vm12, %v4504_v2 }
0x10bd   : > { %9504 = vmatmul.mubr.msk.bf16.gmra.mrb[144].mxu1 %vm2852_vm12, %v4505_v36 }
0x10be   : > { %9523 = vmatprep.mubr.bf16.mxu1 %v11495_v58 }
0x1178   : > { %v9493_v57 = vpop.f32.mrb[132].mxu1 }
0x1179   : > { %v4564_v60 = vpop.f32.mrb[133].mxu1 }
0x117a   : > { %v9494_v4 = vpop.f32.mrb[134].mxu1 }
0x117b   : > { %v4628_v37 = vpack.c.bf16 %v9494_v4, %v9493_v57  ;;  %v4567_v38 = vpop.f32.mrb[135].mxu1 }
0x117c   : > { %v4627_v39 = vpack.c.bf16 %v4567_v38, %v4564_v60 }
0x117e   : > { %9507 = vmatprep.subr.bf16.mxu1 %v4627_v39 }
0x117f   : > { %9508 = vmatpush3.bf16.msra.mxu1 %v4627_v39 }
0x1180   : > { %v9497_v26 = vpop.f32.mrb[136].mxu1  ;;  %9509 = vmatprep.subr.bf16.mxu1 %v4628_v37 }
0x1181   : > { %v4580_v40 = vpop.f32.mrb[137].mxu1 }
0x1182   : > { %v9498_v42 = vpop.f32.mrb[138].mxu1 }
0x1183   : > { %v4630_v46 = vpack.c.bf16 %v9498_v42, %v9497_v26  ;;  %v4583_v28 = vpop.f32.mrb[139].mxu1  ;;  %9510 = vmatpush3.bf16.msra.mxu1 %v4628_v37 }
0x1184   : > { %v4629_v55 = vpack.c.bf16 %v4583_v28, %v4580_v40 }
0x1186   : > { %9511 = vmatprep.subr.bf16.mxu1 %v4629_v55 }
0x1187   : > { %9512 = vmatpush3.bf16.msra.mxu1 %v4629_v55 }
0x1188   : > { %v9501_v53 = vpop.f32.mrb[140].mxu1  ;;  %9513 = vmatprep.subr.bf16.mxu1 %v4630_v46 }
0x1189   : > { %v4596_v54 = vpop.f32.mrb[141].mxu1 }
0x118a   : > { %v9502_v50 = vpop.f32.mrb[142].mxu1 }
0x118b   : > { %v4632_v47 = vpack.c.bf16 %v9502_v50, %v9501_v53  ;;  %v4599_v32 = vpop.f32.mrb[143].mxu1  ;;  %9514 = vmatpush3.bf16.msra.mxu1 %v4630_v46 }
0x118c   : > { %v4631_v0 = vpack.c.bf16 %v4599_v32, %v4596_v54 }
0x118e   : > { %9515 = vmatprep.subr.bf16.mxu1 %v4631_v0 }
0x118f   : > { %9516 = vmatpush3.bf16.msra.mxu1 %v4631_v0 }
0x1190   : > { %v9505_v59 = vpop.f32.mrb[144].mxu1  ;;  %9517 = vmatprep.subr.bf16.mxu1 %v4632_v47 }
0x1191   : > { %v4612_v62 = vpop.f32.mrb[145].mxu1 }
0x1192   : > { %v9506_v29 = vpop.f32.mrb[146].mxu1 }
0x1193   : > { %v4634_v3 = vpack.c.bf16 %v9506_v29, %v9505_v59  ;;  %v4615_v5 = vpop.f32.mrb[147].mxu1  ;;  %9518 = vmatpush3.bf16.msra.mxu1 %v4632_v47 }
0x1194   : > { %v4633_v8 = vpack.c.bf16 %v4615_v5, %v4612_v62 }
0x1196   : > { %9519 = vmatprep.subr.bf16.mxu1 %v4633_v8 }
0x1197   : > { %9520 = vmatpush3.bf16.msra.mxu1 %v4633_v8 }
0x1198   : > { %9521 = vmatprep.subr.bf16.mxu1 %v4634_v3 }
0x119b   : > { %9522 = vmatpush3.bf16.msra.mxu1 %v4634_v3 }
0x119c   : > { %9557 = vmatprep.subr.bf16.mxu1 %v10394_v20 }
0x119e   : > { %9524 = vmatmul.mubr.bf16.vlgmr.msra.gmra.mrb[148].mxu1 %v11501_v9 }
0x119f   : > { %9527 = vmatprep.mubr.bf16.mxu1 %v11506_v18  ;;  %9558 = vmatpush3.bf16.msra.mxu1 %v10394_v20 }
0x11a0   : > { %10140 = vmatprep.subr.msk.bf16.mxu1 %vm1795_vm2, %v11165_v6  ;;  %v11535_v6 = vld [vmem:[%s12247_s13 + $0x30] sm:$0xff]  }
0x11a6   : > { %9528 = vmatmul.mubr.bf16.gmra.mrb[152].mxu1 %v11518_v43 }
0x11a7   : > { %9531 = vmatprep.mubr.bf16.mxu1 %v11523_v14 }
0x11ae   : > { %9532 = vmatmul.mubr.bf16.gmra.mrb[156].mxu1 %v11530_v21 }
0x11af   : > { %9535 = vmatprep.mubr.bf16.mxu1 %v11535_v6 }
0x11b6   : > { %9536 = vmatmul.mubr.bf16.gmra.mrb[160].mxu1 %v11542_v16 }
0x1271   : > { %v9525_v23 = vpop.f32.mrb[148].mxu1 }
0x1272   : > { %v4717_v1 = vpop.f32.mrb[149].mxu1 }
0x1273   : > { %v9526_v48 = vpop.f32.mrb[150].mxu1 }
0x1274   : > { %v4781_v2 = vpack.c.bf16 %v9526_v48, %v9525_v23  ;;  %v4720_v36 = vpop.f32.mrb[151].mxu1 }
0x1275   : > { %v4780_v57 = vpack.c.bf16 %v4720_v36, %v4717_v1 }
0x1277   : > { %9541 = vmatprep.mubr.msk.bf16.mxu0 %vm1782_vm3, %v4780_v57 }
0x1278   : > { %9542 = vmatmul.mubr.msk.bf16.vlgmr.msra.gmra.mrb[96].mxu0 %vm1782_vm3, %v4781_v2 }
0x1279   : > { %v9529_v60 = vpop.f32.mrb[152].mxu1 }
0x127a   : > { %v4733_v4 = vpop.f32.mrb[153].mxu1 }
0x127b   : > { %v9530_v37 = vpop.f32.mrb[154].mxu1 }
0x127c   : > { %v4783_v38 = vpack.c.bf16 %v9530_v37, %v9529_v60  ;;  %v4736_v39 = vpop.f32.mrb[155].mxu1 }
0x127d   : > { %v4782_v26 = vpack.c.bf16 %v4736_v39, %v4733_v4 }
0x127f   : > { %9545 = vmatprep.mubr.msk.bf16.mxu0 %vm1782_vm3, %v4782_v26 }
0x1280   : > { %9546 = vmatmul.mubr.msk.bf16.gmra.mrb[100].mxu0 %vm1782_vm3, %v4783_v38 }
0x1281   : > { %v9533_v40 = vpop.f32.mrb[156].mxu1 }
0x1282   : > { %v4749_v42 = vpop.f32.mrb[157].mxu1 }
0x1283   : > { %v9534_v46 = vpop.f32.mrb[158].mxu1 }
0x1284   : > { %v4785_v28 = vpack.c.bf16 %v9534_v46, %v9533_v40  ;;  %v4752_v55 = vpop.f32.mrb[159].mxu1 }
0x1285   : > { %v4784_v53 = vpack.c.bf16 %v4752_v55, %v4749_v42 }
0x1287   : > { %9549 = vmatprep.mubr.msk.bf16.mxu0 %vm1782_vm3, %v4784_v53 }
0x1288   : > { %9550 = vmatmul.mubr.msk.bf16.gmra.mrb[104].mxu0 %vm1782_vm3, %v4785_v28 }
0x1289   : > { %v9537_v54 = vpop.f32.mrb[160].mxu1 }
0x128a   : > { %v4765_v50 = vpop.f32.mrb[161].mxu1 }
0x128b   : > { %v9538_v47 = vpop.f32.mrb[162].mxu1 }
0x128c   : > { %v4787_v32 = vpack.c.bf16 %v9538_v47, %v9537_v54  ;;  %v4768_v0 = vpop.f32.mrb[163].mxu1 }
0x128d   : > { %v4786_v59 = vpack.c.bf16 %v4768_v0, %v4765_v50 }
0x128f   : > { %9553 = vmatprep.mubr.msk.bf16.mxu0 %vm1782_vm3, %v4786_v59 }
0x1290   : > { %9554 = vmatmul.mubr.msk.bf16.gmra.mrb[108].mxu0 %vm1782_vm3, %v4787_v32 }
0x1291   : > { %9591 = vmatprep.mubr.bf16.mxu0 %v11495_v58 }
0x134b   : > { %v9543_v62 = vpop.f32.mrb[96].mxu0 }
0x134c   : > { %v4846_v29 = vpop.f32.mrb[97].mxu0  ;;  %v11558_v8 = vsub.f32 %v11442_v13, %v9543_v62 }
0x134d   : > { %v11555_v3 = vsub.f32 %v11438_v41, %v4846_v29  ;;  %v9544_v5 = vpop.f32.mrb[98].mxu0 }
0x134e   : > { %v11561_v20 = vsub.f32 %v11436_v17, %v9544_v5  ;;  %v4849_v23 = vpop.f32.mrb[99].mxu0  ;;  %v4927_v13 = vmul.f32 %v11558_v8, %v11558_v8 }
0x134f   : > { %v11564_v1 = vsub.f32 %v11440_v15, %v4849_v23  ;;  %v4925_v58 = vmul.f32 %v11555_v3, %v11555_v3 }
0x1350   : > { %v4928_v48 = vmul.f32 %v11561_v20, %v11561_v20 }
0x1351   : > { %v4926_v41 = vmul.f32 %v11564_v1, %v11564_v1 }
0x1352   : > { %v4942_v17 = vpack.c.bf16 %v4928_v48, %v4927_v13 }
0x1353   : > { %v4941_v2 = vpack.c.bf16 %v4926_v41, %v4925_v58  ;;  %v9547_v36 = vpop.f32.mrb[100].mxu0 }
0x1354   : > { %v4862_v57 = vpop.f32.mrb[101].mxu0  ;;  %v11579_v4 = vsub.f32 %v11456_v30, %v9547_v36 }
0x1355   : > { %v11575_v60 = vsub.f32 %v11452_v56, %v4862_v57  ;;  %v9548_v15 = vpop.f32.mrb[102].mxu0  ;;  %9559 = vmatprep.mubr.msk.bf16.mxu1 %vm2852_vm12, %v4941_v2 }
0x1356   : > { %v11582_v37 = vsub.f32 %v11450_v51, %v9548_v15  ;;  %v4865_v38 = vpop.f32.mrb[103].mxu0  ;;  %9560 = vmatmul.mubr.msk.bf16.vlgmr.msra.gmra.mrb[164].mxu1 %vm2852_vm12, %v4942_v17  ;;  %v4931_v51 = vmul.f32 %v11579_v4, %v11579_v4 }
0x1357   : > { %v11586_v39 = vsub.f32 %v11454_v49, %v4865_v38  ;;  %9608 = vmatpush3.bf16.msra.mxu1 %v11171_v7  ;;  %v4929_v26 = vmul.f32 %v11575_v60, %v11575_v60 }
0x1358   : > { %v4932_v56 = vmul.f32 %v11582_v37, %v11582_v37 }
0x1359   : > { %v4930_v30 = vmul.f32 %v11586_v39, %v11586_v39 }
0x135a   : > { %v4944_v46 = vpack.c.bf16 %v4932_v56, %v4931_v51 }
0x135b   : > { %v4943_v40 = vpack.c.bf16 %v4930_v30, %v4929_v26  ;;  %v9551_v42 = vpop.f32.mrb[104].mxu0 }
0x135c   : > { %v4878_v28 = vpop.f32.mrb[105].mxu0  ;;  %v11602_v55 = vsub.f32 %v11470_v12, %v9551_v42 }
0x135d   : > { %v11598_v49 = vsub.f32 %v11466_v10, %v4878_v28  ;;  %v9552_v7 = vpop.f32.mrb[106].mxu0  ;;  %9563 = vmatprep.mubr.msk.bf16.mxu1 %vm2852_vm12, %v4943_v40 }
0x135e   : > { %v11605_v53 = vsub.f32 %v11464_v61, %v9552_v7  ;;  %v4881_v54 = vpop.f32.mrb[107].mxu0  ;;  %9564 = vmatmul.mubr.msk.bf16.gmra.mrb[168].mxu1 %vm2852_vm12, %v4944_v46  ;;  %v4935_v12 = vmul.f32 %v11602_v55, %v11602_v55 }
0x135f   : > { %v11609_v50 = vsub.f32 %v11468_v11, %v4881_v54  ;;  %v4933_v10 = vmul.f32 %v11598_v49, %v11598_v49 }
0x1360   : > { %v4936_v47 = vmul.f32 %v11605_v53, %v11605_v53 }
0x1361   : > { %v4934_v32 = vmul.f32 %v11609_v50, %v11609_v50 }
0x1362   : > { %v4946_v59 = vpack.c.bf16 %v4936_v47, %v4935_v12 }
0x1363   : > { %v4945_v61 = vpack.c.bf16 %v4934_v32, %v4933_v10  ;;  %v9555_v0 = vpop.f32.mrb[108].mxu0 }
0x1364   : > { %v4894_v62 = vpop.f32.mrb[109].mxu0  ;;  %v11624_v5 = vsub.f32 %v11484_v34, %v9555_v0 }
0x1365   : > { %v11620_v29 = vsub.f32 %v11480_v27, %v4894_v62  ;;  %v9556_v11 = vpop.f32.mrb[110].mxu0  ;;  %9567 = vmatprep.mubr.msk.bf16.mxu1 %vm2852_vm12, %v4945_v61 }
0x1366   : > { %v11627_v23 = vsub.f32 %v11478_v45, %v9556_v11  ;;  %v4897_v48 = vpop.f32.mrb[111].mxu0  ;;  %9568 = vmatmul.mubr.msk.bf16.gmra.mrb[172].mxu1 %vm2852_vm12, %v4946_v59  ;;  %v4939_v34 = vmul.f32 %v11624_v5, %v11624_v5 }
0x1367   : > { %v11631_v58 = vsub.f32 %v11482_v63, %v4897_v48  ;;  %v4937_v27 = vmul.f32 %v11620_v29, %v11620_v29 }
0x1368   : > { %v4940_v41 = vmul.f32 %v11627_v23, %v11627_v23 }
0x1369   : > { %v4938_v13 = vmul.f32 %v11631_v58, %v11631_v58 }
0x136a   : > { %v4948_v2 = vpack.c.bf16 %v4940_v41, %v4939_v34 }
0x136b   : > { %v4947_v45 = vpack.c.bf16 %v4938_v13, %v4937_v27 }
0x136d   : > { %9571 = vmatprep.mubr.msk.bf16.mxu1 %vm2852_vm12, %v4947_v45 }
0x136e   : > { %9572 = vmatmul.mubr.msk.bf16.gmra.mrb[176].mxu1 %vm2852_vm12, %v4948_v2 }
0x1429   : > { %v9561_v63 = vpop.f32.mrb[164].mxu1 }
0x142a   : > { %v5007_v36 = vpop.f32.mrb[165].mxu1 }
0x142b   : > { %v9562_v17 = vpop.f32.mrb[166].mxu1 }
0x142c   : > { %v5071_v57 = vpack.c.bf16 %v9562_v17, %v9561_v63  ;;  %v5010_v15 = vpop.f32.mrb[167].mxu1 }
0x142d   : > { %v5070_v38 = vpack.c.bf16 %v5010_v15, %v5007_v36 }
0x142f   : > { %9575 = vmatprep.subr.bf16.mxu0 %v5070_v38 }
0x1430   : > { %9576 = vmatpush3.bf16.msra.mxu0 %v5070_v38 }
0x1431   : > { %v9565_v56 = vpop.f32.mrb[168].mxu1  ;;  %9577 = vmatprep.subr.bf16.mxu0 %v5071_v57 }
0x1432   : > { %v5023_v26 = vpop.f32.mrb[169].mxu1 }
0x1433   : > { %v9566_v30 = vpop.f32.mrb[170].mxu1 }
0x1434   : > { %v5073_v51 = vpack.c.bf16 %v9566_v30, %v9565_v56  ;;  %v5026_v40 = vpop.f32.mrb[171].mxu1  ;;  %9578 = vmatpush3.bf16.msra.mxu0 %v5071_v57 }
0x1435   : > { %v5072_v42 = vpack.c.bf16 %v5026_v40, %v5023_v26  ;;  %v10254_v40 = vld [vmem:[%s12249_s15] sm:$0xff]  }
0x1437   : > { %9579 = vmatprep.subr.bf16.mxu0 %v5072_v42 }
0x1438   : > { %9580 = vmatpush3.bf16.msra.mxu0 %v5072_v42 }
0x1439   : > { %v9569_v46 = vpop.f32.mrb[172].mxu1  ;;  %9581 = vmatprep.subr.bf16.mxu0 %v5073_v51 }
0x143a   : > { %v5039_v28 = vpop.f32.mrb[173].mxu1 }
0x143b   : > { %v9570_v7 = vpop.f32.mrb[174].mxu1 }
0x143c   : > { %v5075_v54 = vpack.c.bf16 %v9570_v7, %v9569_v46  ;;  %v5042_v47 = vpop.f32.mrb[175].mxu1  ;;  %9582 = vmatpush3.bf16.msra.mxu0 %v5073_v51  ;;  %v10253_v51 = vld [vmem:[%s12249_s15 + $0x20] sm:$0xff]  }
0x143d   : > { %v5074_v10 = vpack.c.bf16 %v5042_v47, %v5039_v28 }
0x143f   : > { %9583 = vmatprep.subr.bf16.mxu0 %v5074_v10 }
0x1440   : > { %9584 = vmatpush3.bf16.msra.mxu0 %v5074_v10 }
0x1441   : > { %v9573_v32 = vpop.f32.mrb[176].mxu1  ;;  %9585 = vmatprep.subr.bf16.mxu0 %v5075_v54 }
0x1442   : > { %v5055_v12 = vpop.f32.mrb[177].mxu1 }
0x1443   : > { %v9574_v61 = vpop.f32.mrb[178].mxu1 }
0x1444   : > { %v5077_v0 = vpack.c.bf16 %v9574_v61, %v9573_v32  ;;  %v5058_v59 = vpop.f32.mrb[179].mxu1  ;;  %9586 = vmatpush3.bf16.msra.mxu0 %v5075_v54 }
0x1445   : > { %v5076_v62 = vpack.c.bf16 %v5058_v59, %v5055_v12 }
0x1447   : > { %9587 = vmatprep.subr.bf16.mxu0 %v5076_v62 }
0x1448   : > { %9588 = vmatpush3.bf16.msra.mxu0 %v5076_v62 }
0x1449   : > { %9589 = vmatprep.subr.bf16.mxu0 %v5077_v0 }
0x144c   : > { %9590 = vmatpush3.bf16.msra.mxu0 %v5077_v0 }
0x144f   : > { %9592 = vmatmul.mubr.bf16.vlgmr.msra.gmra.mrb[112].mxu0 %v11501_v9 }
0x1450   : > { %9595 = vmatprep.mubr.bf16.mxu0 %v11506_v18 }
0x1457   : > { %9596 = vmatmul.mubr.bf16.gmra.mrb[116].mxu0 %v11518_v43 }
0x1458   : > { %9599 = vmatprep.mubr.bf16.mxu0 %v11523_v14 }
0x145f   : > { %9600 = vmatmul.mubr.bf16.gmra.mrb[120].mxu0 %v11530_v21 }
0x1460   : > { %9603 = vmatprep.mubr.bf16.mxu0 %v11535_v6 }
0x1467   : > { %9604 = vmatmul.mubr.bf16.gmra.mrb[124].mxu0 %v11542_v16 }
0x1468   : > { %9641 = vmatprep.mubr.bf16.mxu0 %v10254_v40 }
0x1522   : > { %v9593_v11 = vpop.f32.mrb[112].mxu0 }
0x1523   : > { %v5112_v48 = vpop.f32.mrb[113].mxu0 }
0x1524   : > { %v9594_v41 = vpop.f32.mrb[114].mxu0 }
0x1525   : > { %v5176_v27 = vpack.c.bf16 %v9594_v41, %v9593_v11  ;;  %v5115_v13 = vpop.f32.mrb[115].mxu0 }
0x1526   : > { %v5175_v34 = vpack.c.bf16 %v5115_v13, %v5112_v48  ;;  %v11664_v13 = vstv %s8294_s5 }
0x1528   : > { %9609 = vmatprep.mubr.msk.bf16.mxu1 %vm1782_vm3, %v5175_v34 }
0x1529   : > { %9610 = vmatmul.mubr.msk.bf16.vlgmr.msra.gmra.mrb[180].mxu1 %vm1782_vm3, %v5176_v27 }
0x152a   : > { %v9597_v9 = vpop.f32.mrb[116].mxu0 }
0x152b   : > { %v5128_v18 = vpop.f32.mrb[117].mxu0 }
0x152c   : > { %v9598_v43 = vpop.f32.mrb[118].mxu0 }
0x152d   : > { %v5178_v14 = vpack.c.bf16 %v9598_v43, %v9597_v9  ;;  %v5131_v45 = vpop.f32.mrb[119].mxu0 }
0x152e   : > { %v5177_v21 = vpack.c.bf16 %v5131_v45, %v5128_v18 }
0x1530   : > { %9613 = vmatprep.mubr.msk.bf16.mxu1 %vm1782_vm3, %v5177_v21 }
0x1531   : > { %9614 = vmatmul.mubr.msk.bf16.gmra.mrb[184].mxu1 %vm1782_vm3, %v5178_v14 }
0x1532   : > { %v9601_v6 = vpop.f32.mrb[120].mxu0 }
0x1533   : > { %v5144_v16 = vpop.f32.mrb[121].mxu0 }
0x1534   : > { %v9602_v2 = vpop.f32.mrb[122].mxu0 }
0x1535   : > { %v5180_v63 = vpack.c.bf16 %v9602_v2, %v9601_v6  ;;  %v5147_v36 = vpop.f32.mrb[123].mxu0 }
0x1536   : > { %v5179_v17 = vpack.c.bf16 %v5147_v36, %v5144_v16 }
0x1538   : > { %9617 = vmatprep.mubr.msk.bf16.mxu1 %vm1782_vm3, %v5179_v17 }
0x1539   : > { %9618 = vmatmul.mubr.msk.bf16.gmra.mrb[188].mxu1 %vm1782_vm3, %v5180_v63 }
0x153a   : > { %v9605_v57 = vpop.f32.mrb[124].mxu0 }
0x153b   : > { %v5160_v15 = vpop.f32.mrb[125].mxu0 }
0x153c   : > { %v9606_v38 = vpop.f32.mrb[126].mxu0 }
0x153d   : > { %v5182_v56 = vpack.c.bf16 %v9606_v38, %v9605_v57  ;;  %v5163_v26 = vpop.f32.mrb[127].mxu0 }
0x153e   : > { %v5181_v30 = vpack.c.bf16 %v5163_v26, %v5160_v15 }
0x1540   : > { %9621 = vmatprep.mubr.msk.bf16.mxu1 %vm1782_vm3, %v5181_v30 }
0x1541   : > { %9622 = vmatmul.mubr.msk.bf16.gmra.mrb[192].mxu1 %vm1782_vm3, %v5182_v56 }
0x1542   : > { %9681 = vmatprep.mubr.bf16.mxu1 %v10253_v51 }
0x15fc   : > { %v9611_v42 = vpop.f32.mrb[180].mxu1 }
0x15fd   : > { %v5250_v46 = vadd.f32 1e-05, %v9611_v42  ;;  %v5241_v28 = vpop.f32.mrb[181].mxu1 }
0x15fe   : > { %v5242_v7 = vadd.f32 1e-05, %v5241_v28  ;;  %v9612_v54 = vpop.f32.mrb[182].mxu1 }
0x15ff   : > { %10346 = vrsqrt.f32 %v5250_v46  ;;  %v5253_v47 = vadd.f32 1e-05, %v9612_v54  ;;  %v5244_v10 = vpop.f32.mrb[183].mxu1 }
0x1600   : > { %10348 = vrsqrt.f32 %v5242_v7  ;;  %v5245_v32 = vadd.f32 1e-05, %v5244_v10 }
0x1601   : > { %10350 = vrsqrt.f32 %v5253_v47 }
0x1602   : > { %10352 = vrsqrt.f32 %v5245_v32 }
0x1604   : > { %v9615_v12 = vpop.f32.mrb[184].mxu1 }
0x1605   : > { %v5266_v61 = vadd.f32 1e-05, %v9615_v12  ;;  %v5257_v0 = vpop.f32.mrb[185].mxu1 }
0x1606   : > { %v5258_v59 = vadd.f32 1e-05, %v5257_v0  ;;  %v9616_v62 = vpop.f32.mrb[186].mxu1 }
0x1607   : > { %10354 = vrsqrt.f32 %v5266_v61  ;;  %v5269_v11 = vadd.f32 1e-05, %v9616_v62  ;;  %v5260_v48 = vpop.f32.mrb[187].mxu1 }
0x1608   : > { %10356 = vrsqrt.f32 %v5258_v59  ;;  %v5261_v41 = vadd.f32 1e-05, %v5260_v48 }
0x1609   : > { %v10347_v27 = vpop.eup %10346  ;;  %10358 = vrsqrt.f32 %v5269_v11 }
0x160a   : > { %v10349_v34 = vpop.eup %10348  ;;  %v5322_v9 = vmul.f32 %v10347_v27, %v11558_v8  ;;  %10360 = vrsqrt.f32 %v5261_v41 }
0x160b   : > { %v10351_v18 = vpop.eup %10350  ;;  %v5320_v43 = vmul.f32 %v10349_v34, %v11555_v3 }
0x160c   : > { %v10353_v14 = vpop.eup %10352  ;;  %vm5338_vm9 = vcmp.ge.f32.partialorder %v5322_v9, 0.0  ;;  %v5355_v45 = vmul.f32 %v11664_v13, %v5322_v9  ;;  %v5323_v21 = vmul.f32 %v10351_v18, %v11561_v20  ;;  %v9619_v6 = vpop.f32.mrb[188].mxu1 }
0x160d   : > { %v5353_v16 = vmul.f32 %v11664_v13, %v5320_v43  ;;  %v5321_v2 = vmul.f32 %v10353_v14, %v11564_v1  ;;  %v5282_v63 = vadd.f32 1e-05, %v9619_v6  ;;  %v5273_v36 = vpop.f32.mrb[189].mxu1  ;;  %vm5336_vm10 = vcmp.ge.f32.partialorder %v5320_v43, 0.0 }
0x160e   : > { %vm5339_vm11 = vcmp.ge.f32.partialorder %v5323_v21, 0.0  ;;  %v5356_v8 = vmul.f32 %v11664_v13, %v5323_v21  ;;  %v5274_v17 = vadd.f32 1e-05, %v5273_v36  ;;  %v9620_v57 = vpop.f32.mrb[190].mxu1  ;;  %v5371_v3 = vsel %vm5338_vm9, %v5322_v9, %v5355_v45 }
0x160f   : > { %vm5337_vm13 = vcmp.ge.f32.partialorder %v5321_v2, 0.0  ;;  %v5354_v15 = vmul.f32 %v11664_v13, %v5321_v2  ;;  %10362 = vrsqrt.f32 %v5282_v63  ;;  %v5276_v38 = vpop.f32.mrb[191].mxu1  ;;  %v5285_v56 = vadd.f32 1e-05, %v9620_v57 }
0x1610   : > { %v5372_v20 = vsel %vm5339_vm11, %v5323_v21, %v5356_v8  ;;  %10364 = vrsqrt.f32 %v5274_v17  ;;  %v5277_v26 = vadd.f32 1e-05, %v5276_v38  ;;  %v5369_v1 = vsel %vm5336_vm10, %v5320_v43, %v5353_v16 }
0x1611   : > { %v10355_v30 = vpop.eup %10354  ;;  %v5370_v51 = vsel %vm5337_vm13, %v5321_v2, %v5354_v15  ;;  %v11674_v40 = vpack.c.bf16 %v5372_v20, %v5371_v3  ;;  %10366 = vrsqrt.f32 %v5285_v56 }
0x1612   : > { %v10357_v42 = vpop.eup %10356  ;;  %v5326_v46 = vmul.f32 %v10355_v30, %v11579_v4  ;;  %v11677_v28 = vpack.c.bf16 %v5370_v51, %v5369_v1  ;;  %10368 = vrsqrt.f32 %v5277_v26 }
0x1613   : > { %v10359_v7 = vpop.eup %10358  ;;  %v5324_v54 = vmul.f32 %v10357_v42, %v11575_v60 }
0x1614   : > { %v10361_v47 = vpop.eup %10360  ;;  %vm5342_vm14 = vcmp.ge.f32.partialorder %v5326_v46, 0.0  ;;  %v5359_v10 = vmul.f32 %v11664_v13, %v5326_v46  ;;  %v5327_v32 = vmul.f32 %v10359_v7, %v11582_v37  ;;  %v9623_v12 = vpop.f32.mrb[192].mxu1  ;;  %9625 = vmatprep.subr.bf16.mxu0 %v11677_v28  ;;  %9665 = vmatprep.subr.bf16.mxu1 %v11677_v28 }
0x1615   : > { %v5357_v4 = vmul.f32 %v11664_v13, %v5324_v54  ;;  %v5325_v61 = vmul.f32 %v10361_v47, %v11586_v39  ;;  %v5298_v0 = vadd.f32 1e-05, %v9623_v12  ;;  %v5289_v59 = vpop.f32.mrb[193].mxu1  ;;  %9626 = vmatpush3.bf16.msra.mxu0 %v11677_v28  ;;  %9666 = vmatpush3.bf16.msra.mxu1 %v11677_v28  ;;  %vm5340_vm15 = vcmp.ge.f32.partialorder %v5324_v54, 0.0 }
0x1616   : > { %vm5343_vm4 = vcmp.ge.f32.partialorder %v5327_v32, 0.0  ;;  %v5360_v60 = vmul.f32 %v11664_v13, %v5327_v32  ;;  %v5290_v37 = vadd.f32 1e-05, %v5289_v59  ;;  %v9624_v62 = vpop.f32.mrb[194].mxu1  ;;  %9627 = vmatprep.subr.bf16.mxu0 %v11674_v40  ;;  %9667 = vmatprep.subr.bf16.mxu1 %v11674_v40  ;;  %v5375_v11 = vsel %vm5342_vm14, %v5326_v46, %v5359_v10  ;;  %v10261_v59 = vld [vmem:[%s12249_s15 + $0x10] sm:$0xff]  }
0x1617   : > { %vm5341_vm5 = vcmp.ge.f32.partialorder %v5325_v61, 0.0  ;;  %v5358_v39 = vmul.f32 %v11664_v13, %v5325_v61  ;;  %10370 = vrsqrt.f32 %v5298_v0  ;;  %v5292_v48 = vpop.f32.mrb[195].mxu1  ;;  %v5301_v27 = vadd.f32 1e-05, %v9624_v62  ;;  %v10257_v0 = vld [vmem:[%s12249_s15 + $0x30] sm:$0xff]   ;;  %v10259_v62 = vld [vmem:[%s12248_s14 + $0x20] sm:$0xff]  }
0x1618   : > { %v5376_v41 = vsel %vm5343_vm4, %v5327_v32, %v5360_v60  ;;  %10372 = vrsqrt.f32 %v5290_v37  ;;  %v5293_v34 = vadd.f32 1e-05, %v5292_v48  ;;  %v5373_v18 = vsel %vm5340_vm15, %v5324_v54, %v5357_v4  ;;  %v10258_v60 = vld [vmem:[%s12249_s15 + $0x38] sm:$0xff]   ;;  %v10266_v48 = vld [vmem:[%s12248_s14 + $0x8] sm:$0xff]  }
0x1619   : > { %v10363_v9 = vpop.eup %10362  ;;  %v5374_v43 = vsel %vm5341_vm5, %v5325_v61, %v5358_v39  ;;  %9628 = vmatpush3.bf16.msra.mxu0 %v11674_v40  ;;  %9668 = vmatpush3.bf16.msra.mxu1 %v11674_v40  ;;  %v11696_v14 = vpack.c.bf16 %v5376_v41, %v5375_v11  ;;  %10374 = vrsqrt.f32 %v5301_v27  ;;  %v10256_v61 = vld [vmem:[%s12249_s15 + $0x8] sm:$0xff]   ;;  %v10262_v37 = vld [vmem:[%s12249_s15 + $0x18] sm:$0xff]   ;;  %v10265_v11 = vld [vmem:[%s12248_s14] sm:$0xff]  }
0x161a   : > { %v10365_v45 = vpop.eup %10364  ;;  %v5330_v21 = vmul.f32 %v10363_v9, %v11602_v55  ;;  %v11699_v6 = vpack.c.bf16 %v5374_v43, %v5373_v18  ;;  %10376 = vrsqrt.f32 %v5293_v34  ;;  %v10260_v39 = vld [vmem:[%s12248_s14 + $0x28] sm:$0xff]   ;;  %v10263_v41 = vld [vmem:[%s12248_s14 + $0x30] sm:$0xff]   ;;  %v10264_v34 = vld [vmem:[%s12248_s14 + $0x38] sm:$0xff]  }
0x161b   : > { %v5328_v16 = vmul.f32 %v10365_v45, %v11598_v49  ;;  %v10367_v2 = vpop.eup %10366  ;;  %v10267_v27 = vld [vmem:[%s12248_s14 + $0x10] sm:$0xff]   ;;  %v10268_v9 = vld [vmem:[%s12248_s14 + $0x18] sm:$0xff]   ;;  %v10277_v45 = vld [vmem:[%s12250_s16 + $0x8] sm:$0xff]  }
0x161c   : > { %9629 = vmatprep.subr.bf16.mxu0 %v11699_v6  ;;  %9669 = vmatprep.subr.bf16.mxu1 %v11699_v6  ;;  %v10369_v63 = vpop.eup %10368  ;;  %v5363_v36 = vmul.f32 %v11664_v13, %v5330_v21  ;;  %v5331_v8 = vmul.f32 %v10367_v2, %v11605_v53  ;;  %vm5346_vm6 = vcmp.ge.f32.partialorder %v5330_v21, 0.0  ;;  %v10271_v18 = vld [vmem:[%s12249_s15 + $0x50] sm:$0xff]   ;;  %v10272_v43 = vld [vmem:[%s12249_s15 + $0x58] sm:$0xff]  }
0x161d   : > { %9630 = vmatpush3.bf16.msra.mxu0 %v11699_v6  ;;  %9670 = vmatpush3.bf16.msra.mxu1 %v11699_v6  ;;  %v5361_v55 = vmul.f32 %v11664_v13, %v5328_v16  ;;  %v5329_v49 = vmul.f32 %v10369_v63, %v11609_v50  ;;  %vm5344_vm7 = vcmp.ge.f32.partialorder %v5328_v16, 0.0 }
0x161e   : > { %9631 = vmatprep.subr.bf16.mxu0 %v11696_v14  ;;  %9671 = vmatprep.subr.bf16.mxu1 %v11696_v14  ;;  %vm5347_vm8 = vcmp.ge.f32.partialorder %v5331_v8, 0.0  ;;  %v5364_v17 = vmul.f32 %v11664_v13, %v5331_v8  ;;  %v5379_v3 = vsel %vm5346_vm6, %v5330_v21, %v5363_v36 }
0x161f   : > { %vm5345_vm9 = vcmp.ge.f32.partialorder %v5329_v49, 0.0  ;;  %v5362_v53 = vmul.f32 %v11664_v13, %v5329_v49  ;;  %v5377_v50 = vsel %vm5344_vm7, %v5328_v16, %v5361_v55 }
0x1620   : > { %v5380_v15 = vsel %vm5347_vm8, %v5331_v8, %v5364_v17 }
0x1621   : > { %v10371_v57 = vpop.eup %10370  ;;  %9632 = vmatpush3.bf16.msra.mxu0 %v11696_v14  ;;  %9672 = vmatpush3.bf16.msra.mxu1 %v11696_v14  ;;  %v5378_v20 = vsel %vm5345_vm9, %v5329_v49, %v5362_v53  ;;  %v11717_v26 = vpack.c.bf16 %v5380_v15, %v5379_v3  ;;  %v10279_v3 = vld [vmem:[%s12250_s16 + $0x10] sm:$0xff]  }
0x1622   : > { %v10373_v38 = vpop.eup %10372  ;;  %v5334_v56 = vmul.f32 %v10371_v57, %v11624_v5  ;;  %v11720_v1 = vpack.c.bf16 %v5378_v20, %v5377_v50 }
0x1623   : > { %v5332_v30 = vmul.f32 %v10373_v38, %v11620_v29  ;;  %v10375_v51 = vpop.eup %10374 }
0x1624   : > { %v10377_v42 = vpop.eup %10376  ;;  %v5367_v46 = vmul.f32 %v11664_v13, %v5334_v56  ;;  %v5335_v7 = vmul.f32 %v10375_v51, %v11627_v23  ;;  %9633 = vmatprep.subr.bf16.mxu0 %v11720_v1  ;;  %9673 = vmatprep.subr.bf16.mxu1 %v11720_v1  ;;  %vm5350_vm10 = vcmp.ge.f32.partialorder %v5334_v56, 0.0 }
0x1625   : > { %v5365_v54 = vmul.f32 %v11664_v13, %v5332_v30  ;;  %v5333_v5 = vmul.f32 %v10377_v42, %v11631_v58  ;;  %9634 = vmatpush3.bf16.msra.mxu0 %v11720_v1  ;;  %9674 = vmatpush3.bf16.msra.mxu1 %v11720_v1  ;;  %vm5348_vm11 = vcmp.ge.f32.partialorder %v5332_v30, 0.0 }
0x1626   : > { %vm5351_vm13 = vcmp.ge.f32.partialorder %v5335_v7, 0.0  ;;  %v5368_v29 = vmul.f32 %v11664_v13, %v5335_v7  ;;  %9635 = vmatprep.subr.bf16.mxu0 %v11717_v26  ;;  %9675 = vmatprep.subr.bf16.mxu1 %v11717_v26  ;;  %v5383_v47 = vsel %vm5350_vm10, %v5334_v56, %v5367_v46 }
0x1627   : > { %vm5349_vm14 = vcmp.ge.f32.partialorder %v5333_v5, 0.0  ;;  %v5366_v23 = vmul.f32 %v11664_v13, %v5333_v5  ;;  %v5381_v32 = vsel %vm5348_vm11, %v5332_v30, %v5365_v54  ;;  %v10255_v13 = vld [vmem:[%s12249_s15 + $0x28] sm:$0xff]   ;;  %v11885_v54 = vld [vmem:[%s12257_s23] sm:$0xff]  }
0x1628   : > { %v5384_v10 = vsel %vm5351_vm13, %v5335_v7, %v5368_v29 }
0x1629   : > { %v5382_v12 = vsel %vm5349_vm14, %v5333_v5, %v5366_v23  ;;  %9636 = vmatpush3.bf16.msra.mxu0 %v11717_v26  ;;  %9676 = vmatpush3.bf16.msra.mxu1 %v11717_v26  ;;  %v11736_v58 = vpack.c.bf16 %v5384_v10, %v5383_v47 }
0x162a   : > { %v11738_v4 = vpack.c.bf16 %v5382_v12, %v5381_v32 }
0x162c   : > { %9637 = vmatprep.subr.bf16.mxu0 %v11738_v4  ;;  %9677 = vmatprep.subr.bf16.mxu1 %v11738_v4 }
0x162d   : > { %9638 = vmatpush3.bf16.msra.mxu0 %v11738_v4  ;;  %9678 = vmatpush3.bf16.msra.mxu1 %v11738_v4 }
0x162e   : > { %9639 = vmatprep.subr.bf16.mxu0 %v11736_v58  ;;  %9679 = vmatprep.subr.bf16.mxu1 %v11736_v58 }
0x1631   : > { %9640 = vmatpush3.bf16.msra.mxu0 %v11736_v58  ;;  %9680 = vmatpush3.bf16.msra.mxu1 %v11736_v58 }
0x1632   : > { %9649 = vmatprep.subr.bf16.mxu0 %v11273_v24  ;;  %9689 = vmatprep.subr.bf16.mxu1 %v11273_v24 }
0x1634   : > { %9682 = vmatmul.mubr.bf16.vlgmr.msra.gmra.mrb[196].mxu1 %v10255_v13  ;;  %9642 = vmatmul.mubr.bf16.vlgmr.msra.gmra.mrb[128].mxu0 %v10256_v61 }
0x1635   : > { %9650 = vmatpush3.bf16.msra.mxu0 %v11273_v24  ;;  %9690 = vmatpush3.bf16.msra.mxu1 %v11273_v24 }
0x1636   : > { %9651 = vmatprep.subr.bf16.mxu0 %v11271_v22  ;;  %9691 = vmatprep.subr.bf16.mxu1 %v11271_v22 }
0x1637   : > { %9685 = vmatprep.mubr.bf16.mxu1 %v10257_v0  ;;  %9645 = vmatprep.mubr.bf16.mxu0 %v10261_v59 }
0x1639   : > { %9652 = vmatpush3.bf16.msra.mxu0 %v11271_v22  ;;  %9692 = vmatpush3.bf16.msra.mxu1 %v11271_v22 }
0x163a   : > { %9653 = vmatprep.subr.bf16.mxu0 %v11289_v31  ;;  %9693 = vmatprep.subr.bf16.mxu1 %v11289_v31 }
0x163c   : > { %9686 = vmatmul.mubr.bf16.gmra.mrb[200].mxu1 %v10258_v60  ;;  %9646 = vmatmul.mubr.bf16.gmra.mrb[132].mxu0 %v10262_v37  ;;  %v11902_v60 = vld [vmem:[%s12258_s24] sm:$0x3]  ;;  %v6296_v37 = vpop.permute.xlu1 %6295 }
0x163d   : > { %9654 = vmatpush3.bf16.msra.mxu0 %v11289_v31  ;;  %9694 = vmatpush3.bf16.msra.mxu1 %v11289_v31 }
0x163e   : > { %9655 = vmatprep.subr.bf16.mxu0 %v11285_v25  ;;  %9695 = vmatprep.subr.bf16.mxu1 %v11285_v25 }
0x163f   : > { %9697 = vmatprep.mubr.msk.bf16.mxu1 %vm874_vm0, %v10259_v62  ;;  %9657 = vmatprep.mubr.msk.bf16.mxu0 %vm874_vm0, %v10265_v11  ;;  %v6291_v62 = vpop.permute.xlu0 %6290 }
0x1640   : > { %v6306_v11 = vpop.permute.xlu1 %6305 }
0x1641   : > { %9656 = vmatpush3.bf16.msra.mxu0 %v11285_v25  ;;  %9696 = vmatpush3.bf16.msra.mxu1 %v11285_v25 }
0x1642   : > { %9725 = vmatprep.subr.bf16.mxu1 %v11677_v28  ;;  %9705 = vmatprep.subr.bf16.mxu0 %v10277_v45 }
0x1644   : > { %9698 = vmatmul.mubr.msk.bf16.vlgmr.msra.gmra.mrb[196].mxu1 %vm874_vm0, %v10260_v39  ;;  %9658 = vmatmul.mubr.msk.bf16.vlgmr.msra.gmra.mrb[128].mxu0 %vm874_vm0, %v10266_v48  ;;  %v6301_v39 = vpop.permute.xlu0 %6300 }
0x1645   : > { %9726 = vmatpush3.bf16.msra.mxu1 %v11677_v28  ;;  %9701 = vmatprep.mubr.msk.bf16.mxu1 %vm874_vm0, %v10263_v41  ;;  %v10269_v28 = vld [vmem:[%s12249_s15 + $0x40] sm:$0xff]  }
0x1646   : > { %9727 = vmatprep.subr.bf16.mxu1 %v11674_v40  ;;  %9661 = vmatprep.mubr.msk.bf16.mxu0 %vm874_vm0, %v10267_v27 }
0x1647   : > { %9706 = vmatpush3.bf16.msra.mxu0 %v10277_v45 }
0x1649   : > { %9728 = vmatpush3.bf16.msra.mxu1 %v11674_v40  ;;  %v10270_v40 = vld [vmem:[%s12249_s15 + $0x48] sm:$0xff]  }
0x164a   : > { %9729 = vmatprep.subr.bf16.mxu1 %v11699_v6 }
0x164c   : > { %9702 = vmatmul.mubr.msk.bf16.gmra.mrb[200].mxu1 %vm874_vm0, %v10264_v34  ;;  %9662 = vmatmul.mubr.msk.bf16.gmra.mrb[132].mxu0 %vm874_vm0, %v10268_v9 }
0x164d   : > { %9730 = vmatpush3.bf16.msra.mxu1 %v11699_v6  ;;  %9741 = vmatprep.mubr.bf16.mxu1 %v10269_v28  ;;  %v6316_v28 = vpop.permute.xlu1 %6315 }
0x164e   : > { %9731 = vmatprep.subr.bf16.mxu1 %v11696_v14 }
0x1651   : > { %9732 = vmatpush3.bf16.msra.mxu1 %v11696_v14  ;;  %v10273_v14 = vld [vmem:[%s12248_s14 + $0x40] sm:$0xff]  }
0x1652   : > { %9733 = vmatprep.subr.bf16.mxu1 %v11720_v1 }
0x1655   : > { %9734 = vmatpush3.bf16.msra.mxu1 %v11720_v1 }
0x1656   : > { %9735 = vmatprep.subr.bf16.mxu1 %v11717_v26 }
0x1659   : > { %9736 = vmatpush3.bf16.msra.mxu1 %v11717_v26 }
0x165a   : > { %9737 = vmatprep.subr.bf16.mxu1 %v11738_v4 }
0x165d   : > { %9738 = vmatpush3.bf16.msra.mxu1 %v11738_v4  ;;  %v11895_v4 = vld [vmem:[%s12257_s23 + $0x8] sm:$0xff]  }
0x165e   : > { %9739 = vmatprep.subr.bf16.mxu1 %v11736_v58 }
0x1661   : > { %9740 = vmatpush3.bf16.msra.mxu1 %v11736_v58 }
0x1662   : > { %9749 = vmatprep.subr.bf16.mxu1 %v11273_v24 }
0x1664   : > { %9742 = vmatmul.mubr.bf16.vlgmr.msra.gmra.mrb[204].mxu1 %v10270_v40 }
0x1665   : > { %9750 = vmatpush3.bf16.msra.mxu1 %v11273_v24  ;;  %9745 = vmatprep.mubr.bf16.mxu1 %v10271_v18  ;;  %v10274_v24 = vld [vmem:[%s12248_s14 + $0x48] sm:$0xff]  }
0x1666   : > { %9751 = vmatprep.subr.bf16.mxu1 %v11271_v22 }
0x1669   : > { %9752 = vmatpush3.bf16.msra.mxu1 %v11271_v22  ;;  %v10275_v22 = vld [vmem:[%s12248_s14 + $0x50] sm:$0xff]  }
0x166a   : > { %9753 = vmatprep.subr.bf16.mxu1 %v11289_v31 }
0x166c   : > { %9746 = vmatmul.mubr.bf16.gmra.mrb[208].mxu1 %v10272_v43 }
0x166d   : > { %9754 = vmatpush3.bf16.msra.mxu1 %v11289_v31  ;;  %9757 = vmatprep.mubr.msk.bf16.mxu1 %vm874_vm0, %v10273_v14  ;;  %v10276_v31 = vld [vmem:[%s12248_s14 + $0x58] sm:$0xff]   ;;  %v6311_v14 = vpop.permute.xlu0 %6310 }
0x166e   : > { %9755 = vmatprep.subr.bf16.mxu1 %v11285_v25 }
0x1671   : > { %9756 = vmatpush3.bf16.msra.mxu1 %v11285_v25  ;;  %v10278_v25 = vld [vmem:[%s12250_s16] sm:$0xff]  }
0x1672   : > { %9715 = vmatprep.subr.bf16.mxu0 %v10278_v25 }
0x1674   : > { %9758 = vmatmul.mubr.msk.bf16.vlgmr.msra.gmra.mrb[204].mxu1 %vm874_vm0, %v10274_v24 }
0x1675   : > { %9761 = vmatprep.mubr.msk.bf16.mxu1 %vm874_vm0, %v10275_v22 }
0x167c   : > { %9762 = vmatmul.mubr.msk.bf16.gmra.mrb[208].mxu1 %vm874_vm0, %v10276_v31 }
0x1717   : > { %v9699_v21 = vpop.f32.mrb[196].mxu1  ;;  %v9659_v6 = vpop.f32.mrb[128].mxu0 }
0x1718   : > { %v5774_v16 = vpop.f32.mrb[197].mxu1  ;;  %v5564_v2 = vpop.f32.mrb[129].mxu0 }
0x1719   : > { %v9700_v63 = vpop.f32.mrb[198].mxu1  ;;  %v9660_v36 = vpop.f32.mrb[130].mxu0 }
0x171a   : > { %v5809_v8 = vpack.c.bf16 %v9700_v63, %v9699_v21  ;;  %v5777_v55 = vpop.f32.mrb[199].mxu1  ;;  %v5598_v49 = vpack.c.bf16 %v9660_v36, %v9659_v6  ;;  %v5567_v17 = vpop.f32.mrb[131].mxu0 }
0x171b   : > { %v5808_v53 = vpack.c.bf16 %v5777_v55, %v5774_v16  ;;  %v5597_v57 = vpack.c.bf16 %v5567_v17, %v5564_v2  ;;  %v6321_v2 = vpop.permute.xlu0 %6320  ;;  %v10280_v17 = vld [vmem:[%s12252_s18] sm:$0xff]  }
0x171c   : > { %9795 = vmatprep.mubr.msk.bf16.mxu1 %vm874_vm0, %v10280_v17 }
0x171d   : > { %9707 = vmatprep.mubr.msk.bf16.mxu0 %vm2852_vm12, %v5808_v53 }
0x171e   : > { %9708 = vmatmul.mubr.msk.bf16.vlgmr.msra.gmra.mrb[136].mxu0 %vm2852_vm12, %v5809_v8 }
0x171f   : > { %v9703_v15 = vpop.f32.mrb[200].mxu1  ;;  %9716 = vmatpush3.bf16.msra.mxu0 %v10278_v25  ;;  %v9663_v38 = vpop.f32.mrb[132].mxu0 }
0x1720   : > { %v5790_v50 = vpop.f32.mrb[201].mxu1  ;;  %v5580_v20 = vpop.f32.mrb[133].mxu0  ;;  %9765 = vmatprep.subr.bf16.mxu0 %v10279_v3 }
0x1721   : > { %v9704_v56 = vpop.f32.mrb[202].mxu1  ;;  %v9664_v26 = vpop.f32.mrb[134].mxu0 }
0x1722   : > { %v5811_v30 = vpack.c.bf16 %v9704_v56, %v9703_v15  ;;  %v5793_v1 = vpop.f32.mrb[203].mxu1  ;;  %v5600_v51 = vpack.c.bf16 %v9664_v26, %v9663_v38  ;;  %v5583_v42 = vpop.f32.mrb[135].mxu0 }
0x1723   : > { %v5810_v46 = vpack.c.bf16 %v5793_v1, %v5790_v50  ;;  %v5599_v7 = vpack.c.bf16 %v5583_v42, %v5580_v20  ;;  %v6326_v25 = vpop.permute.xlu1 %6325  ;;  %v11944_v42 = vld [vmem:[%s12252_s18 + $0x8] sm:$0xff]  }
0x1725   : > { %9711 = vmatprep.mubr.msk.bf16.mxu0 %vm2852_vm12, %v5810_v46  ;;  %v11949_v46 = vld [vmem:[%s12252_s18 + $0x10] sm:$0xff]  }
0x1726   : > { %9712 = vmatmul.mubr.msk.bf16.gmra.mrb[140].mxu0 %vm2852_vm12, %v5811_v30 }
0x1727   : > { %9717 = vmatprep.mubr.msk.bf16.mxu0 %vm2852_vm12, %v5597_v57 }
0x172e   : > { %9718 = vmatmul.mubr.msk.bf16.vlgmr.msra.gmra.mrb[136].mxu0 %vm2852_vm12, %v5598_v49 }
0x172f   : > { %9721 = vmatprep.mubr.msk.bf16.mxu0 %vm2852_vm12, %v5599_v7  ;;  %9766 = vmatpush3.bf16.msra.mxu0 %v10279_v3  ;;  %v11961_v7 = vld [vmem:[%s12252_s18 + $0x18] sm:$0xff]  }
0x1730   : > { %9775 = vmatprep.subr.bf16.mxu0 %v11885_v54 }
0x1736   : > { %9722 = vmatmul.mubr.msk.bf16.gmra.mrb[140].mxu0 %vm2852_vm12, %v5600_v51 }
0x1747   : > { %v9759_v5 = vpop.f32.mrb[204].mxu1 }
0x1748   : > { %v6151_v29 = vpop.f32.mrb[205].mxu1 }
0x1749   : > { %v9760_v23 = vpop.f32.mrb[206].mxu1 }
0x174a   : > { %v6186_v47 = vpack.c.bf16 %v9760_v23, %v9759_v5  ;;  %v6154_v10 = vpop.f32.mrb[207].mxu1 }
0x174b   : > { %v6185_v32 = vpack.c.bf16 %v6154_v10, %v6151_v29 }
0x174d   : > { %9767 = vmatprep.mubr.msk.bf16.mxu0 %vm2852_vm12, %v6185_v32 }
0x174e   : > { %9768 = vmatmul.mubr.msk.bf16.vlgmr.msra.gmra.mrb[136].mxu0 %vm2852_vm12, %v6186_v47 }
0x174f   : > { %v9763_v12 = vpop.f32.mrb[208].mxu1  ;;  %9776 = vmatpush3.bf16.msra.mxu0 %v11885_v54 }
0x1750   : > { %v6167_v58 = vpop.f32.mrb[209].mxu1  ;;  %9777 = vmatprep.subr.bf16.mxu0 %v11895_v4 }
0x1751   : > { %v9764_v13 = vpop.f32.mrb[210].mxu1 }
0x1752   : > { %v6188_v61 = vpack.c.bf16 %v9764_v13, %v9763_v12  ;;  %v6170_v0 = vpop.f32.mrb[211].mxu1 }
0x1753   : > { %v6187_v59 = vpack.c.bf16 %v6170_v0, %v6167_v58  ;;  %9778 = vmatpush3.bf16.msra.mxu0 %v11895_v4 }
0x1754   : > { %10141 = vmatprep.subr.msk.bf16.mxu0 %vm1795_vm2, %v11902_v60 }
0x1755   : > { %9771 = vmatprep.mubr.msk.bf16.mxu0 %vm2852_vm12, %v6187_v59 }
0x1756   : > { %9772 = vmatmul.mubr.msk.bf16.gmra.mrb[140].mxu0 %vm2852_vm12, %v6188_v61 }
0x1821   : > { %v9769_v48 = vpop.f32.mrb[136].mxu0 }
0x1822   : > { %v6241_v41 = vpop.f32.mrb[137].mxu0  ;;  %v11914_v43 = vadd.f32 %v9769_v48, %v6301_v39 }
0x1823   : > { %v9770_v27 = vpop.f32.mrb[138].mxu0  ;;  %v11910_v40 = vadd.f32 %v6291_v62, %v6241_v41 }
0x1824   : > { %v11908_v34 = vadd.f32 %v9770_v27, %v6306_v11  ;;  %v6244_v9 = vpop.f32.mrb[139].mxu0 }
0x1825   : > { %v11912_v18 = vadd.f32 %v6296_v37, %v6244_v9 }
0x1826   : > { %v6346_v22 = vpack.c.bf16 %v11908_v34, %v11914_v43 }
0x1827   : > { %v6345_v24 = vpack.c.bf16 %v11912_v18, %v11910_v40 }
0x1829   : > { %v9773_v31 = vpop.f32.mrb[140].mxu0  ;;  %9779 = vmatprep.mubr.msk.bf16.mxu0 %vm1599_vm1, %v6345_v24 }
0x182a   : > { %v6257_v45 = vpop.f32.mrb[141].mxu0  ;;  %9780 = vmatmul.mubr.msk.bf16.vlgmr.msra.gmra.mrb[144].mxu0 %vm1599_vm1, %v6346_v22  ;;  %v11929_v8 = vadd.f32 %v9773_v31, %v6321_v2 }
0x182b   : > { %v9774_v21 = vpop.f32.mrb[142].mxu0  ;;  %9804 = vmatpush3.bf16.msra.mxu0 %v10942_v52  ;;  %v11925_v63 = vadd.f32 %v6311_v14, %v6257_v45 }
0x182c   : > { %v11923_v6 = vadd.f32 %v9774_v21, %v6326_v25  ;;  %v6260_v16 = vpop.f32.mrb[143].mxu0 }
0x182d   : > { %v11927_v36 = vadd.f32 %v6316_v28, %v6260_v16 }
0x182e   : > { %v6348_v49 = vpack.c.bf16 %v11923_v6, %v11929_v8 }
0x182f   : > { %v6347_v55 = vpack.c.bf16 %v11927_v36, %v11925_v63 }
0x1831   : > { %9783 = vmatprep.mubr.msk.bf16.mxu0 %vm1599_vm1, %v6347_v55 }
0x1832   : > { %9784 = vmatmul.mubr.msk.bf16.gmra.mrb[148].mxu0 %vm1599_vm1, %v6348_v49 }
0x18fd   : > { %v9781_v53 = vpop.f32.mrb[144].mxu0 }
0x18fe   : > { %v6395_v57 = vpop.f32.mrb[145].mxu0 }
0x18ff   : > { %v9782_v3 = vpop.f32.mrb[146].mxu0 }
0x1900   : > { %v6427_v15 = vpack.c.bf16 %v9782_v3, %v9781_v53  ;;  %v6398_v38 = vpop.f32.mrb[147].mxu0 }
0x1901   : > { %v6426_v50 = vpack.c.bf16 %v6398_v38, %v6395_v57 }
0x1903   : > { %9787 = vmatprep.subr.bf16.mxu1 %v6426_v50 }
0x1904   : > { %9788 = vmatpush3.bf16.msra.mxu1 %v6426_v50 }
0x1905   : > { %v9785_v20 = vpop.f32.mrb[148].mxu0  ;;  %9789 = vmatprep.subr.bf16.mxu1 %v6427_v15 }
0x1906   : > { %v6411_v56 = vpop.f32.mrb[149].mxu0 }
0x1907   : > { %v9786_v26 = vpop.f32.mrb[150].mxu0 }
0x1908   : > { %v6429_v30 = vpack.c.bf16 %v9786_v26, %v9785_v20  ;;  %v6414_v1 = vpop.f32.mrb[151].mxu0  ;;  %9790 = vmatpush3.bf16.msra.mxu1 %v6427_v15 }
0x1909   : > { %v6428_v51 = vpack.c.bf16 %v6414_v1, %v6411_v56 }
0x190b   : > { %9791 = vmatprep.subr.bf16.mxu1 %v6428_v51 }
0x190c   : > { %9792 = vmatpush3.bf16.msra.mxu1 %v6428_v51 }
0x190d   : > { %9793 = vmatprep.subr.bf16.mxu1 %v6429_v30 }
0x1910   : > { %9794 = vmatpush3.bf16.msra.mxu1 %v6429_v30 }
0x1911   : > { %9813 = vmatprep.subr.bf16.mxu1 %v11885_v54 }
0x1913   : > { %9796 = vmatmul.mubr.msk.bf16.vlgmr.msra.gmra.mrb[212].mxu1 %vm874_vm0, %v11944_v42 }
0x1914   : > { %9799 = vmatprep.mubr.msk.bf16.mxu1 %vm874_vm0, %v11949_v46  ;;  %9814 = vmatpush3.bf16.msra.mxu1 %v11885_v54 }
0x1915   : > { %9815 = vmatprep.subr.bf16.mxu1 %v11895_v4 }
0x1918   : > { %9816 = vmatpush3.bf16.msra.mxu1 %v11895_v4 }
0x1919   : > { %10142 = vmatprep.subr.msk.bf16.mxu1 %vm1795_vm2, %v11902_v60 }
0x191b   : > { %9800 = vmatmul.mubr.msk.bf16.gmra.mrb[216].mxu1 %vm874_vm0, %v11961_v7 }
0x19e6   : > { %v9797_v5 = vpop.f32.mrb[212].mxu1 }
0x19e7   : > { %v6496_v29 = vpop.f32.mrb[213].mxu1 }
0x19e8   : > { %v9798_v23 = vpop.f32.mrb[214].mxu1 }
0x19e9   : > { %v6528_v47 = vpack.c.bf16 %v9798_v23, %v9797_v5  ;;  %v6499_v54 = vpop.f32.mrb[215].mxu1 }
0x19ea   : > { %v6527_v10 = vpack.c.bf16 %v6499_v54, %v6496_v29 }
0x19ec   : > { %9805 = vmatprep.mubr.msk.bf16.mxu0 %vm1782_vm3, %v6527_v10 }
0x19ed   : > { %9806 = vmatmul.mubr.msk.bf16.vlgmr.msra.gmra.mrb[152].mxu0 %vm1782_vm3, %v6528_v47 }
0x19ee   : > { %v9801_v32 = vpop.f32.mrb[216].mxu1 }
0x19ef   : > { %v6512_v12 = vpop.f32.mrb[217].mxu1 }
0x19f0   : > { %v9802_v58 = vpop.f32.mrb[218].mxu1 }
0x19f1   : > { %v6530_v4 = vpack.c.bf16 %v9802_v58, %v9801_v32  ;;  %v6515_v13 = vpop.f32.mrb[219].mxu1 }
0x19f2   : > { %v6529_v61 = vpack.c.bf16 %v6515_v13, %v6512_v12 }
0x19f4   : > { %9809 = vmatprep.mubr.msk.bf16.mxu0 %vm1782_vm3, %v6529_v61 }
0x19f5   : > { %9810 = vmatmul.mubr.msk.bf16.gmra.mrb[156].mxu0 %vm1782_vm3, %v6530_v4 }
0x19f6   : > { %9833 = vmatprep.mubr.msk.bf16.mxu0 %vm874_vm0, %v10280_v17 }
0x1ac0   : > { %v9807_v0 = vpop.f32.mrb[152].mxu0 }
0x1ac1   : > { %v6577_v59 = vpop.f32.mrb[153].mxu0  ;;  %v11977_v62 = vsub.f32 %v11914_v43, %v9807_v0 }
0x1ac2   : > { %v11974_v60 = vsub.f32 %v11910_v40, %v6577_v59  ;;  %v9808_v37 = vpop.f32.mrb[154].mxu0 }
0x1ac3   : > { %v11980_v11 = vsub.f32 %v11908_v34, %v9808_v37  ;;  %v6580_v39 = vpop.f32.mrb[155].mxu0  ;;  %v6618_v28 = vmul.f32 %v11977_v62, %v11977_v62 }
0x1ac4   : > { %v11983_v48 = vsub.f32 %v11912_v18, %v6580_v39  ;;  %v6616_v27 = vmul.f32 %v11974_v60, %v11974_v60 }
0x1ac5   : > { %v6619_v41 = vmul.f32 %v11980_v11, %v11980_v11 }
0x1ac6   : > { %v6617_v9 = vmul.f32 %v11983_v48, %v11983_v48 }
0x1ac7   : > { %v6625_v34 = vpack.c.bf16 %v6619_v41, %v6618_v28 }
0x1ac8   : > { %v6624_v40 = vpack.c.bf16 %v6617_v9, %v6616_v27  ;;  %v9811_v43 = vpop.f32.mrb[156].mxu0 }
0x1ac9   : > { %v6593_v14 = vpop.f32.mrb[157].mxu0  ;;  %v11998_v22 = vsub.f32 %v11929_v8, %v9811_v43 }
0x1aca   : > { %v11994_v24 = vsub.f32 %v11925_v63, %v6593_v14  ;;  %v9812_v18 = vpop.f32.mrb[158].mxu0  ;;  %9817 = vmatprep.mubr.msk.bf16.mxu1 %vm1599_vm1, %v6624_v40  ;;  %v6879_v14 = vstv %s8422_s2 }
0x1acb   : > { %v12001_v31 = vsub.f32 %v11923_v6, %v9812_v18  ;;  %v6596_v45 = vpop.f32.mrb[159].mxu0  ;;  %9818 = vmatmul.mubr.msk.bf16.vlgmr.msra.gmra.mrb[220].mxu1 %vm1599_vm1, %v6625_v34  ;;  %v6622_v6 = vmul.f32 %v11998_v22, %v11998_v22 }
0x1acc   : > { %v12005_v25 = vsub.f32 %v11927_v36, %v6596_v45  ;;  %9842 = vmatpush3.bf16.msra.mxu1 %v10942_v52  ;;  %v6620_v16 = vmul.f32 %v11994_v24, %v11994_v24 }
0x1acd   : > { %v6623_v21 = vmul.f32 %v12001_v31, %v12001_v31 }
0x1ace   : > { %v6621_v2 = vmul.f32 %v12005_v25, %v12005_v25 }
0x1acf   : > { %v6627_v8 = vpack.c.bf16 %v6623_v21, %v6622_v6 }
0x1ad0   : > { %v6626_v63 = vpack.c.bf16 %v6621_v2, %v6620_v16 }
0x1ad2   : > { %9821 = vmatprep.mubr.msk.bf16.mxu1 %vm1599_vm1, %v6626_v63 }
0x1ad3   : > { %9822 = vmatmul.mubr.msk.bf16.gmra.mrb[224].mxu1 %vm1599_vm1, %v6627_v8 }
0x1b9e   : > { %v9819_v36 = vpop.f32.mrb[220].mxu1 }
0x1b9f   : > { %v6674_v52 = vpop.f32.mrb[221].mxu1 }
0x1ba0   : > { %v9820_v55 = vpop.f32.mrb[222].mxu1 }
0x1ba1   : > { %v6706_v49 = vpack.c.bf16 %v9820_v55, %v9819_v36  ;;  %v6677_v17 = vpop.f32.mrb[223].mxu1 }
0x1ba2   : > { %v6705_v53 = vpack.c.bf16 %v6677_v17, %v6674_v52 }
0x1ba4   : > { %9825 = vmatprep.subr.bf16.mxu0 %v6705_v53 }
0x1ba5   : > { %9826 = vmatpush3.bf16.msra.mxu0 %v6705_v53 }
0x1ba6   : > { %v9823_v57 = vpop.f32.mrb[224].mxu1  ;;  %9827 = vmatprep.subr.bf16.mxu0 %v6706_v49 }
0x1ba7   : > { %v6690_v3 = vpop.f32.mrb[225].mxu1 }
0x1ba8   : > { %v9824_v15 = vpop.f32.mrb[226].mxu1 }
0x1ba9   : > { %v6708_v38 = vpack.c.bf16 %v9824_v15, %v9823_v57  ;;  %v6693_v50 = vpop.f32.mrb[227].mxu1  ;;  %9828 = vmatpush3.bf16.msra.mxu0 %v6706_v49 }
0x1baa   : > { %v6707_v20 = vpack.c.bf16 %v6693_v50, %v6690_v3 }
0x1bac   : > { %9829 = vmatprep.subr.bf16.mxu0 %v6707_v20 }
0x1bad   : > { %9830 = vmatpush3.bf16.msra.mxu0 %v6707_v20 }
0x1bae   : > { %9831 = vmatprep.subr.bf16.mxu0 %v6708_v38 }
0x1bb1   : > { %9832 = vmatpush3.bf16.msra.mxu0 %v6708_v38 }
0x1bb4   : > { %9834 = vmatmul.mubr.msk.bf16.vlgmr.msra.gmra.mrb[160].mxu0 %vm874_vm0, %v11944_v42 }
0x1bb5   : > { %9837 = vmatprep.mubr.msk.bf16.mxu0 %vm874_vm0, %v11949_v46  ;;  %v10284_v46 = vld [vmem:[%s12254_s20] sm:$0xff]  }
0x1bbc   : > { %9838 = vmatmul.mubr.msk.bf16.gmra.mrb[164].mxu0 %vm874_vm0, %v11961_v7  ;;  %v10285_v7 = vld [vmem:[%s12254_s20 + $0x20] sm:$0xff]  }
0x1bbd   : > { %9859 = vmatprep.mubr.msk.bf16.mxu0 %vm874_vm0, %v10284_v46  ;;  %v10291_v46 = vld [vmem:[%s12254_s20 + $0x38] sm:$0xff]  }
0x1c87   : > { %v9835_v56 = vpop.f32.mrb[160].mxu0 }
0x1c88   : > { %v6743_v26 = vpop.f32.mrb[161].mxu0 }
0x1c89   : > { %v9836_v30 = vpop.f32.mrb[162].mxu0 }
0x1c8a   : > { %v6775_v1 = vpack.c.bf16 %v9836_v30, %v9835_v56  ;;  %v6746_v51 = vpop.f32.mrb[163].mxu0 }
0x1c8b   : > { %v6774_v5 = vpack.c.bf16 %v6746_v51, %v6743_v26 }
0x1c8d   : > { %9843 = vmatprep.mubr.msk.bf16.mxu1 %vm1782_vm3, %v6774_v5 }
0x1c8e   : > { %9844 = vmatmul.mubr.msk.bf16.vlgmr.msra.gmra.mrb[228].mxu1 %vm1782_vm3, %v6775_v1 }
0x1c8f   : > { %v9839_v29 = vpop.f32.mrb[164].mxu0 }
0x1c90   : > { %v6759_v23 = vpop.f32.mrb[165].mxu0 }
0x1c91   : > { %v9840_v47 = vpop.f32.mrb[166].mxu0 }
0x1c92   : > { %v6777_v42 = vpack.c.bf16 %v9840_v47, %v9839_v29  ;;  %v6762_v54 = vpop.f32.mrb[167].mxu0  ;;  %v10287_v47 = vld [vmem:[%s12254_s20 + $0x28] sm:$0xff]  }
0x1c93   : > { %v6776_v10 = vpack.c.bf16 %v6762_v54, %v6759_v23  ;;  %v10286_v23 = vld [vmem:[%s12254_s20 + $0x8] sm:$0xff]   ;;  %v10289_v54 = vld [vmem:[%s12254_s20 + $0x30] sm:$0xff]  }
0x1c95   : > { %9847 = vmatprep.mubr.msk.bf16.mxu1 %vm1782_vm3, %v6776_v10  ;;  %v10290_v10 = vld [vmem:[%s12254_s20 + $0x18] sm:$0xff]  }
0x1c96   : > { %9848 = vmatmul.mubr.msk.bf16.gmra.mrb[232].mxu1 %vm1782_vm3, %v6777_v42  ;;  %v10288_v42 = vld [vmem:[%s12254_s20 + $0x10] sm:$0xff]  }
0x1c97   : > { %9891 = vmatprep.mubr.msk.bf16.mxu1 %vm874_vm0, %v10285_v7  ;;  %v10292_v7 = vld [vmem:[%s12253_s19] sm:$0xff]  }
0x1d61   : > { %v9845_v32 = vpop.f32.mrb[228].mxu1 }
0x1d62   : > { %v6833_v12 = vadd.f32 1e-05, %v9845_v32  ;;  %v6824_v58 = vpop.f32.mrb[229].mxu1  ;;  %v10293_v32 = vld [vmem:[%s12253_s19 + $0x20] sm:$0xff]  }
0x1d63   : > { %v6825_v4 = vadd.f32 1e-05, %v6824_v58  ;;  %v9846_v13 = vpop.f32.mrb[230].mxu1  ;;  %v10294_v58 = vld [vmem:[%s12253_s19 + $0x8] sm:$0xff]  }
0x1d64   : > { %10378 = vrsqrt.f32 %v6833_v12  ;;  %v6836_v61 = vadd.f32 1e-05, %v9846_v13  ;;  %v6827_v0 = vpop.f32.mrb[231].mxu1  ;;  %v10308_v12 = vld [vmem:[%s12255_s21 + $0x10] sm:$0xff]  }
0x1d65   : > { %10380 = vrsqrt.f32 %v6825_v4  ;;  %v6828_v59 = vadd.f32 1e-05, %v6827_v0  ;;  %v10295_v4 = vld [vmem:[%s12253_s19 + $0x28] sm:$0xff]   ;;  %v10296_v13 = vld [vmem:[%s12253_s19 + $0x10] sm:$0xff]   ;;  %v10309_v0 = vld [vmem:[%s12255_s21 + $0x18] sm:$0xff]  }
0x1d66   : > { %10382 = vrsqrt.f32 %v6836_v61  ;;  %v10297_v61 = vld [vmem:[%s12253_s19 + $0x30] sm:$0xff]  }
0x1d67   : > { %10384 = vrsqrt.f32 %v6828_v59  ;;  %v10298_v59 = vld [vmem:[%s12253_s19 + $0x18] sm:$0xff]  }
0x1d69   : > { %v9849_v37 = vpop.f32.mrb[232].mxu1 }
0x1d6a   : > { %v6849_v39 = vadd.f32 1e-05, %v9849_v37  ;;  %v6840_v41 = vpop.f32.mrb[233].mxu1  ;;  %v10299_v37 = vld [vmem:[%s12253_s19 + $0x38] sm:$0xff]  }
0x1d6b   : > { %v6841_v27 = vadd.f32 1e-05, %v6840_v41  ;;  %v9850_v9 = vpop.f32.mrb[234].mxu1  ;;  %v10301_v41 = vld [vmem:[%s12254_s20 + $0x48] sm:$0xff]  }
0x1d6c   : > { %10386 = vrsqrt.f32 %v6849_v39  ;;  %v6852_v28 = vadd.f32 1e-05, %v9850_v9  ;;  %v6843_v40 = vpop.f32.mrb[235].mxu1  ;;  %v10300_v39 = vld [vmem:[%s12254_s20 + $0x40] sm:$0xff]   ;;  %v10303_v9 = vld [vmem:[%s12254_s20 + $0x58] sm:$0xff]  }
0x1d6d   : > { %10388 = vrsqrt.f32 %v6841_v27  ;;  %v6844_v43 = vadd.f32 1e-05, %v6843_v40  ;;  %v10302_v27 = vld [vmem:[%s12254_s20 + $0x50] sm:$0xff]   ;;  %v10310_v40 = vld [vmem:[%s12255_s21] sm:$0xff]  }
0x1d6e   : > { %v10379_v34 = vpop.eup %10378  ;;  %10390 = vrsqrt.f32 %v6852_v28  ;;  %v10304_v28 = vld [vmem:[%s12253_s19 + $0x40] sm:$0xff]  }
0x1d6f   : > { %v10381_v18 = vpop.eup %10380  ;;  %v6865_v45 = vmul.f32 %v10379_v34, %v11977_v62  ;;  %10392 = vrsqrt.f32 %v6844_v43 }
0x1d70   : > { %v10383_v21 = vpop.eup %10382  ;;  %v6863_v16 = vmul.f32 %v10381_v18, %v11974_v60 }
0x1d71   : > { %v10385_v2 = vpop.eup %10384  ;;  %v6882_v6 = vmul.f32 %v6879_v14, %v6865_v45  ;;  %v6866_v63 = vmul.f32 %v10383_v21, %v11980_v11  ;;  %vm6873_vm2 = vcmp.ge.f32.partialorder %v6865_v45, 0.0 }
0x1d72   : > { %v6880_v8 = vmul.f32 %v6879_v14, %v6863_v16  ;;  %v6864_v36 = vmul.f32 %v10385_v2, %v11983_v48  ;;  %vm6871_vm3 = vcmp.ge.f32.partialorder %v6863_v16, 0.0 }
0x1d73   : > { %vm6874_vm12 = vcmp.ge.f32.partialorder %v6866_v63, 0.0  ;;  %v6883_v52 = vmul.f32 %v6879_v14, %v6866_v63  ;;  %v6890_v49 = vsel %vm6873_vm2, %v6865_v45, %v6882_v6 }
0x1d74   : > { %vm6872_vm15 = vcmp.ge.f32.partialorder %v6864_v36, 0.0  ;;  %v6881_v55 = vmul.f32 %v6879_v14, %v6864_v36  ;;  %v6888_v53 = vsel %vm6871_vm3, %v6863_v16, %v6880_v8 }
0x1d75   : > { %v6891_v17 = vsel %vm6874_vm12, %v6866_v63, %v6883_v52 }
0x1d76   : > { %v10387_v62 = vpop.eup %10386  ;;  %v6889_v57 = vsel %vm6872_vm15, %v6864_v36, %v6881_v55  ;;  %v12040_v3 = vpack.c.bf16 %v6891_v17, %v6890_v49  ;;  %v10311_v36 = vld [vmem:[%s12255_s21 + $0x8] sm:$0xff]  }
0x1d77   : > { %v10389_v60 = vpop.eup %10388  ;;  %v6869_v15 = vmul.f32 %v10387_v62, %v11998_v22  ;;  %v12043_v11 = vpack.c.bf16 %v6889_v57, %v6888_v53  ;;  %v10312_v62 = vld [vmem:[%s12255_s21 + $0x20] sm:$0xff]  }
0x1d78   : > { %v10391_v38 = vpop.eup %10390  ;;  %v6867_v48 = vmul.f32 %v10389_v60, %v11994_v24 }
0x1d79   : > { %v10393_v50 = vpop.eup %10392  ;;  %v6886_v20 = vmul.f32 %v6879_v14, %v6869_v15  ;;  %v6870_v56 = vmul.f32 %v10391_v38, %v12001_v31  ;;  %9851 = vmatprep.subr.bf16.mxu0 %v12043_v11  ;;  %9883 = vmatprep.subr.bf16.mxu1 %v12043_v11  ;;  %vm6877_vm4 = vcmp.ge.f32.partialorder %v6869_v15, 0.0 }
0x1d7a   : > { %v6884_v26 = vmul.f32 %v6879_v14, %v6867_v48  ;;  %v6868_v30 = vmul.f32 %v10393_v50, %v12005_v25  ;;  %9852 = vmatpush3.bf16.msra.mxu0 %v12043_v11  ;;  %9884 = vmatpush3.bf16.msra.mxu1 %v12043_v11  ;;  %vm6875_vm5 = vcmp.ge.f32.partialorder %v6867_v48, 0.0  ;;  %v10313_v50 = vld [vmem:[%s12255_s21 + $0x28] sm:$0xff]  }
0x1d7b   : > { %vm6878_vm6 = vcmp.ge.f32.partialorder %v6870_v56, 0.0  ;;  %v6887_v22 = vmul.f32 %v6879_v14, %v6870_v56  ;;  %9853 = vmatprep.subr.bf16.mxu0 %v12040_v3  ;;  %9885 = vmatprep.subr.bf16.mxu1 %v12040_v3  ;;  %v6894_v31 = vsel %vm6877_vm4, %v6869_v15, %v6886_v20 }
0x1d7c   : > { %vm6876_vm7 = vcmp.ge.f32.partialorder %v6868_v30, 0.0  ;;  %v6885_v24 = vmul.f32 %v6879_v14, %v6868_v30  ;;  %v6892_v51 = vsel %vm6875_vm5, %v6867_v48, %v6884_v26 }
0x1d7d   : > { %v6895_v1 = vsel %vm6878_vm6, %v6870_v56, %v6887_v22 }
0x1d7e   : > { %v6893_v5 = vsel %vm6876_vm7, %v6868_v30, %v6885_v24  ;;  %9854 = vmatpush3.bf16.msra.mxu0 %v12040_v3  ;;  %9886 = vmatpush3.bf16.msra.mxu1 %v12040_v3  ;;  %v12056_v25 = vpack.c.bf16 %v6895_v1, %v6894_v31 }
0x1d7f   : > { %v12058_v29 = vpack.c.bf16 %v6893_v5, %v6892_v51 }
0x1d81   : > { %9855 = vmatprep.subr.bf16.mxu0 %v12058_v29  ;;  %9887 = vmatprep.subr.bf16.mxu1 %v12058_v29 }
0x1d82   : > { %9856 = vmatpush3.bf16.msra.mxu0 %v12058_v29  ;;  %9888 = vmatpush3.bf16.msra.mxu1 %v12058_v29 }
0x1d83   : > { %9857 = vmatprep.subr.bf16.mxu0 %v12056_v25  ;;  %9889 = vmatprep.subr.bf16.mxu1 %v12056_v25 }
0x1d86   : > { %9858 = vmatpush3.bf16.msra.mxu0 %v12056_v25  ;;  %9890 = vmatpush3.bf16.msra.mxu1 %v12056_v25 }
0x1d87   : > { %9867 = vmatprep.subr.bf16.mxu0 %v11019_v35  ;;  %9899 = vmatprep.subr.bf16.mxu1 %v11019_v35 }
0x1d89   : > { %9860 = vmatmul.mubr.msk.bf16.vlgmr.msra.gmra.mrb[168].mxu0 %vm874_vm0, %v10286_v23  ;;  %9892 = vmatmul.mubr.msk.bf16.vlgmr.msra.gmra.mrb[236].mxu1 %vm874_vm0, %v10287_v47  ;;  %v7846_v23 = vpop.permute.xlu0 %7845  ;;  %v7851_v47 = vpop.permute.xlu1 %7850 }
0x1d8a   : > { %9868 = vmatpush3.bf16.msra.mxu0 %v11019_v35  ;;  %9900 = vmatpush3.bf16.msra.mxu1 %v11019_v35 }
0x1d8b   : > { %9869 = vmatprep.subr.bf16.mxu0 %v11017_v33  ;;  %9901 = vmatprep.subr.bf16.mxu1 %v11017_v33 }
0x1d8c   : > { %9863 = vmatprep.mubr.msk.bf16.mxu0 %vm874_vm0, %v10288_v42  ;;  %9895 = vmatprep.mubr.msk.bf16.mxu1 %vm874_vm0, %v10289_v54 }
0x1d8d   : > { %v7856_v42 = vpop.permute.xlu0 %7855  ;;  %v7861_v54 = vpop.permute.xlu1 %7860 }
0x1d8e   : > { %9870 = vmatpush3.bf16.msra.mxu0 %v11017_v33  ;;  %9902 = vmatpush3.bf16.msra.mxu1 %v11017_v33 }
0x1d8f   : > { %9871 = vmatprep.subr.bf16.mxu0 %v11035_v19  ;;  %9903 = vmatprep.subr.bf16.mxu1 %v11035_v19 }
0x1d91   : > { %9864 = vmatmul.mubr.msk.bf16.gmra.mrb[172].mxu0 %vm874_vm0, %v10290_v10  ;;  %9896 = vmatmul.mubr.msk.bf16.gmra.mrb[240].mxu1 %vm874_vm0, %v10291_v46 }
0x1d92   : > { %9872 = vmatpush3.bf16.msra.mxu0 %v11035_v19  ;;  %9904 = vmatpush3.bf16.msra.mxu1 %v11035_v19 }
0x1d93   : > { %9873 = vmatprep.subr.bf16.mxu0 %v11031_v44  ;;  %9905 = vmatprep.subr.bf16.mxu1 %v11031_v44 }
0x1d94   : > { %9875 = vmatprep.mubr.msk.bf16.mxu0 %vm874_vm0, %v10292_v7  ;;  %9907 = vmatprep.mubr.msk.bf16.mxu1 %vm874_vm0, %v10293_v32  ;;  %v7866_v32 = vpop.permute.xlu0 %7865 }
0x1d96   : > { %9874 = vmatpush3.bf16.msra.mxu0 %v11031_v44  ;;  %9906 = vmatpush3.bf16.msra.mxu1 %v11031_v44 }
0x1d97   : > { %9939 = vmatprep.subr.bf16.mxu1 %v12043_v11  ;;  %9915 = vmatprep.subr.bf16.mxu0 %v10308_v12 }
0x1d99   : > { %9876 = vmatmul.mubr.msk.bf16.vlgmr.msra.gmra.mrb[168].mxu0 %vm874_vm0, %v10294_v58  ;;  %9908 = vmatmul.mubr.msk.bf16.vlgmr.msra.gmra.mrb[236].mxu1 %vm874_vm0, %v10295_v4 }
0x1d9a   : > { %9940 = vmatpush3.bf16.msra.mxu1 %v12043_v11  ;;  %9879 = vmatprep.mubr.msk.bf16.mxu0 %vm874_vm0, %v10296_v13 }
0x1d9b   : > { %9941 = vmatprep.subr.bf16.mxu1 %v12040_v3  ;;  %9911 = vmatprep.mubr.msk.bf16.mxu1 %vm874_vm0, %v10297_v61  ;;  %v7871_v61 = vpop.permute.xlu1 %7870 }
0x1d9c   : > { %9916 = vmatpush3.bf16.msra.mxu0 %v10308_v12 }
0x1d9d   : > { %9917 = vmatprep.subr.bf16.mxu0 %v10309_v0 }
0x1d9e   : > { %9942 = vmatpush3.bf16.msra.mxu1 %v12040_v3 }
0x1d9f   : > { %9943 = vmatprep.subr.bf16.mxu1 %v12058_v29 }
0x1da0   : > { %9918 = vmatpush3.bf16.msra.mxu0 %v10309_v0 }
0x1da1   : > { %9880 = vmatmul.mubr.msk.bf16.gmra.mrb[172].mxu0 %vm874_vm0, %v10298_v59  ;;  %9912 = vmatmul.mubr.msk.bf16.gmra.mrb[240].mxu1 %vm874_vm0, %v10299_v37  ;;  %v7876_v59 = vpop.permute.xlu0 %7875 }
0x1da2   : > { %9944 = vmatpush3.bf16.msra.mxu1 %v12058_v29  ;;  %9947 = vmatprep.mubr.msk.bf16.mxu1 %vm874_vm0, %v10300_v39 }
0x1da3   : > { %9945 = vmatprep.subr.bf16.mxu1 %v12056_v25  ;;  %9927 = vmatprep.subr.bf16.mxu0 %v10310_v40 }
0x1da6   : > { %9946 = vmatpush3.bf16.msra.mxu1 %v12056_v25 }
0x1da7   : > { %9955 = vmatprep.subr.bf16.mxu1 %v11019_v35 }
0x1da9   : > { %9948 = vmatmul.mubr.msk.bf16.vlgmr.msra.gmra.mrb[244].mxu1 %vm874_vm0, %v10301_v41 }
0x1daa   : > { %9956 = vmatpush3.bf16.msra.mxu1 %v11019_v35  ;;  %9951 = vmatprep.mubr.msk.bf16.mxu1 %vm874_vm0, %v10302_v27  ;;  %v10305_v35 = vld [vmem:[%s12253_s19 + $0x48] sm:$0xff]   ;;  %v7881_v27 = vpop.permute.xlu1 %7880 }
0x1dab   : > { %9957 = vmatprep.subr.bf16.mxu1 %v11017_v33 }
0x1dae   : > { %9958 = vmatpush3.bf16.msra.mxu1 %v11017_v33  ;;  %v10306_v33 = vld [vmem:[%s12253_s19 + $0x50] sm:$0xff]  }
0x1daf   : > { %9959 = vmatprep.subr.bf16.mxu1 %v11035_v19 }
0x1db1   : > { %9952 = vmatmul.mubr.msk.bf16.gmra.mrb[248].mxu1 %vm874_vm0, %v10303_v9 }
0x1db2   : > { %9960 = vmatpush3.bf16.msra.mxu1 %v11035_v19  ;;  %9963 = vmatprep.mubr.msk.bf16.mxu1 %vm874_vm0, %v10304_v28  ;;  %v10307_v19 = vld [vmem:[%s12253_s19 + $0x58] sm:$0xff]  }
0x1db3   : > { %9961 = vmatprep.subr.bf16.mxu1 %v11031_v44 }
0x1db6   : > { %9962 = vmatpush3.bf16.msra.mxu1 %v11031_v44 }
0x1db9   : > { %9964 = vmatmul.mubr.msk.bf16.vlgmr.msra.gmra.mrb[244].mxu1 %vm874_vm0, %v10305_v35 }
0x1dba   : > { %9967 = vmatprep.mubr.msk.bf16.mxu1 %vm874_vm0, %v10306_v33 }
0x1dc1   : > { %9968 = vmatmul.mubr.msk.bf16.gmra.mrb[248].mxu1 %vm874_vm0, %v10307_v19 }
0x1e6c   : > { %v9877_v44 = vpop.f32.mrb[168].mxu0  ;;  %v9909_v43 = vpop.f32.mrb[236].mxu1 }
0x1e6d   : > { %v7079_v34 = vpop.f32.mrb[169].mxu0  ;;  %v7299_v14 = vpop.f32.mrb[237].mxu1 }
0x1e6e   : > { %v9878_v18 = vpop.f32.mrb[170].mxu0  ;;  %v9910_v45 = vpop.f32.mrb[238].mxu1 }
0x1e6f   : > { %v7115_v21 = vpack.c.bf16 %v9878_v18, %v9877_v44  ;;  %v7336_v16 = vpack.c.bf16 %v9910_v45, %v9909_v43  ;;  %v7082_v2 = vpop.f32.mrb[171].mxu0  ;;  %v7302_v6 = vpop.f32.mrb[239].mxu1 }
0x1e70   : > { %v7114_v63 = vpack.c.bf16 %v7082_v2, %v7079_v34  ;;  %v7335_v8 = vpack.c.bf16 %v7302_v6, %v7299_v14 }
0x1e72   : > { %9919 = vmatprep.mubr.msk.bf16.mxu0 %vm1599_vm1, %v7335_v8 }
0x1e73   : > { %9920 = vmatmul.mubr.msk.bf16.vlgmr.msra.gmra.mrb[176].mxu0 %vm1599_vm1, %v7336_v16 }
0x1e74   : > { %v9881_v52 = vpop.f32.mrb[172].mxu0  ;;  %v9913_v55 = vpop.f32.mrb[240].mxu1  ;;  %9928 = vmatpush3.bf16.msra.mxu0 %v10310_v40 }
0x1e75   : > { %v7095_v49 = vpop.f32.mrb[173].mxu0  ;;  %v7315_v17 = vpop.f32.mrb[241].mxu1  ;;  %9929 = vmatprep.subr.bf16.mxu0 %v10311_v36 }
0x1e76   : > { %v9882_v53 = vpop.f32.mrb[174].mxu0  ;;  %v9914_v57 = vpop.f32.mrb[242].mxu1 }
0x1e77   : > { %v7117_v3 = vpack.c.bf16 %v9882_v53, %v9881_v52  ;;  %v7338_v60 = vpack.c.bf16 %v9914_v57, %v9913_v55  ;;  %v7098_v15 = vpop.f32.mrb[175].mxu0  ;;  %v7318_v11 = vpop.f32.mrb[243].mxu1 }
0x1e78   : > { %v7116_v38 = vpack.c.bf16 %v7098_v15, %v7095_v49  ;;  %v7337_v48 = vpack.c.bf16 %v7318_v11, %v7315_v17  ;;  %9930 = vmatpush3.bf16.msra.mxu0 %v10311_v36 }
0x1e79   : > { %9971 = vmatprep.subr.bf16.mxu0 %v10312_v62 }
0x1e7a   : > { %9923 = vmatprep.mubr.msk.bf16.mxu0 %vm1599_vm1, %v7337_v48 }
0x1e7b   : > { %9924 = vmatmul.mubr.msk.bf16.gmra.mrb[180].mxu0 %vm1599_vm1, %v7338_v60 }
0x1e7c   : > { %9931 = vmatprep.mubr.msk.bf16.mxu0 %vm1599_vm1, %v7114_v63 }
0x1e83   : > { %9932 = vmatmul.mubr.msk.bf16.vlgmr.msra.gmra.mrb[176].mxu0 %vm1599_vm1, %v7115_v21 }
0x1e84   : > { %9935 = vmatprep.mubr.msk.bf16.mxu0 %vm1599_vm1, %v7116_v38  ;;  %9972 = vmatpush3.bf16.msra.mxu0 %v10312_v62 }
0x1e85   : > { %9973 = vmatprep.subr.bf16.mxu0 %v10313_v50 }
0x1e88   : > { %9974 = vmatpush3.bf16.msra.mxu0 %v10313_v50 }
0x1e8b   : > { %9936 = vmatmul.mubr.msk.bf16.gmra.mrb[180].mxu0 %vm1599_vm1, %v7117_v3 }
0x1e8c   : > { %v9965_v20 = vpop.f32.mrb[244].mxu1 }
0x1e8d   : > { %v7698_v56 = vpop.f32.mrb[245].mxu1 }
0x1e8e   : > { %v9966_v26 = vpop.f32.mrb[246].mxu1 }
0x1e8f   : > { %v7735_v30 = vpack.c.bf16 %v9966_v26, %v9965_v20  ;;  %v7701_v22 = vpop.f32.mrb[247].mxu1 }
0x1e90   : > { %v7734_v24 = vpack.c.bf16 %v7701_v22, %v7698_v56 }
0x1e92   : > { %9975 = vmatprep.mubr.msk.bf16.mxu0 %vm1599_vm1, %v7734_v24 }
0x1e93   : > { %9976 = vmatmul.mubr.msk.bf16.vlgmr.msra.gmra.mrb[176].mxu0 %vm1599_vm1, %v7735_v30 }
0x1e94   : > { %v9969_v31 = vpop.f32.mrb[248].mxu1 }
0x1e95   : > { %v7714_v1 = vpop.f32.mrb[249].mxu1 }
0x1e96   : > { %v9970_v51 = vpop.f32.mrb[250].mxu1 }
0x1e97   : > { %v7737_v5 = vpack.c.bf16 %v9970_v51, %v9969_v31  ;;  %v7717_v25 = vpop.f32.mrb[251].mxu1 }
0x1e98   : > { %v7736_v29 = vpack.c.bf16 %v7717_v25, %v7714_v1 }
0x1e9a   : > { %9979 = vmatprep.mubr.msk.bf16.mxu0 %vm1599_vm1, %v7736_v29 }
0x1e9b   : > { %9980 = vmatmul.mubr.msk.bf16.gmra.mrb[180].mxu0 %vm1599_vm1, %v7737_v5 }
0x1f66   : > { %v9977_v10 = vpop.f32.mrb[176].mxu0 }
0x1f67   : > { %v7885_v46 = vadd.f32 %v9977_v10, %v7856_v42  ;;  %v7796_v7 = vpop.f32.mrb[177].mxu0 }
0x1f68   : > { %v7883_v12 = vadd.f32 %v7846_v23, %v7796_v7  ;;  %v9978_v58 = vpop.f32.mrb[178].mxu0 }
0x1f69   : > { %7893 = vst.msk [vmem:[%s832_s0 + $0x10] sm:$0xff] %vm874_vm0, %v7885_v46  ;;  %v7886_v4 = vadd.f32 %v9978_v58, %v7861_v54  ;;  %v7799_v13 = vpop.f32.mrb[179].mxu0 }
0x1f6a   : > { %7891 = vst.msk [vmem:[%s832_s0] sm:$0xff] %vm874_vm0, %v7883_v12  ;;  %v7884_v0 = vadd.f32 %v7851_v47, %v7799_v13 }
0x1f6b   : > { %7894 = vst.msk [vmem:[%s832_s0 + $0x18] sm:$0xff] %vm874_vm0, %v7886_v4 }
0x1f6c   : > { %7892 = vst.msk [vmem:[%s832_s0 + $0x8] sm:$0xff] %vm874_vm0, %v7884_v0 }
0x1f6e   : > { %v9981_v37 = vpop.f32.mrb[180].mxu0 }
0x1f6f   : > { %v7889_v39 = vadd.f32 %v9981_v37, %v7876_v59  ;;  %v7812_v41 = vpop.f32.mrb[181].mxu0 }
0x1f70   : > { %v7887_v9 = vadd.f32 %v7866_v32, %v7812_v41  ;;  %v9982_v28 = vpop.f32.mrb[182].mxu0 }
0x1f71   : > { %7897 = vst.msk [vmem:[%s832_s0 + $0x30] sm:$0xff] %vm874_vm0, %v7889_v39  ;;  %v7890_v35 = vadd.f32 %v9982_v28, %v7881_v27  ;;  %v7815_v33 = vpop.f32.mrb[183].mxu0 }
0x1f72   : > { %7895 = vst.msk [vmem:[%s832_s0 + $0x20] sm:$0xff] %vm874_vm0, %v7887_v9  ;;  %v7888_v19 = vadd.f32 %v7871_v61, %v7815_v33 }
0x1f73   : > { %7898 = vst.msk [vmem:[%s832_s0 + $0x38] sm:$0xff] %vm874_vm0, %v7890_v35 }
0x1f74   : > { %7896 = vst.msk [vmem:[%s832_s0 + $0x28] sm:$0xff] %vm874_vm0, %v7888_v19 }
0x1f75 PF: > { %s38_s7 = sadd.s32 1, %s10423_s7  }
0x1f76   : > { %p35_p1 = scmp.ge.s32.totalorder %s38_s7, 4  }
0x1f78   :  { %37 = sbr.rel (!%p35_p1) target bundleno = 14 (0xe), region = 187 }
0x1f7f   :  { %7920 = vsyncpa [#allocation3], 1 }
0x1f80   :  { %7922 = vsyncpa [#allocation3 + $0x1], 1 }

</bundles_post_ra>
